<compile_context>
chip_gen: v7x
topology: tpu7x:2x2x1
jax: 0.10.0
libtpu: 0.0.40
codegen_flags: <defaults>
</compile_context>

<pallas_src>
import functools

import jax
import jax.numpy as jnp
import numpy as np
from jax.experimental import pallas as pl
from jax.experimental.pallas import tpu as pltpu


def _scdown_kernel(x_ref, w1_ref, b1_ref, scat_ref, w2_ref, b2_ref, out_ref,
                   ysel_ref, *, k, s, p):
    """Fused pointwise-conv + BN + SiLU + depthwise stride-s conv + BN for one image.

    x_ref   : (C1, H, W)            input image (NCHW block, N squeezed)
    w1_ref  : (C2, C1)              BN1-folded pointwise weights
    b1_ref  : (C2, 1)               BN1-folded bias
    scat_ref: (W, k*W_out)          static 0/1 column selector (tap j, output col wo)
    w2_ref  : (C2, 1, k*k)          BN2-folded depthwise weights
    b2_ref  : (C2, 1, 1)            BN2-folded bias
    out_ref : (C2, H_out, W_out)    output (NCHW block, N squeezed)
    ysel_ref: (C2, s, Q, k*W_out)   f32 scratch, phase-split along H
    """
    C1, H, W = x_ref.shape
    C2, H_out, W_out = out_ref.shape

    # Zero scratch: covers H zero-padding rows and unwritten phase tails.
    ysel_ref[...] = jnp.zeros_like(ysel_ref)

    w1 = w1_ref[...]        # (C2, C1)
    b1 = b1_ref[...]        # (C2, 1)
    scat = scat_ref[...]    # (W, k*W_out)

    # ---- Phase 1: cv1 (1x1 conv + BN + SiLU) per row, plus W-direction tap selection ----
    for h in range(H):
        x_row = x_ref[:, h, :].astype(jnp.float32)                          # (C1, W)
        t = jnp.dot(w1, x_row, preferred_element_type=jnp.float32) + b1     # (C2, W)
        y_row = t * jax.nn.sigmoid(t)                                       # SiLU
        # columns j*W_out + wo  <-  y_padded[:, s*wo + j] (0 where out of range)
        y_sel = jnp.dot(y_row, scat, preferred_element_type=jnp.float32)    # (C2, k*W_out)
        hp = h + p                                                          # padded row index
        ysel_ref[:, hp % s, hp // s, :] = y_sel

    # ---- Phase 2: cv2 (depthwise k x k, stride s) + BN2 bias ----
    w2 = w2_ref[...]                                                        # (C2, 1, k*k)
    acc = jnp.zeros((C2, H_out, W_out), jnp.float32)
    for i in range(k):
        q0 = i // s
        # rows hp = s*ho + i  for ho in [0, H_out)  ==  phase (i % s), contiguous q slice
        rows = ysel_ref[:, i % s, q0:q0 + H_out, :]                         # (C2, H_out, k*W_out)
        for j in range(k):
            t_idx = i * k + j
            patch = rows[:, :, j * W_out:(j + 1) * W_out]                   # (C2, H_out, W_out)
            tap = w2[:, :, t_idx:t_idx + 1]                                 # (C2, 1, 1)
            acc = acc + tap * patch

    out_ref[...] = (acc + b2_ref[...]).astype(out_ref.dtype)


def scdown_forward(x, w1, bn1, w2, bn2, *, k, s, eps=1e-5):
    """SCDown forward. x: (N, C1, H, W) NCHW. Returns (N, C2, H_out, W_out) NCHW.

    w1 : (C2, C1)      pointwise conv weight (Conv2d (C2,C1,1,1) squeezed)
    bn1: (gamma, beta, running_mean, running_var), each (C2,)
    w2 : (C2, k, k)    depthwise conv weight (Conv2d (C2,1,k,k) squeezed)
    bn2: (gamma, beta, running_mean, running_var), each (C2,)
    """
    N, C1, H, W = x.shape
    C2 = w1.shape[0]
    p = k // 2
    H_out = (H + 2 * p - k) // s + 1
    W_out = (W + 2 * p - k) // s + 1
    H_pad = H + 2 * p
    Q = (H_pad + s - 1) // s  # rows per phase plane

    # --- Fold BatchNorms into conv weights/biases (inference) ---
    g1, be1, m1, v1 = bn1
    g2, be2, m2, v2 = bn2
    s1 = (g1 / jnp.sqrt(v1 + eps)).astype(jnp.float32)
    w1f = w1.astype(jnp.float32) * s1[:, None]                              # (C2, C1)
    b1f = ((be1 - s1 * m1).astype(jnp.float32))[:, None]                    # (C2, 1)
    s2 = (g2 / jnp.sqrt(v2 + eps)).astype(jnp.float32)
    w2f = (w2.reshape(C2, k * k).astype(jnp.float32) * s2[:, None])[:, None, :]  # (C2, 1, k*k)
    b2f = ((be2 - s2 * m2).astype(jnp.float32))[:, None, None]              # (C2, 1, 1)

    # --- Static 0/1 column-selection matrix: col j*W_out+wo picks input col s*wo + j - p ---
    scat_np = np.zeros((W, k * W_out), np.float32)
    for j in range(k):
        for wo in range(W_out):
            w_src = s * wo + j - p
            if 0 <= w_src < W:
                scat_np[w_src, j * W_out + wo] = 1.0
    scat = jnp.asarray(scat_np)

    kernel = functools.partial(_scdown_kernel, k=k, s=s, p=p)

    return pl.pallas_call(
        kernel,
        out_shape=jax.ShapeDtypeStruct((N, C2, H_out, W_out), x.dtype),
        grid=(N,),
        in_specs=[
            pl.BlockSpec((None, C1, H, W), lambda n: (n, 0, 0, 0)),
            pl.BlockSpec((C2, C1), lambda n: (0, 0)),
            pl.BlockSpec((C2, 1), lambda n: (0, 0)),
            pl.BlockSpec((W, k * W_out), lambda n: (0, 0)),
            pl.BlockSpec((C2, 1, k * k), lambda n: (0, 0, 0)),
            pl.BlockSpec((C2, 1, 1), lambda n: (0, 0, 0)),
        ],
        out_specs=pl.BlockSpec((None, C2, H_out, W_out), lambda n: (n, 0, 0, 0)),
        scratch_shapes=[pltpu.VMEM((C2, s, Q, k * W_out), jnp.float32)],
        compiler_params=pltpu.CompilerParams(dimension_semantics=("parallel",)),
    )(x, w1f, b1f, scat, w2f, b2f)


def _reference_scdown_np(x, w1, bn1, w2, bn2, k, s, eps):
    """Pure NumPy reference with explicit (unfolded) BatchNorms."""
    x = np.asarray(x, np.float64)
    w1 = np.asarray(w1, np.float64)
    w2 = np.asarray(w2, np.float64)
    g1, be1, m1, v1 = [np.asarray(a, np.float64) for a in bn1]
    g2, be2, m2, v2 = [np.asarray(a, np.float64) for a in bn2]
    N, C1, H, W = x.shape
    C2 = w1.shape[0]
    p = k // 2

    # cv1: 1x1 conv + BN + SiLU
    y = np.einsum('oc,nchw->nohw', w1, x)
    y = g1[None, :, None, None] * (y - m1[None, :, None, None]) / \
        np.sqrt(v1 + eps)[None, :, None, None] + be1[None, :, None, None]
    y = y * (1.0 / (1.0 + np.exp(-y)))

    # cv2: depthwise kxk, stride s, pad p, then BN (no activation)
    H_out = (H + 2 * p - k) // s + 1
    W_out = (W + 2 * p - k) // s + 1
    yp = np.zeros((N, C2, H + 2 * p, W + 2 * p), np.float64)
    yp[:, :, p:p + H, p:p + W] = y
    z = np.zeros((N, C2, H_out, W_out), np.float64)
    for i in range(k):
        for j in range(k):
            z += w2[None, :, i, j, None, None] * \
                 yp[:, :, i:i + s * (H_out - 1) + 1:s, j:j + s * (W_out - 1) + 1:s]
    z = g2[None, :, None, None] * (z - m2[None, :, None, None]) / \
        np.sqrt(v2 + eps)[None, :, None, None] + be2[None, :, None, None]
    return z


if __name__ == "__main__":
    key = jax.random.PRNGKey(0)
    keys = jax.random.split(key, 11)

    N, C1, C2, H, W = 2, 8, 16, 16, 16
    k, s = 3, 2
    eps = 1e-5

    x = jax.random.normal(keys[0], (N, C1, H, W), jnp.float32)
    w1 = jax.random.normal(keys[1], (C2, C1), jnp.float32) * (1.0 / np.sqrt(C1))
    w2 = jax.random.normal(keys[2], (C2, k, k), jnp.float32) * (1.0 / k)
    bn1 = (jax.random.uniform(keys[3], (C2,), minval=0.5, maxval=1.5),
           jax.random.normal(keys[4], (C2,)) * 0.1,
           jax.random.normal(keys[5], (C2,)) * 0.1,
           jax.random.uniform(keys[6], (C2,), minval=0.5, maxval=1.5))
    bn2 = (jax.random.uniform(keys[7], (C2,), minval=0.5, maxval=1.5),
           jax.random.normal(keys[8], (C2,)) * 0.1,
           jax.random.normal(keys[9], (C2,)) * 0.1,
           jax.random.uniform(keys[10], (C2,), minval=0.5, maxval=1.5))

    out = scdown_forward(x, w1, bn1, w2, bn2, k=k, s=s, eps=eps)
    out = jax.block_until_ready(out)

    ref = _reference_scdown_np(x, w1, bn1, w2, bn2, k, s, eps)
    assert out.shape == (N, C2, H // s, W // s), f"bad shape {out.shape}"
    assert np.allclose(np.asarray(out, np.float64), ref, atol=2e-3, rtol=2e-3), \
        "SCDown mismatch: max err %e" % np.max(np.abs(np.asarray(out, np.float64) - ref))
    print("KERNEL_OK")
</pallas_src>

<mosaic_0001>
module attributes {stable_mosaic.version = 11 : i64} {
  func.func @_scdown_kernel(%arg0: i32, %arg1: memref<1x8x16x16xf32, #tpu.memory_space<vmem>>, %arg2: memref<16x8xf32, #tpu.memory_space<vmem>>, %arg3: memref<16x1xf32, #tpu.memory_space<vmem>>, %arg4: memref<16x24xf32, #tpu.memory_space<vmem>>, %arg5: memref<16x1x9xf32, #tpu.memory_space<vmem>>, %arg6: memref<16x1x1xf32, #tpu.memory_space<vmem>>, %arg7: memref<1x16x8x8xf32, #tpu.memory_space<vmem>>, %arg8: memref<16x2x9x24xf32, #tpu.memory_space<vmem>>) attributes {dimension_semantics = [#tpu.dimension_semantics<parallel>], iteration_bounds = array<i64: 2>, scalar_prefetch = 0 : i64, scratch_operands = 1 : i64, tpu.core_type = #tpu.core_type<tc>, window_params = [{transform_indices = @transform_0, window_bounds = array<i64: 1, 8, 16, 16>}, {pipeline_mode = #tpu.pipeline_mode<synchronous>, transform_indices = @transform_1, window_bounds = array<i64: 16, 8>}, {pipeline_mode = #tpu.pipeline_mode<synchronous>, transform_indices = @transform_2, window_bounds = array<i64: 16, 1>}, {pipeline_mode = #tpu.pipeline_mode<synchronous>, transform_indices = @transform_3, window_bounds = array<i64: 16, 24>}, {pipeline_mode = #tpu.pipeline_mode<synchronous>, transform_indices = @transform_4, window_bounds = array<i64: 16, 1, 9>}, {pipeline_mode = #tpu.pipeline_mode<synchronous>, transform_indices = @transform_5, window_bounds = array<i64: 16, 1, 1>}, {transform_indices = @transform_6, window_bounds = array<i64: 1, 16, 8, 8>}]} {
    %cst = arith.constant 0.000000e+00 : f32
    %0 = vector.broadcast %cst : f32 to vector<16x2x9x24xf32>
    %c0 = arith.constant 0 : index
    %c0_0 = arith.constant 0 : index
    %c0_1 = arith.constant 0 : index
    %c0_2 = arith.constant 0 : index
    %1 = vector.load %arg8[%c0, %c0_0, %c0_1, %c0_2] : memref<16x2x9x24xf32, #tpu.memory_space<vmem>>, vector<16x2x9x24xf32>
    tpu.vector_store %arg8[%c0, %c0_0, %c0_1, %c0_2], %0 {strides = array<i32>} : memref<16x2x9x24xf32, #tpu.memory_space<vmem>>, vector<16x2x9x24xf32>,
    %c0_3 = arith.constant 0 : index
    %c0_4 = arith.constant 0 : index
    %2 = vector.load %arg2[%c0_3, %c0_4] : memref<16x8xf32, #tpu.memory_space<vmem>>, vector<16x8xf32>
    %c0_5 = arith.constant 0 : index
    %c0_6 = arith.constant 0 : index
    %3 = vector.load %arg3[%c0_5, %c0_6] : memref<16x1xf32, #tpu.memory_space<vmem>>, vector<16x1xf32>
    %c0_7 = arith.constant 0 : index
    %c0_8 = arith.constant 0 : index
    %4 = vector.load %arg4[%c0_7, %c0_8] : memref<16x24xf32, #tpu.memory_space<vmem>>, vector<16x24xf32>
    %c0_9 = arith.constant 0 : index
    %c0_10 = arith.constant 0 : index
    %c0_11 = arith.constant 0 : index
    %c0_12 = arith.constant 0 : index
    %5 = vector.load %arg1[%c0_9, %c0_10, %c0_11, %c0_12] : memref<1x8x16x16xf32, #tpu.memory_space<vmem>>, vector<1x8x1x16xf32>
    %6 = vector.shape_cast %5 : vector<1x8x1x16xf32> to vector<8x16xf32>
    %cst_13 = arith.constant dense<0.000000e+00> : vector<16x16xf32>
    %7 = tpu.matmul %2, %6, %cst_13 {dimension_numbers = #tpu.dot_dimension_numbers<[1], [0], [0], [1], [0, 0, 1, 1], [], []>} : vector<16x8xf32>, vector<8x16xf32>, vector<16x16xf32> -> vector<16x16xf32>
    %8 = vector.broadcast %3 : vector<16x1xf32> to vector<16x16xf32>
    %9 = arith.addf %7, %8 : vector<16x16xf32>
    %10 = arith.negf %9 : vector<16x16xf32>
    %11 = math.exp %10 : vector<16x16xf32>
    %cst_14 = arith.constant 1.000000e+00 : f32
    %12 = vector.broadcast %cst_14 : f32 to vector<16x16xf32>
    %13 = arith.addf %12, %11 : vector<16x16xf32>
    %14 = arith.divf %12, %13 : vector<16x16xf32>
    %15 = arith.mulf %9, %14 : vector<16x16xf32>
    %cst_15 = arith.constant dense<0.000000e+00> : vector<16x24xf32>
    %16 = tpu.matmul %15, %4, %cst_15 {dimension_numbers = #tpu.dot_dimension_numbers<[1], [0], [0], [1], [0, 0, 1, 1], [], []>} : vector<16x16xf32>, vector<16x24xf32>, vector<16x24xf32> -> vector<16x24xf32>
    %c0_16 = arith.constant 0 : index
    %c1 = arith.constant 1 : index
    %c0_17 = arith.constant 0 : index
    %c0_18 = arith.constant 0 : index
    %17 = vector.load %arg8[%c0_16, %c1, %c0_17, %c0_18] : memref<16x2x9x24xf32, #tpu.memory_space<vmem>>, vector<16x1x1x24xf32>
    %18 = vector.shape_cast %17 : vector<16x1x1x24xf32> to vector<16x24xf32>
    %19 = vector.shape_cast %16 : vector<16x24xf32> to vector<16x1x1x24xf32>
    tpu.vector_store %arg8[%c0_16, %c1, %c0_17, %c0_18], %19 {strides = array<i32>} : memref<16x2x9x24xf32, #tpu.memory_space<vmem>>, vector<16x1x1x24xf32>,
    %c0_19 = arith.constant 0 : index
    %c0_20 = arith.constant 0 : index
    %c1_21 = arith.constant 1 : index
    %c0_22 = arith.constant 0 : index
    %20 = vector.load %arg1[%c0_19, %c0_20, %c1_21, %c0_22] : memref<1x8x16x16xf32, #tpu.memory_space<vmem>>, vector<1x8x1x16xf32>
    %21 = vector.shape_cast %20 : vector<1x8x1x16xf32> to vector<8x16xf32>
    %cst_23 = arith.constant dense<0.000000e+00> : vector<16x16xf32>
    %22 = tpu.matmul %2, %21, %cst_23 {dimension_numbers = #tpu.dot_dimension_numbers<[1], [0], [0], [1], [0, 0, 1, 1], [], []>} : vector<16x8xf32>, vector<8x16xf32>, vector<16x16xf32> -> vector<16x16xf32>
    %23 = vector.broadcast %3 : vector<16x1xf32> to vector<16x16xf32>
    %24 = arith.addf %22, %23 : vector<16x16xf32>
    %25 = arith.negf %24 : vector<16x16xf32>
    %26 = math.exp %25 : vector<16x16xf32>
    %cst_24 = arith.constant 1.000000e+00 : f32
    %27 = vector.broadcast %cst_24 : f32 to vector<16x16xf32>
    %28 = arith.addf %27, %26 : vector<16x16xf32>
    %29 = arith.divf %27, %28 : vector<16x16xf32>
    %30 = arith.mulf %24, %29 : vector<16x16xf32>
    %cst_25 = arith.constant dense<0.000000e+00> : vector<16x24xf32>
    %31 = tpu.matmul %30, %4, %cst_25 {dimension_numbers = #tpu.dot_dimension_numbers<[1], [0], [0], [1], [0, 0, 1, 1], [], []>} : vector<16x16xf32>, vector<16x24xf32>, vector<16x24xf32> -> vector<16x24xf32>
    %c0_26 = arith.constant 0 : index
    %c0_27 = arith.constant 0 : index
    %c1_28 = arith.constant 1 : index
    %c0_29 = arith.constant 0 : index
    %32 = vector.load %arg8[%c0_26, %c0_27, %c1_28, %c0_29] : memref<16x2x9x24xf32, #tpu.memory_space<vmem>>, vector<16x1x1x24xf32>
    %33 = vector.shape_cast %32 : vector<16x1x1x24xf32> to vector<16x24xf32>
    %34 = vector.shape_cast %31 : vector<16x24xf32> to vector<16x1x1x24xf32>
    tpu.vector_store %arg8[%c0_26, %c0_27, %c1_28, %c0_29], %34 {strides = array<i32>} : memref<16x2x9x24xf32, #tpu.memory_space<vmem>>, vector<16x1x1x24xf32>,
    %c0_30 = arith.constant 0 : index
    %c0_31 = arith.constant 0 : index
    %c2 = arith.constant 2 : index
    %c0_32 = arith.constant 0 : index
    %35 = vector.load %arg1[%c0_30, %c0_31, %c2, %c0_32] : memref<1x8x16x16xf32, #tpu.memory_space<vmem>>, vector<1x8x1x16xf32>
    %36 = vector.shape_cast %35 : vector<1x8x1x16xf32> to vector<8x16xf32>
    %cst_33 = arith.constant dense<0.000000e+00> : vector<16x16xf32>
    %37 = tpu.matmul %2, %36, %cst_33 {dimension_numbers = #tpu.dot_dimension_numbers<[1], [0], [0], [1], [0, 0, 1, 1], [], []>} : vector<16x8xf32>, vector<8x16xf32>, vector<16x16xf32> -> vector<16x16xf32>
    %38 = vector.broadcast %3 : vector<16x1xf32> to vector<16x16xf32>
    %39 = arith.addf %37, %38 : vector<16x16xf32>
    %40 = arith.negf %39 : vector<16x16xf32>
    %41 = math.exp %40 : vector<16x16xf32>
    %cst_34 = arith.constant 1.000000e+00 : f32
    %42 = vector.broadcast %cst_34 : f32 to vector<16x16xf32>
    %43 = arith.addf %42, %41 : vector<16x16xf32>
    %44 = arith.divf %42, %43 : vector<16x16xf32>
    %45 = arith.mulf %39, %44 : vector<16x16xf32>
    %cst_35 = arith.constant dense<0.000000e+00> : vector<16x24xf32>
    %46 = tpu.matmul %45, %4, %cst_35 {dimension_numbers = #tpu.dot_dimension_numbers<[1], [0], [0], [1], [0, 0, 1, 1], [], []>} : vector<16x16xf32>, vector<16x24xf32>, vector<16x24xf32> -> vector<16x24xf32>
    %c0_36 = arith.constant 0 : index
    %c1_37 = arith.constant 1 : index
    %c1_38 = arith.constant 1 : index
    %c0_39 = arith.constant 0 : index
    %47 = vector.load %arg8[%c0_36, %c1_37, %c1_38, %c0_39] : memref<16x2x9x24xf32, #tpu.memory_space<vmem>>, vector<16x1x1x24xf32>
    %48 = vector.shape_cast %47 : vector<16x1x1x24xf32> to vector<16x24xf32>
    %49 = vector.shape_cast %46 : vector<16x24xf32> to vector<16x1x1x24xf32>
    tpu.vector_store %arg8[%c0_36, %c1_37, %c1_38, %c0_39], %49 {strides = array<i32>} : memref<16x2x9x24xf32, #tpu.memory_space<vmem>>, vector<16x1x1x24xf32>,
    %c0_40 = arith.constant 0 : index
    %c0_41 = arith.constant 0 : index
    %c3 = arith.constant 3 : index
    %c0_42 = arith.constant 0 : index
    %50 = vector.load %arg1[%c0_40, %c0_41, %c3, %c0_42] : memref<1x8x16x16xf32, #tpu.memory_space<vmem>>, vector<1x8x1x16xf32>
    %51 = vector.shape_cast %50 : vector<1x8x1x16xf32> to vector<8x16xf32>
    %cst_43 = arith.constant dense<0.000000e+00> : vector<16x16xf32>
    %52 = tpu.matmul %2, %51, %cst_43 {dimension_numbers = #tpu.dot_dimension_numbers<[1], [0], [0], [1], [0, 0, 1, 1], [], []>} : vector<16x8xf32>, vector<8x16xf32>, vector<16x16xf32> -> vector<16x16xf32>
    %53 = vector.broadcast %3 : vector<16x1xf32> to vector<16x16xf32>
    %54 = arith.addf %52, %53 : vector<16x16xf32>
    %55 = arith.negf %54 : vector<16x16xf32>
    %56 = math.exp %55 : vector<16x16xf32>
    %cst_44 = arith.constant 1.000000e+00 : f32
    %57 = vector.broadcast %cst_44 : f32 to vector<16x16xf32>
    %58 = arith.addf %57, %56 : vector<16x16xf32>
    %59 = arith.divf %57, %58 : vector<16x16xf32>
    %60 = arith.mulf %54, %59 : vector<16x16xf32>
    %cst_45 = arith.constant dense<0.000000e+00> : vector<16x24xf32>
    %61 = tpu.matmul %60, %4, %cst_45 {dimension_numbers = #tpu.dot_dimension_numbers<[1], [0], [0], [1], [0, 0, 1, 1], [], []>} : vector<16x16xf32>, vector<16x24xf32>, vector<16x24xf32> -> vector<16x24xf32>
    %c0_46 = arith.constant 0 : index
    %c0_47 = arith.constant 0 : index
    %c2_48 = arith.constant 2 : index
    %c0_49 = arith.constant 0 : index
    %62 = vector.load %arg8[%c0_46, %c0_47, %c2_48, %c0_49] : memref<16x2x9x24xf32, #tpu.memory_space<vmem>>, vector<16x1x1x24xf32>
    %63 = vector.shape_cast %62 : vector<16x1x1x24xf32> to vector<16x24xf32>
    %64 = vector.shape_cast %61 : vector<16x24xf32> to vector<16x1x1x24xf32>
    tpu.vector_store %arg8[%c0_46, %c0_47, %c2_48, %c0_49], %64 {strides = array<i32>} : memref<16x2x9x24xf32, #tpu.memory_space<vmem>>, vector<16x1x1x24xf32>,
    %c0_50 = arith.constant 0 : index
    %c0_51 = arith.constant 0 : index
    %c4 = arith.constant 4 : index
    %c0_52 = arith.constant 0 : index
    %65 = vector.load %arg1[%c0_50, %c0_51, %c4, %c0_52] : memref<1x8x16x16xf32, #tpu.memory_space<vmem>>, vector<1x8x1x16xf32>
    %66 = vector.shape_cast %65 : vector<1x8x1x16xf32> to vector<8x16xf32>
    %cst_53 = arith.constant dense<0.000000e+00> : vector<16x16xf32>
    %67 = tpu.matmul %2, %66, %cst_53 {dimension_numbers = #tpu.dot_dimension_numbers<[1], [0], [0], [1], [0, 0, 1, 1], [], []>} : vector<16x8xf32>, vector<8x16xf32>, vector<16x16xf32> -> vector<16x16xf32>
    %68 = vector.broadcast %3 : vector<16x1xf32> to vector<16x16xf32>
    %69 = arith.addf %67, %68 : vector<16x16xf32>
    %70 = arith.negf %69 : vector<16x16xf32>
    %71 = math.exp %70 : vector<16x16xf32>
    %cst_54 = arith.constant 1.000000e+00 : f32
    %72 = vector.broadcast %cst_54 : f32 to vector<16x16xf32>
    %73 = arith.addf %72, %71 : vector<16x16xf32>
    %74 = arith.divf %72, %73 : vector<16x16xf32>
    %75 = arith.mulf %69, %74 : vector<16x16xf32>
    %cst_55 = arith.constant dense<0.000000e+00> : vector<16x24xf32>
    %76 = tpu.matmul %75, %4, %cst_55 {dimension_numbers = #tpu.dot_dimension_numbers<[1], [0], [0], [1], [0, 0, 1, 1], [], []>} : vector<16x16xf32>, vector<16x24xf32>, vector<16x24xf32> -> vector<16x24xf32>
    %c0_56 = arith.constant 0 : index
    %c1_57 = arith.constant 1 : index
    %c2_58 = arith.constant 2 : index
    %c0_59 = arith.constant 0 : index
    %77 = vector.load %arg8[%c0_56, %c1_57, %c2_58, %c0_59] : memref<16x2x9x24xf32, #tpu.memory_space<vmem>>, vector<16x1x1x24xf32>
    %78 = vector.shape_cast %77 : vector<16x1x1x24xf32> to vector<16x24xf32>
    %79 = vector.shape_cast %76 : vector<16x24xf32> to vector<16x1x1x24xf32>
    tpu.vector_store %arg8[%c0_56, %c1_57, %c2_58, %c0_59], %79 {strides = array<i32>} : memref<16x2x9x24xf32, #tpu.memory_space<vmem>>, vector<16x1x1x24xf32>,
    %c0_60 = arith.constant 0 : index
    %c0_61 = arith.constant 0 : index
    %c5 = arith.constant 5 : index
    %c0_62 = arith.constant 0 : index
    %80 = vector.load %arg1[%c0_60, %c0_61, %c5, %c0_62] : memref<1x8x16x16xf32, #tpu.memory_space<vmem>>, vector<1x8x1x16xf32>
    %81 = vector.shape_cast %80 : vector<1x8x1x16xf32> to vector<8x16xf32>
    %cst_63 = arith.constant dense<0.000000e+00> : vector<16x16xf32>
    %82 = tpu.matmul %2, %81, %cst_63 {dimension_numbers = #tpu.dot_dimension_numbers<[1], [0], [0], [1], [0, 0, 1, 1], [], []>} : vector<16x8xf32>, vector<8x16xf32>, vector<16x16xf32> -> vector<16x16xf32>
    %83 = vector.broadcast %3 : vector<16x1xf32> to vector<16x16xf32>
    %84 = arith.addf %82, %83 : vector<16x16xf32>
    %85 = arith.negf %84 : vector<16x16xf32>
    %86 = math.exp %85 : vector<16x16xf32>
    %cst_64 = arith.constant 1.000000e+00 : f32
    %87 = vector.broadcast %cst_64 : f32 to vector<16x16xf32>
    %88 = arith.addf %87, %86 : vector<16x16xf32>
    %89 = arith.divf %87, %88 : vector<16x16xf32>
    %90 = arith.mulf %84, %89 : vector<16x16xf32>
    %cst_65 = arith.constant dense<0.000000e+00> : vector<16x24xf32>
    %91 = tpu.matmul %90, %4, %cst_65 {dimension_numbers = #tpu.dot_dimension_numbers<[1], [0], [0], [1], [0, 0, 1, 1], [], []>} : vector<16x16xf32>, vector<16x24xf32>, vector<16x24xf32> -> vector<16x24xf32>
    %c0_66 = arith.constant 0 : index
    %c0_67 = arith.constant 0 : index
    %c3_68 = arith.constant 3 : index
    %c0_69 = arith.constant 0 : index
    %92 = vector.load %arg8[%c0_66, %c0_67, %c3_68, %c0_69] : memref<16x2x9x24xf32, #tpu.memory_space<vmem>>, vector<16x1x1x24xf32>
    %93 = vector.shape_cast %92 : vector<16x1x1x24xf32> to vector<16x24xf32>
    %94 = vector.shape_cast %91 : vector<16x24xf32> to vector<16x1x1x24xf32>
    tpu.vector_store %arg8[%c0_66, %c0_67, %c3_68, %c0_69], %94 {strides = array<i32>} : memref<16x2x9x24xf32, #tpu.memory_space<vmem>>, vector<16x1x1x24xf32>,
    %c0_70 = arith.constant 0 : index
    %c0_71 = arith.constant 0 : index
    %c6 = arith.constant 6 : index
    %c0_72 = arith.constant 0 : index
    %95 = vector.load %arg1[%c0_70, %c0_71, %c6, %c0_72] : memref<1x8x16x16xf32, #tpu.memory_space<vmem>>, vector<1x8x1x16xf32>
    %96 = vector.shape_cast %95 : vector<1x8x1x16xf32> to vector<8x16xf32>
    %cst_73 = arith.constant dense<0.000000e+00> : vector<16x16xf32>
    %97 = tpu.matmul %2, %96, %cst_73 {dimension_numbers = #tpu.dot_dimension_numbers<[1], [0], [0], [1], [0, 0, 1, 1], [], []>} : vector<16x8xf32>, vector<8x16xf32>, vector<16x16xf32> -> vector<16x16xf32>
    %98 = vector.broadcast %3 : vector<16x1xf32> to vector<16x16xf32>
    %99 = arith.addf %97, %98 : vector<16x16xf32>
    %100 = arith.negf %99 : vector<16x16xf32>
    %101 = math.exp %100 : vector<16x16xf32>
    %cst_74 = arith.constant 1.000000e+00 : f32
    %102 = vector.broadcast %cst_74 : f32 to vector<16x16xf32>
    %103 = arith.addf %102, %101 : vector<16x16xf32>
    %104 = arith.divf %102, %103 : vector<16x16xf32>
    %105 = arith.mulf %99, %104 : vector<16x16xf32>
    %cst_75 = arith.constant dense<0.000000e+00> : vector<16x24xf32>
    %106 = tpu.matmul %105, %4, %cst_75 {dimension_numbers = #tpu.dot_dimension_numbers<[1], [0], [0], [1], [0, 0, 1, 1], [], []>} : vector<16x16xf32>, vector<16x24xf32>, vector<16x24xf32> -> vector<16x24xf32>
    %c0_76 = arith.constant 0 : index
    %c1_77 = arith.constant 1 : index
    %c3_78 = arith.constant 3 : index
    %c0_79 = arith.constant 0 : index
    %107 = vector.load %arg8[%c0_76, %c1_77, %c3_78, %c0_79] : memref<16x2x9x24xf32, #tpu.memory_space<vmem>>, vector<16x1x1x24xf32>
    %108 = vector.shape_cast %107 : vector<16x1x1x24xf32> to vector<16x24xf32>
    %109 = vector.shape_cast %106 : vector<16x24xf32> to vector<16x1x1x24xf32>
    tpu.vector_store %arg8[%c0_76, %c1_77, %c3_78, %c0_79], %109 {strides = array<i32>} : memref<16x2x9x24xf32, #tpu.memory_space<vmem>>, vector<16x1x1x24xf32>,
    %c0_80 = arith.constant 0 : index
    %c0_81 = arith.constant 0 : index
    %c7 = arith.constant 7 : index
    %c0_82 = arith.constant 0 : index
    %110 = vector.load %arg1[%c0_80, %c0_81, %c7, %c0_82] : memref<1x8x16x16xf32, #tpu.memory_space<vmem>>, vector<1x8x1x16xf32>
    %111 = vector.shape_cast %110 : vector<1x8x1x16xf32> to vector<8x16xf32>
    %cst_83 = arith.constant dense<0.000000e+00> : vector<16x16xf32>
    %112 = tpu.matmul %2, %111, %cst_83 {dimension_numbers = #tpu.dot_dimension_numbers<[1], [0], [0], [1], [0, 0, 1, 1], [], []>} : vector<16x8xf32>, vector<8x16xf32>, vector<16x16xf32> -> vector<16x16xf32>
    %113 = vector.broadcast %3 : vector<16x1xf32> to vector<16x16xf32>
    %114 = arith.addf %112, %113 : vector<16x16xf32>
    %115 = arith.negf %114 : vector<16x16xf32>
    %116 = math.exp %115 : vector<16x16xf32>
    %cst_84 = arith.constant 1.000000e+00 : f32
    %117 = vector.broadcast %cst_84 : f32 to vector<16x16xf32>
    %118 = arith.addf %117, %116 : vector<16x16xf32>
    %119 = arith.divf %117, %118 : vector<16x16xf32>
    %120 = arith.mulf %114, %119 : vector<16x16xf32>
    %cst_85 = arith.constant dense<0.000000e+00> : vector<16x24xf32>
    %121 = tpu.matmul %120, %4, %cst_85 {dimension_numbers = #tpu.dot_dimension_numbers<[1], [0], [0], [1], [0, 0, 1, 1], [], []>} : vector<16x16xf32>, vector<16x24xf32>, vector<16x24xf32> -> vector<16x24xf32>
    %c0_86 = arith.constant 0 : index
    %c0_87 = arith.constant 0 : index
    %c4_88 = arith.constant 4 : index
    %c0_89 = arith.constant 0 : index
    %122 = vector.load %arg8[%c0_86, %c0_87, %c4_88, %c0_89] : memref<16x2x9x24xf32, #tpu.memory_space<vmem>>, vector<16x1x1x24xf32>
    %123 = vector.shape_cast %122 : vector<16x1x1x24xf32> to vector<16x24xf32>
    %124 = vector.shape_cast %121 : vector<16x24xf32> to vector<16x1x1x24xf32>
    tpu.vector_store %arg8[%c0_86, %c0_87, %c4_88, %c0_89], %124 {strides = array<i32>} : memref<16x2x9x24xf32, #tpu.memory_space<vmem>>, vector<16x1x1x24xf32>,
    %c0_90 = arith.constant 0 : index
    %c0_91 = arith.constant 0 : index
    %c8 = arith.constant 8 : index
    %c0_92 = arith.constant 0 : index
    %125 = vector.load %arg1[%c0_90, %c0_91, %c8, %c0_92] : memref<1x8x16x16xf32, #tpu.memory_space<vmem>>, vector<1x8x1x16xf32>
    %126 = vector.shape_cast %125 : vector<1x8x1x16xf32> to vector<8x16xf32>
    %cst_93 = arith.constant dense<0.000000e+00> : vector<16x16xf32>
    %127 = tpu.matmul %2, %126, %cst_93 {dimension_numbers = #tpu.dot_dimension_numbers<[1], [0], [0], [1], [0, 0, 1, 1], [], []>} : vector<16x8xf32>, vector<8x16xf32>, vector<16x16xf32> -> vector<16x16xf32>
    %128 = vector.broadcast %3 : vector<16x1xf32> to vector<16x16xf32>
    %129 = arith.addf %127, %128 : vector<16x16xf32>
    %130 = arith.negf %129 : vector<16x16xf32>
    %131 = math.exp %130 : vector<16x16xf32>
    %cst_94 = arith.constant 1.000000e+00 : f32
    %132 = vector.broadcast %cst_94 : f32 to vector<16x16xf32>
    %133 = arith.addf %132, %131 : vector<16x16xf32>
    %134 = arith.divf %132, %133 : vector<16x16xf32>
    %135 = arith.mulf %129, %134 : vector<16x16xf32>
    %cst_95 = arith.constant dense<0.000000e+00> : vector<16x24xf32>
    %136 = tpu.matmul %135, %4, %cst_95 {dimension_numbers = #tpu.dot_dimension_numbers<[1], [0], [0], [1], [0, 0, 1, 1], [], []>} : vector<16x16xf32>, vector<16x24xf32>, vector<16x24xf32> -> vector<16x24xf32>
    %c0_96 = arith.constant 0 : index
    %c1_97 = arith.constant 1 : index
    %c4_98 = arith.constant 4 : index
    %c0_99 = arith.constant 0 : index
    %137 = vector.load %arg8[%c0_96, %c1_97, %c4_98, %c0_99] : memref<16x2x9x24xf32, #tpu.memory_space<vmem>>, vector<16x1x1x24xf32>
    %138 = vector.shape_cast %137 : vector<16x1x1x24xf32> to vector<16x24xf32>
    %139 = vector.shape_cast %136 : vector<16x24xf32> to vector<16x1x1x24xf32>
    tpu.vector_store %arg8[%c0_96, %c1_97, %c4_98, %c0_99], %139 {strides = array<i32>} : memref<16x2x9x24xf32, #tpu.memory_space<vmem>>, vector<16x1x1x24xf32>,
    %c0_100 = arith.constant 0 : index
    %c0_101 = arith.constant 0 : index
    %c9 = arith.constant 9 : index
    %c0_102 = arith.constant 0 : index
    %140 = vector.load %arg1[%c0_100, %c0_101, %c9, %c0_102] : memref<1x8x16x16xf32, #tpu.memory_space<vmem>>, vector<1x8x1x16xf32>
    %141 = vector.shape_cast %140 : vector<1x8x1x16xf32> to vector<8x16xf32>
    %cst_103 = arith.constant dense<0.000000e+00> : vector<16x16xf32>
    %142 = tpu.matmul %2, %141, %cst_103 {dimension_numbers = #tpu.dot_dimension_numbers<[1], [0], [0], [1], [0, 0, 1, 1], [], []>} : vector<16x8xf32>, vector<8x16xf32>, vector<16x16xf32> -> vector<16x16xf32>
    %143 = vector.broadcast %3 : vector<16x1xf32> to vector<16x16xf32>
    %144 = arith.addf %142, %143 : vector<16x16xf32>
    %145 = arith.negf %144 : vector<16x16xf32>
    %146 = math.exp %145 : vector<16x16xf32>
    %cst_104 = arith.constant 1.000000e+00 : f32
    %147 = vector.broadcast %cst_104 : f32 to vector<16x16xf32>
    %148 = arith.addf %147, %146 : vector<16x16xf32>
    %149 = arith.divf %147, %148 : vector<16x16xf32>
    %150 = arith.mulf %144, %149 : vector<16x16xf32>
    %cst_105 = arith.constant dense<0.000000e+00> : vector<16x24xf32>
    %151 = tpu.matmul %150, %4, %cst_105 {dimension_numbers = #tpu.dot_dimension_numbers<[1], [0], [0], [1], [0, 0, 1, 1], [], []>} : vector<16x16xf32>, vector<16x24xf32>, vector<16x24xf32> -> vector<16x24xf32>
    %c0_106 = arith.constant 0 : index
    %c0_107 = arith.constant 0 : index
    %c5_108 = arith.constant 5 : index
    %c0_109 = arith.constant 0 : index
    %152 = vector.load %arg8[%c0_106, %c0_107, %c5_108, %c0_109] : memref<16x2x9x24xf32, #tpu.memory_space<vmem>>, vector<16x1x1x24xf32>
    %153 = vector.shape_cast %152 : vector<16x1x1x24xf32> to vector<16x24xf32>
    %154 = vector.shape_cast %151 : vector<16x24xf32> to vector<16x1x1x24xf32>
    tpu.vector_store %arg8[%c0_106, %c0_107, %c5_108, %c0_109], %154 {strides = array<i32>} : memref<16x2x9x24xf32, #tpu.memory_space<vmem>>, vector<16x1x1x24xf32>,
    %c0_110 = arith.constant 0 : index
    %c0_111 = arith.constant 0 : index
    %c10 = arith.constant 10 : index
    %c0_112 = arith.constant 0 : index
    %155 = vector.load %arg1[%c0_110, %c0_111, %c10, %c0_112] : memref<1x8x16x16xf32, #tpu.memory_space<vmem>>, vector<1x8x1x16xf32>
    %156 = vector.shape_cast %155 : vector<1x8x1x16xf32> to vector<8x16xf32>
    %cst_113 = arith.constant dense<0.000000e+00> : vector<16x16xf32>
    %157 = tpu.matmul %2, %156, %cst_113 {dimension_numbers = #tpu.dot_dimension_numbers<[1], [0], [0], [1], [0, 0, 1, 1], [], []>} : vector<16x8xf32>, vector<8x16xf32>, vector<16x16xf32> -> vector<16x16xf32>
    %158 = vector.broadcast %3 : vector<16x1xf32> to vector<16x16xf32>
    %159 = arith.addf %157, %158 : vector<16x16xf32>
    %160 = arith.negf %159 : vector<16x16xf32>
    %161 = math.exp %160 : vector<16x16xf32>
    %cst_114 = arith.constant 1.000000e+00 : f32
    %162 = vector.broadcast %cst_114 : f32 to vector<16x16xf32>
    %163 = arith.addf %162, %161 : vector<16x16xf32>
    %164 = arith.divf %162, %163 : vector<16x16xf32>
    %165 = arith.mulf %159, %164 : vector<16x16xf32>
    %cst_115 = arith.constant dense<0.000000e+00> : vector<16x24xf32>
    %166 = tpu.matmul %165, %4, %cst_115 {dimension_numbers = #tpu.dot_dimension_numbers<[1], [0], [0], [1], [0, 0, 1, 1], [], []>} : vector<16x16xf32>, vector<16x24xf32>, vector<16x24xf32> -> vector<16x24xf32>
    %c0_116 = arith.constant 0 : index
    %c1_117 = arith.constant 1 : index
    %c5_118 = arith.constant 5 : index
    %c0_119 = arith.constant 0 : index
    %167 = vector.load %arg8[%c0_116, %c1_117, %c5_118, %c0_119] : memref<16x2x9x24xf32, #tpu.memory_space<vmem>>, vector<16x1x1x24xf32>
    %168 = vector.shape_cast %167 : vector<16x1x1x24xf32> to vector<16x24xf32>
    %169 = vector.shape_cast %166 : vector<16x24xf32> to vector<16x1x1x24xf32>
    tpu.vector_store %arg8[%c0_116, %c1_117, %c5_118, %c0_119], %169 {strides = array<i32>} : memref<16x2x9x24xf32, #tpu.memory_space<vmem>>, vector<16x1x1x24xf32>,
    %c0_120 = arith.constant 0 : index
    %c0_121 = arith.constant 0 : index
    %c11 = arith.constant 11 : index
    %c0_122 = arith.constant 0 : index
    %170 = vector.load %arg1[%c0_120, %c0_121, %c11, %c0_122] : memref<1x8x16x16xf32, #tpu.memory_space<vmem>>, vector<1x8x1x16xf32>
    %171 = vector.shape_cast %170 : vector<1x8x1x16xf32> to vector<8x16xf32>
    %cst_123 = arith.constant dense<0.000000e+00> : vector<16x16xf32>
    %172 = tpu.matmul %2, %171, %cst_123 {dimension_numbers = #tpu.dot_dimension_numbers<[1], [0], [0], [1], [0, 0, 1, 1], [], []>} : vector<16x8xf32>, vector<8x16xf32>, vector<16x16xf32> -> vector<16x16xf32>
    %173 = vector.broadcast %3 : vector<16x1xf32> to vector<16x16xf32>
    %174 = arith.addf %172, %173 : vector<16x16xf32>
    %175 = arith.negf %174 : vector<16x16xf32>
    %176 = math.exp %175 : vector<16x16xf32>
    %cst_124 = arith.constant 1.000000e+00 : f32
    %177 = vector.broadcast %cst_124 : f32 to vector<16x16xf32>
    %178 = arith.addf %177, %176 : vector<16x16xf32>
    %179 = arith.divf %177, %178 : vector<16x16xf32>
    %180 = arith.mulf %174, %179 : vector<16x16xf32>
    %cst_125 = arith.constant dense<0.000000e+00> : vector<16x24xf32>
    %181 = tpu.matmul %180, %4, %cst_125 {dimension_numbers = #tpu.dot_dimension_numbers<[1], [0], [0], [1], [0, 0, 1, 1], [], []>} : vector<16x16xf32>, vector<16x24xf32>, vector<16x24xf32> -> vector<16x24xf32>
    %c0_126 = arith.constant 0 : index
    %c0_127 = arith.constant 0 : index
    %c6_128 = arith.constant 6 : index
    %c0_129 = arith.constant 0 : index
    %182 = vector.load %arg8[%c0_126, %c0_127, %c6_128, %c0_129] : memref<16x2x9x24xf32, #tpu.memory_space<vmem>>, vector<16x1x1x24xf32>
    %183 = vector.shape_cast %182 : vector<16x1x1x24xf32> to vector<16x24xf32>
    %184 = vector.shape_cast %181 : vector<16x24xf32> to vector<16x1x1x24xf32>
    tpu.vector_store %arg8[%c0_126, %c0_127, %c6_128, %c0_129], %184 {strides = array<i32>} : memref<16x2x9x24xf32, #tpu.memory_space<vmem>>, vector<16x1x1x24xf32>,
    %c0_130 = arith.constant 0 : index
    %c0_131 = arith.constant 0 : index
    %c12 = arith.constant 12 : index
    %c0_132 = arith.constant 0 : index
    %185 = vector.load %arg1[%c0_130, %c0_131, %c12, %c0_132] : memref<1x8x16x16xf32, #tpu.memory_space<vmem>>, vector<1x8x1x16xf32>
    %186 = vector.shape_cast %185 : vector<1x8x1x16xf32> to vector<8x16xf32>
    %cst_133 = arith.constant dense<0.000000e+00> : vector<16x16xf32>
    %187 = tpu.matmul %2, %186, %cst_133 {dimension_numbers = #tpu.dot_dimension_numbers<[1], [0], [0], [1], [0, 0, 1, 1], [], []>} : vector<16x8xf32>, vector<8x16xf32>, vector<16x16xf32> -> vector<16x16xf32>
    %188 = vector.broadcast %3 : vector<16x1xf32> to vector<16x16xf32>
    %189 = arith.addf %187, %188 : vector<16x16xf32>
    %190 = arith.negf %189 : vector<16x16xf32>
    %191 = math.exp %190 : vector<16x16xf32>
    %cst_134 = arith.constant 1.000000e+00 : f32
    %192 = vector.broadcast %cst_134 : f32 to vector<16x16xf32>
    %193 = arith.addf %192, %191 : vector<16x16xf32>
    %194 = arith.divf %192, %193 : vector<16x16xf32>
    %195 = arith.mulf %189, %194 : vector<16x16xf32>
    %cst_135 = arith.constant dense<0.000000e+00> : vector<16x24xf32>
    %196 = tpu.matmul %195, %4, %cst_135 {dimension_numbers = #tpu.dot_dimension_numbers<[1], [0], [0], [1], [0, 0, 1, 1], [], []>} : vector<16x16xf32>, vector<16x24xf32>, vector<16x24xf32> -> vector<16x24xf32>
    %c0_136 = arith.constant 0 : index
    %c1_137 = arith.constant 1 : index
    %c6_138 = arith.constant 6 : index
    %c0_139 = arith.constant 0 : index
    %197 = vector.load %arg8[%c0_136, %c1_137, %c6_138, %c0_139] : memref<16x2x9x24xf32, #tpu.memory_space<vmem>>, vector<16x1x1x24xf32>
    %198 = vector.shape_cast %197 : vector<16x1x1x24xf32> to vector<16x24xf32>
    %199 = vector.shape_cast %196 : vector<16x24xf32> to vector<16x1x1x24xf32>
    tpu.vector_store %arg8[%c0_136, %c1_137, %c6_138, %c0_139], %199 {strides = array<i32>} : memref<16x2x9x24xf32, #tpu.memory_space<vmem>>, vector<16x1x1x24xf32>,
    %c0_140 = arith.constant 0 : index
    %c0_141 = arith.constant 0 : index
    %c13 = arith.constant 13 : index
    %c0_142 = arith.constant 0 : index
    %200 = vector.load %arg1[%c0_140, %c0_141, %c13, %c0_142] : memref<1x8x16x16xf32, #tpu.memory_space<vmem>>, vector<1x8x1x16xf32>
    %201 = vector.shape_cast %200 : vector<1x8x1x16xf32> to vector<8x16xf32>
    %cst_143 = arith.constant dense<0.000000e+00> : vector<16x16xf32>
    %202 = tpu.matmul %2, %201, %cst_143 {dimension_numbers = #tpu.dot_dimension_numbers<[1], [0], [0], [1], [0, 0, 1, 1], [], []>} : vector<16x8xf32>, vector<8x16xf32>, vector<16x16xf32> -> vector<16x16xf32>
    %203 = vector.broadcast %3 : vector<16x1xf32> to vector<16x16xf32>
    %204 = arith.addf %202, %203 : vector<16x16xf32>
    %205 = arith.negf %204 : vector<16x16xf32>
    %206 = math.exp %205 : vector<16x16xf32>
    %cst_144 = arith.constant 1.000000e+00 : f32
    %207 = vector.broadcast %cst_144 : f32 to vector<16x16xf32>
    %208 = arith.addf %207, %206 : vector<16x16xf32>
    %209 = arith.divf %207, %208 : vector<16x16xf32>
    %210 = arith.mulf %204, %209 : vector<16x16xf32>
    %cst_145 = arith.constant dense<0.000000e+00> : vector<16x24xf32>
    %211 = tpu.matmul %210, %4, %cst_145 {dimension_numbers = #tpu.dot_dimension_numbers<[1], [0], [0], [1], [0, 0, 1, 1], [], []>} : vector<16x16xf32>, vector<16x24xf32>, vector<16x24xf32> -> vector<16x24xf32>
    %c0_146 = arith.constant 0 : index
    %c0_147 = arith.constant 0 : index
    %c7_148 = arith.constant 7 : index
    %c0_149 = arith.constant 0 : index
    %212 = vector.load %arg8[%c0_146, %c0_147, %c7_148, %c0_149] : memref<16x2x9x24xf32, #tpu.memory_space<vmem>>, vector<16x1x1x24xf32>
    %213 = vector.shape_cast %212 : vector<16x1x1x24xf32> to vector<16x24xf32>
    %214 = vector.shape_cast %211 : vector<16x24xf32> to vector<16x1x1x24xf32>
    tpu.vector_store %arg8[%c0_146, %c0_147, %c7_148, %c0_149], %214 {strides = array<i32>} : memref<16x2x9x24xf32, #tpu.memory_space<vmem>>, vector<16x1x1x24xf32>,
    %c0_150 = arith.constant 0 : index
    %c0_151 = arith.constant 0 : index
    %c14 = arith.constant 14 : index
    %c0_152 = arith.constant 0 : index
    %215 = vector.load %arg1[%c0_150, %c0_151, %c14, %c0_152] : memref<1x8x16x16xf32, #tpu.memory_space<vmem>>, vector<1x8x1x16xf32>
    %216 = vector.shape_cast %215 : vector<1x8x1x16xf32> to vector<8x16xf32>
    %cst_153 = arith.constant dense<0.000000e+00> : vector<16x16xf32>
    %217 = tpu.matmul %2, %216, %cst_153 {dimension_numbers = #tpu.dot_dimension_numbers<[1], [0], [0], [1], [0, 0, 1, 1], [], []>} : vector<16x8xf32>, vector<8x16xf32>, vector<16x16xf32> -> vector<16x16xf32>
    %218 = vector.broadcast %3 : vector<16x1xf32> to vector<16x16xf32>
    %219 = arith.addf %217, %218 : vector<16x16xf32>
    %220 = arith.negf %219 : vector<16x16xf32>
    %221 = math.exp %220 : vector<16x16xf32>
    %cst_154 = arith.constant 1.000000e+00 : f32
    %222 = vector.broadcast %cst_154 : f32 to vector<16x16xf32>
    %223 = arith.addf %222, %221 : vector<16x16xf32>
    %224 = arith.divf %222, %223 : vector<16x16xf32>
    %225 = arith.mulf %219, %224 : vector<16x16xf32>
    %cst_155 = arith.constant dense<0.000000e+00> : vector<16x24xf32>
    %226 = tpu.matmul %225, %4, %cst_155 {dimension_numbers = #tpu.dot_dimension_numbers<[1], [0], [0], [1], [0, 0, 1, 1], [], []>} : vector<16x16xf32>, vector<16x24xf32>, vector<16x24xf32> -> vector<16x24xf32>
    %c0_156 = arith.constant 0 : index
    %c1_157 = arith.constant 1 : index
    %c7_158 = arith.constant 7 : index
    %c0_159 = arith.constant 0 : index
    %227 = vector.load %arg8[%c0_156, %c1_157, %c7_158, %c0_159] : memref<16x2x9x24xf32, #tpu.memory_space<vmem>>, vector<16x1x1x24xf32>
    %228 = vector.shape_cast %227 : vector<16x1x1x24xf32> to vector<16x24xf32>
    %229 = vector.shape_cast %226 : vector<16x24xf32> to vector<16x1x1x24xf32>
    tpu.vector_store %arg8[%c0_156, %c1_157, %c7_158, %c0_159], %229 {strides = array<i32>} : memref<16x2x9x24xf32, #tpu.memory_space<vmem>>, vector<16x1x1x24xf32>,
    %c0_160 = arith.constant 0 : index
    %c0_161 = arith.constant 0 : index
    %c15 = arith.constant 15 : index
    %c0_162 = arith.constant 0 : index
    %230 = vector.load %arg1[%c0_160, %c0_161, %c15, %c0_162] : memref<1x8x16x16xf32, #tpu.memory_space<vmem>>, vector<1x8x1x16xf32>
    %231 = vector.shape_cast %230 : vector<1x8x1x16xf32> to vector<8x16xf32>
    %cst_163 = arith.constant dense<0.000000e+00> : vector<16x16xf32>
    %232 = tpu.matmul %2, %231, %cst_163 {dimension_numbers = #tpu.dot_dimension_numbers<[1], [0], [0], [1], [0, 0, 1, 1], [], []>} : vector<16x8xf32>, vector<8x16xf32>, vector<16x16xf32> -> vector<16x16xf32>
    %233 = vector.broadcast %3 : vector<16x1xf32> to vector<16x16xf32>
    %234 = arith.addf %232, %233 : vector<16x16xf32>
    %235 = arith.negf %234 : vector<16x16xf32>
    %236 = math.exp %235 : vector<16x16xf32>
    %cst_164 = arith.constant 1.000000e+00 : f32
    %237 = vector.broadcast %cst_164 : f32 to vector<16x16xf32>
    %238 = arith.addf %237, %236 : vector<16x16xf32>
    %239 = arith.divf %237, %238 : vector<16x16xf32>
    %240 = arith.mulf %234, %239 : vector<16x16xf32>
    %cst_165 = arith.constant dense<0.000000e+00> : vector<16x24xf32>
    %241 = tpu.matmul %240, %4, %cst_165 {dimension_numbers = #tpu.dot_dimension_numbers<[1], [0], [0], [1], [0, 0, 1, 1], [], []>} : vector<16x16xf32>, vector<16x24xf32>, vector<16x24xf32> -> vector<16x24xf32>
    %c0_166 = arith.constant 0 : index
    %c0_167 = arith.constant 0 : index
    %c8_168 = arith.constant 8 : index
    %c0_169 = arith.constant 0 : index
    %242 = vector.load %arg8[%c0_166, %c0_167, %c8_168, %c0_169] : memref<16x2x9x24xf32, #tpu.memory_space<vmem>>, vector<16x1x1x24xf32>
    %243 = vector.shape_cast %242 : vector<16x1x1x24xf32> to vector<16x24xf32>
    %244 = vector.shape_cast %241 : vector<16x24xf32> to vector<16x1x1x24xf32>
    tpu.vector_store %arg8[%c0_166, %c0_167, %c8_168, %c0_169], %244 {strides = array<i32>} : memref<16x2x9x24xf32, #tpu.memory_space<vmem>>, vector<16x1x1x24xf32>,
    %c0_170 = arith.constant 0 : index
    %c0_171 = arith.constant 0 : index
    %c0_172 = arith.constant 0 : index
    %245 = vector.load %arg5[%c0_170, %c0_171, %c0_172] : memref<16x1x9xf32, #tpu.memory_space<vmem>>, vector<16x1x9xf32>
    %cst_173 = arith.constant 0.000000e+00 : f32
    %246 = vector.broadcast %cst_173 : f32 to vector<16x8x8xf32>
    %c0_174 = arith.constant 0 : index
    %c0_175 = arith.constant 0 : index
    %c0_176 = arith.constant 0 : index
    %c0_177 = arith.constant 0 : index
    %247 = vector.load %arg8[%c0_174, %c0_175, %c0_176, %c0_177] : memref<16x2x9x24xf32, #tpu.memory_space<vmem>>, vector<16x1x8x24xf32>
    %248 = vector.shape_cast %247 : vector<16x1x8x24xf32> to vector<16x8x24xf32>
    %249 = vector.extract_strided_slice %248 {offsets = [0, 0, 0], sizes = [16, 8, 8], strides = [1, 1, 1]} : vector<16x8x24xf32> to vector<16x8x8xf32>
    %250 = vector.extract_strided_slice %245 {offsets = [0, 0, 0], sizes = [16, 1, 1], strides = [1, 1, 1]} : vector<16x1x9xf32> to vector<16x1x1xf32>
    %251 = vector.broadcast %250 : vector<16x1x1xf32> to vector<16x8x8xf32>
    %252 = arith.mulf %251, %249 : vector<16x8x8xf32>
    %253 = arith.addf %246, %252 : vector<16x8x8xf32>
    %254 = vector.extract_strided_slice %248 {offsets = [0, 0, 8], sizes = [16, 8, 8], strides = [1, 1, 1]} : vector<16x8x24xf32> to vector<16x8x8xf32>
    %255 = vector.extract_strided_slice %245 {offsets = [0, 0, 1], sizes = [16, 1, 1], strides = [1, 1, 1]} : vector<16x1x9xf32> to vector<16x1x1xf32>
    %256 = vector.broadcast %255 : vector<16x1x1xf32> to vector<16x8x8xf32>
    %257 = arith.mulf %256, %254 : vector<16x8x8xf32>
    %258 = arith.addf %253, %257 : vector<16x8x8xf32>
    %259 = vector.extract_strided_slice %248 {offsets = [0, 0, 16], sizes = [16, 8, 8], strides = [1, 1, 1]} : vector<16x8x24xf32> to vector<16x8x8xf32>
    %260 = vector.extract_strided_slice %245 {offsets = [0, 0, 2], sizes = [16, 1, 1], strides = [1, 1, 1]} : vector<16x1x9xf32> to vector<16x1x1xf32>
    %261 = vector.broadcast %260 : vector<16x1x1xf32> to vector<16x8x8xf32>
    %262 = arith.mulf %261, %259 : vector<16x8x8xf32>
    %263 = arith.addf %258, %262 : vector<16x8x8xf32>
    %c0_178 = arith.constant 0 : index
    %c1_179 = arith.constant 1 : index
    %c0_180 = arith.constant 0 : index
    %c0_181 = arith.constant 0 : index
    %264 = vector.load %arg8[%c0_178, %c1_179, %c0_180, %c0_181] : memref<16x2x9x24xf32, #tpu.memory_space<vmem>>, vector<16x1x8x24xf32>
    %265 = vector.shape_cast %264 : vector<16x1x8x24xf32> to vector<16x8x24xf32>
    %266 = vector.extract_strided_slice %265 {offsets = [0, 0, 0], sizes = [16, 8, 8], strides = [1, 1, 1]} : vector<16x8x24xf32> to vector<16x8x8xf32>
    %267 = vector.extract_strided_slice %245 {offsets = [0, 0, 3], sizes = [16, 1, 1], strides = [1, 1, 1]} : vector<16x1x9xf32> to vector<16x1x1xf32>
    %268 = vector.broadcast %267 : vector<16x1x1xf32> to vector<16x8x8xf32>
    %269 = arith.mulf %268, %266 : vector<16x8x8xf32>
    %270 = arith.addf %263, %269 : vector<16x8x8xf32>
    %271 = vector.extract_strided_slice %265 {offsets = [0, 0, 8], sizes = [16, 8, 8], strides = [1, 1, 1]} : vector<16x8x24xf32> to vector<16x8x8xf32>
    %272 = vector.extract_strided_slice %245 {offsets = [0, 0, 4], sizes = [16, 1, 1], strides = [1, 1, 1]} : vector<16x1x9xf32> to vector<16x1x1xf32>
    %273 = vector.broadcast %272 : vector<16x1x1xf32> to vector<16x8x8xf32>
    %274 = arith.mulf %273, %271 : vector<16x8x8xf32>
    %275 = arith.addf %270, %274 : vector<16x8x8xf32>
    %276 = vector.extract_strided_slice %265 {offsets = [0, 0, 16], sizes = [16, 8, 8], strides = [1, 1, 1]} : vector<16x8x24xf32> to vector<16x8x8xf32>
    %277 = vector.extract_strided_slice %245 {offsets = [0, 0, 5], sizes = [16, 1, 1], strides = [1, 1, 1]} : vector<16x1x9xf32> to vector<16x1x1xf32>
    %278 = vector.broadcast %277 : vector<16x1x1xf32> to vector<16x8x8xf32>
    %279 = arith.mulf %278, %276 : vector<16x8x8xf32>
    %280 = arith.addf %275, %279 : vector<16x8x8xf32>
    %c0_182 = arith.constant 0 : index
    %c0_183 = arith.constant 0 : index
    %c1_184 = arith.constant 1 : index
    %c0_185 = arith.constant 0 : index
    %281 = vector.load %arg8[%c0_182, %c0_183, %c1_184, %c0_185] : memref<16x2x9x24xf32, #tpu.memory_space<vmem>>, vector<16x1x8x24xf32>
    %282 = vector.shape_cast %281 : vector<16x1x8x24xf32> to vector<16x8x24xf32>
    %283 = vector.extract_strided_slice %282 {offsets = [0, 0, 0], sizes = [16, 8, 8], strides = [1, 1, 1]} : vector<16x8x24xf32> to vector<16x8x8xf32>
    %284 = vector.extract_strided_slice %245 {offsets = [0, 0, 6], sizes = [16, 1, 1], strides = [1, 1, 1]} : vector<16x1x9xf32> to vector<16x1x1xf32>
    %285 = vector.broadcast %284 : vector<16x1x1xf32> to vector<16x8x8xf32>
    %286 = arith.mulf %285, %283 : vector<16x8x8xf32>
    %287 = arith.addf %280, %286 : vector<16x8x8xf32>
    %288 = vector.extract_strided_slice %282 {offsets = [0, 0, 8], sizes = [16, 8, 8], strides = [1, 1, 1]} : vector<16x8x24xf32> to vector<16x8x8xf32>
    %289 = vector.extract_strided_slice %245 {offsets = [0, 0, 7], sizes = [16, 1, 1], strides = [1, 1, 1]} : vector<16x1x9xf32> to vector<16x1x1xf32>
    %290 = vector.broadcast %289 : vector<16x1x1xf32> to vector<16x8x8xf32>
    %291 = arith.mulf %290, %288 : vector<16x8x8xf32>
    %292 = arith.addf %287, %291 : vector<16x8x8xf32>
    %293 = vector.extract_strided_slice %282 {offsets = [0, 0, 16], sizes = [16, 8, 8], strides = [1, 1, 1]} : vector<16x8x24xf32> to vector<16x8x8xf32>
    %294 = vector.extract_strided_slice %245 {offsets = [0, 0, 8], sizes = [16, 1, 1], strides = [1, 1, 1]} : vector<16x1x9xf32> to vector<16x1x1xf32>
    %295 = vector.broadcast %294 : vector<16x1x1xf32> to vector<16x8x8xf32>
    %296 = arith.mulf %295, %293 : vector<16x8x8xf32>
    %297 = arith.addf %292, %296 : vector<16x8x8xf32>
    %c0_186 = arith.constant 0 : index
    %c0_187 = arith.constant 0 : index
    %c0_188 = arith.constant 0 : index
    %298 = vector.load %arg6[%c0_186, %c0_187, %c0_188] : memref<16x1x1xf32, #tpu.memory_space<vmem>>, vector<16x1x1xf32>
    %299 = vector.broadcast %298 : vector<16x1x1xf32> to vector<16x8x8xf32>
    %300 = arith.addf %297, %299 : vector<16x8x8xf32>
    %c0_189 = arith.constant 0 : index
    %c0_190 = arith.constant 0 : index
    %c0_191 = arith.constant 0 : index
    %c0_192 = arith.constant 0 : index
    %301 = vector.load %arg7[%c0_189, %c0_190, %c0_191, %c0_192] : memref<1x16x8x8xf32, #tpu.memory_space<vmem>>, vector<1x16x8x8xf32>
    %302 = vector.shape_cast %301 : vector<1x16x8x8xf32> to vector<16x8x8xf32>
    %303 = vector.shape_cast %300 : vector<16x8x8xf32> to vector<1x16x8x8xf32>
    tpu.vector_store %arg7[%c0_189, %c0_190, %c0_191, %c0_192], %303 {strides = array<i32>} : memref<1x16x8x8xf32, #tpu.memory_space<vmem>>, vector<1x16x8x8xf32>,
    return
  }
  func.func @transform_0(%arg0: i32) -> (i32, i32, i32, i32) {
    %c0_i32 = arith.constant 0 : i32
    %c0_i32_0 = arith.constant 0 : i32
    %c0_i32_1 = arith.constant 0 : i32
    %c0_i32_2 = arith.constant 0 : i32
    return %arg0, %c0_i32, %c0_i32_0, %c0_i32_1 : i32, i32, i32, i32
  }
  func.func @transform_1(%arg0: i32) -> (i32, i32) {
    %c0_i32 = arith.constant 0 : i32
    %c0_i32_0 = arith.constant 0 : i32
    %c0_i32_1 = arith.constant 0 : i32
    return %c0_i32, %c0_i32_0 : i32, i32
  }
  func.func @transform_2(%arg0: i32) -> (i32, i32) {
    %c0_i32 = arith.constant 0 : i32
    %c0_i32_0 = arith.constant 0 : i32
    %c0_i32_1 = arith.constant 0 : i32
    return %c0_i32, %c0_i32_0 : i32, i32
  }
  func.func @transform_3(%arg0: i32) -> (i32, i32) {
    %c0_i32 = arith.constant 0 : i32
    %c0_i32_0 = arith.constant 0 : i32
    %c0_i32_1 = arith.constant 0 : i32
    return %c0_i32, %c0_i32_0 : i32, i32
  }
  func.func @transform_4(%arg0: i32) -> (i32, i32, i32) {
    %c0_i32 = arith.constant 0 : i32
    %c0_i32_0 = arith.constant 0 : i32
    %c0_i32_1 = arith.constant 0 : i32
    %c0_i32_2 = arith.constant 0 : i32
    return %c0_i32, %c0_i32_0, %c0_i32_1 : i32, i32, i32
  }
  func.func @transform_5(%arg0: i32) -> (i32, i32, i32) {
    %c0_i32 = arith.constant 0 : i32
    %c0_i32_0 = arith.constant 0 : i32
    %c0_i32_1 = arith.constant 0 : i32
    %c0_i32_2 = arith.constant 0 : i32
    return %c0_i32, %c0_i32_0, %c0_i32_1 : i32, i32, i32
  }
  func.func @transform_6(%arg0: i32) -> (i32, i32, i32, i32) {
    %c0_i32 = arith.constant 0 : i32
    %c0_i32_0 = arith.constant 0 : i32
    %c0_i32_1 = arith.constant 0 : i32
    %c0_i32_2 = arith.constant 0 : i32
    return %arg0, %c0_i32, %c0_i32_0, %c0_i32_1 : i32, i32, i32, i32
  }
}

</mosaic_0001>

<bundles_post_ra>
// kernel: tpu_custom_call.1
= control target key start
LH: loop header
LB: loop body
LE: loop exit
PB: predicated region body
PF: predicated region fallthrough
CT: control target
= control target key end

     0   :  { %11 = vsyncpa [#allocation4], 0  ;;  %s10786_s0 = inlined_call_operand.hbm [shape: f32[2,8,16,16], index: 0, kind: input, shape index: {}]   ;;  %s10787_s1 = inlined_call_operand.vmem [shape: f32[16,8], index: 1, kind: input, shape index: {}]   ;;  %s10788_s2 = inlined_call_operand.vmem [shape: f32[16,1], index: 2, kind: input, shape index: {}]   ;;  %s10789_s3 = inlined_call_operand.vmem [shape: f32[16,24], index: 3, kind: input, shape index: {}]   ;;  %s10790_s4 = inlined_call_operand.vmem [shape: f32[16,1,9], index: 4, kind: input, shape index: {}]   ;;  %s10791_s5 = inlined_call_operand.vmem [shape: f32[16,1,1], index: 5, kind: input, shape index: {}]   ;;  %s10792_s6 = inlined_call_operand.vmem [shape: f32[2,16,8,8], index: 6, kind: output, shape index: {}]  }
   0x1   :  { %13 = vsyncpa [#allocation4 + $0x1], 0  ;;  %s8194_s21 = smov 0   ;;  %s8196_s22 = smov 0  }
   0x2   :  { %s8198_s23 = smov 0   ;;  %s8200_s24 = smov 0  }
   0x3 LB: > { %s8213_s25 = sadd.s32 4294967295, %s8141_s24   ;;  %s8216_s26 = sadd.s32 1, %s8141_s24   ;;  %s8141_s24 = sphi %s8200_s24, %s11017_s24   ;;  %s8137_s23 = sphi %s8198_s23, %s11016_s23   ;;  %s8133_s22 = sphi %s8196_s22, %s11015_s22   ;;  %s8129_s21 = sphi %s8194_s21, %s11014_s21  }
   0x4   : > { %s23_s27 = ssub.s32 %s8141_s24, %s8216_s26  ;;  %s26_s28 = sadd.s32 1, %s8137_s23 }
   0x5   : > { %p24_p0 = scmp.eq.s32.totalorder %s23_s27, 0  ;;  %p33_p1 = scmp.ne.s32.totalorder %s8137_s23, %s8133_s22 }
   0x6   : > { %p34_p2 = scmp.eq.s32.totalorder %s8141_s24, 0  ;;  %p39_p3 = scmp.ne.s32.totalorder %s8133_s22, %s8129_s21 }
   0x7   : > { %s8226_s29 = scalar_select %p24_p0, %s8137_s23, %s26_s28  }
   0x8   : > { %p35_p4 = por %p34_p2, %p33_p1  ;;  %p40_p5 = scmp.eq.s32.totalorder %s8213_s25, 0 }
   0x9   : > { %p7865_p6 = scmp.lt.s32.totalorder %s8141_s24, 2  ;;  %s209_s7 = sand.u32 1, %s8137_s23  }
   0xa   : > { %p8230_p7 = por %p40_p5, %p39_p3  ;;  %s7352_s8 = sshll.u32 %s209_s7, 7 }
   0xb   : > { %s7489_s9 = sshll.u32 %s8141_s24, 11  ;;  %s213_s13 = scalar_lea.vmem [#allocation3], %s7352_s8 }
   0xc   : > { %s8239_s12 = scalar_lea.hbm %s10786_s0, %s7489_s9  ;;  %s220_s14 = sshll.u32 %s213_s13, 4  ;;  %s8241_s14 = int_to_ptr.vmem [resolvable:$true] %s220_s14 }
   0xd   : > { %p8243_p8 = pnand %p7865_p6, %p35_p4  ;;  %s8248_s16 = scalar_lea.sflag [#allocation4], %s209_s7 }
   0xe   : > { %s8077_s17 = scalar_lea.hbm %s8239_s12, 2048  ;;  %s8082_s20 = scalar_lea.hbm %s10786_s0, 4096 }
   0xf   : > { %p8078_p10 = scmp.ne.s32.totalorder %s8239_s12, %s8077_s17  ;;  %p8079_p11 = pneg %p8243_p8 }
  0x10   : > { %p8083_p0 = scmp.lt.u32.totalorder %s8239_s12, %s10786_s0  ;;  %p8084_p1 = scmp.lt.u32.totalorder %s8082_s20, %s8077_s17 }
  0x11   : > { %p8080_p12 = pnand %p8079_p11, %p8078_p10  ;;  %p8086_p3 = scmp.lt.u32.totalorder %s8077_s17, %s8239_s12 }
  0x12   : > { %p8085_p2 = por %p8084_p1, %p8083_p0 }
  0x13   : > { %p8081_p13 = pneg %p8080_p12 }
  0x14   : > { %p8087_p4 = por %p8086_p3, %p8085_p2 }
  0x16   : > { %p8088_p5 = pnand %p8087_p4, %p8081_p13 }
  0x18   : > { %8091 = shalt.err (!%p8088_p5)
}
  0x19   : > { %s8092_s28 = scalar_lea.vmem %s8241_s14, 2048  ;;  %s8143_s7 = smov [#allocation3]  }
  0x1a   : > { %p8093_p6 = scmp.ne.s32.totalorder %s8241_s14, %s8092_s28  ;;  %s8097_s8 = sshll.u32 %s8143_s7, 4  ;;  %s8098_s8 = int_to_ptr.vmem [resolvable:$false] %s8097_s8 }
  0x1b   : > { %s8099_s9 = scalar_lea.vmem %s8098_s8, 4096  ;;  %p8100_p9 = scmp.lt.s32.totalorder %s8241_s14, %s8098_s8 }
  0x1c   : > { %p8095_p10 = pnand %p8093_p6, %p8079_p11  ;;  %p8101_p0 = scmp.lt.s32.totalorder %s8099_s9, %s8092_s28 }
  0x1e   : > { %p8096_p12 = pneg %p8095_p10  ;;  %p8102_p1 = por %p8101_p0, %p8100_p9 }
  0x20   : > { %p8103_p2 = pnand %p8102_p1, %p8096_p12 }
  0x22   : > { %8106 = shalt.err (!%p8103_p2)
}
  0x23   : > { %s8144_s10 = smov 128   ;;  %s8145_s11 = smov 8  }
  0x24   : > { %7864 = dma.hbm_to_vmem [thread:$0]  (!%p8243_p8), %s8239_s12, 2048, %s8241_s14, %s8248_s16, %s8144_s10, %s8144_s10, %s8145_s11  }
  0x25   : > { %p228_p11 = scmp.lt.s32.totalorder %s8141_s24, 3  ;;  %p10805_p13 = scmp.ge.s32.totalorder %s8141_s24, 1 }
  0x27   : > { %p229_p3 = pnand %p10805_p13, %p228_p11 }
  0x29   : > { %232 = sbr.rel (%p229_p3) target bundleno = 986 (0x3da), region = 44 }
  0x30   : > { %s234_s13 = sand.u32 1, %s8133_s22  }
  0x31   : > { %s7356_s17 = sshll.u32 %s234_s13, 7  ;;  %s235_s18 = scalar_lea.sflag [#allocation4], %s234_s13 }
  0x32   : > { %s8280_s19 = scalar_lea.vmem [#allocation3], %s7356_s17 }
  0x33   : > { %8124 = dma.done.wait (%p8230_p7), %s235_s18, 2048  }
  0x34   : > { %8126 = vsyncadd (%p8230_p7), %s235_s18, 4294965248  ;;  %vm274_vm0 = vcmask 188416   ;;  %v10796_v0 = vmov 0.0   ;;  %v10793_v1 = vmov 0   ;;  %vm371_vm1 = vcmask 1041409   ;;  %v8331_v16 = vld [vmem:[%s10787_s1] sm:$0xff] }
  0x35   : > { %275 = vst.msk [vmem:[#allocation2 + $0x8] sm:$0x1] %vm274_vm0, %v10796_v0  ;;  %279 = vst.msk [vmem:[#allocation2 + $0x28] sm:$0x1] %vm274_vm0, %v10796_v0  ;;  %7913 = vset.pattern.permute.xlu0 %v10793_v1  ;;  %7914 = vset.pattern.permute.xlu1 %v10793_v1  ;;  %vm374_vm2 = vcmask 1042434   ;;  %vm377_vm3 = vcmask 1043459  }
  0x36   : > { %283 = vst.msk [vmem:[#allocation2 + $0x48] sm:$0x1] %vm274_vm0, %v10796_v0  ;;  %287 = vst.msk [vmem:[#allocation2 + $0x68] sm:$0x1] %vm274_vm0, %v10796_v0  ;;  %vm380_vm4 = vcmask 1044484   ;;  %vm383_vm5 = vcmask 1045509  }
  0x37   : > { %291 = vst.msk [vmem:[#allocation2 + $0x88] sm:$0x1] %vm274_vm0, %v10796_v0  ;;  %295 = vst.msk [vmem:[#allocation2 + $0xa8] sm:$0x1] %vm274_vm0, %v10796_v0  ;;  %vm386_vm6 = vcmask 1046534   ;;  %vm389_vm7 = vcmask 1047559  }
  0x38   : > { %299 = vst.msk [vmem:[#allocation2 + $0xc8] sm:$0x1] %vm274_vm0, %v10796_v0  ;;  %303 = vst.msk [vmem:[#allocation2 + $0xe8] sm:$0x1] %vm274_vm0, %v10796_v0  ;;  %vm392_vm8 = vcmask 64512   ;;  %v340_v21 = vld [vmem:[%s10788_s2] sm:$0xff] }
  0x39   : > { %307 = vst.msk [vmem:[#allocation2 + $0x108] sm:$0x1] %vm274_vm0, %v10796_v0  ;;  %311 = vst.msk [vmem:[#allocation2 + $0x128] sm:$0x1] %vm274_vm0, %v10796_v0  ;;  %v344_v2 = vld [vmem:[%s8280_s19] sm:$0x1]  ;;  %7605 = vmatprep.mubr.msk.f32.mxu0 %vm392_vm8, %v8331_v16  ;;  %354 = vperm.xlu0 %7913, %v340_v21  }
  0x3a   : > { %315 = vst.msk [vmem:[#allocation2 + $0x148] sm:$0x1] %vm274_vm0, %v10796_v0  ;;  %319 = vst.msk [vmem:[#allocation2 + $0x168] sm:$0x1] %vm274_vm0, %v10796_v0  ;;  %v345_v3 = vld [vmem:[%s8280_s19 + $0x10] sm:$0x1] }
  0x3b   : > { %323 = vst.msk [vmem:[#allocation2 + $0x188] sm:$0x1] %vm274_vm0, %v10796_v0  ;;  %327 = vst.msk [vmem:[#allocation2 + $0x1a8] sm:$0x1] %vm274_vm0, %v10796_v0  ;;  %v346_v4 = vld [vmem:[%s8280_s19 + $0x20] sm:$0x1] }
  0x3c   : > { %331 = vst.msk [vmem:[#allocation2 + $0x1c8] sm:$0x1] %vm274_vm0, %v10796_v0  ;;  %335 = vst.msk [vmem:[#allocation2 + $0x1e8] sm:$0x1] %vm274_vm0, %v10796_v0  ;;  %v347_v5 = vld [vmem:[%s8280_s19 + $0x30] sm:$0x1] }
  0x3d   : > { %v348_v6 = vld [vmem:[%s8280_s19 + $0x40] sm:$0x1]  ;;  %v349_v7 = vld [vmem:[%s8280_s19 + $0x50] sm:$0x1]  ;;  %v370_v10 = vrot.slane %v345_v3, 7  ;;  %v373_v11 = vrot.slane %v346_v4, 6 }
  0x3e   : > { %v350_v8 = vld [vmem:[%s8280_s19 + $0x60] sm:$0x1]  ;;  %v351_v9 = vld [vmem:[%s8280_s19 + $0x70] sm:$0x1]  ;;  %v376_v12 = vrot.slane %v347_v5, 5  ;;  %v379_v13 = vrot.slane %v348_v6, 4 }
  0x3f   : > { %v382_v14 = vrot.slane %v349_v7, 3  ;;  %v385_v15 = vrot.slane %v350_v8, 2  ;;  %v372_v17 = vsel %vm371_vm1, %v370_v10, %v344_v2  ;;  %v388_v18 = vrot.slane %v351_v9, 1  ;;  %v703_v19 = vld [vmem:[%s8280_s19 + $0x1] sm:$0x1]  ;;  %v341_v35 = vld [vmem:[%s10788_s2 + $0x8] sm:$0xff] }
  0x40   : > { %v704_v20 = vld [vmem:[%s8280_s19 + $0x11] sm:$0x1]  ;;  %v375_v22 = vsel %vm374_vm2, %v373_v11, %v372_v17  ;;  %v705_v23 = vld [vmem:[%s8280_s19 + $0x21] sm:$0x1]  ;;  %v1036_v34 = vld [vmem:[%s8280_s19 + $0x2] sm:$0x1]  ;;  %359 = vperm.xlu0 %7913, %v341_v35  }
  0x41   : > { %v706_v24 = vld [vmem:[%s8280_s19 + $0x31] sm:$0x1]  ;;  %v707_v25 = vld [vmem:[%s8280_s19 + $0x41] sm:$0x1]  ;;  %v378_v26 = vsel %vm377_vm3, %v376_v12, %v375_v22  ;;  %v719_v31 = vrot.slane %v704_v20, 7  ;;  %v721_v32 = vrot.slane %v705_v23, 6 }
  0x42   : > { %v708_v27 = vld [vmem:[%s8280_s19 + $0x51] sm:$0x1]  ;;  %v709_v28 = vld [vmem:[%s8280_s19 + $0x61] sm:$0x1]  ;;  %v381_v30 = vsel %vm380_vm4, %v379_v13, %v378_v26  ;;  %v723_v33 = vrot.slane %v706_v24, 5  ;;  %v8358_v37 = vld [vmem:[%s10787_s1 + $0x8] sm:$0xff] }
  0x43   : > { %v710_v29 = vld [vmem:[%s8280_s19 + $0x71] sm:$0x1]  ;;  %v384_v36 = vsel %vm383_vm5, %v382_v14, %v381_v30  ;;  %v725_v38 = vrot.slane %v707_v25, 4  ;;  %v727_v39 = vrot.slane %v708_v27, 3  ;;  %v729_v40 = vrot.slane %v709_v28, 2  ;;  %s8157_s8 = smov 112  }
  0x44   : > { %v1037_v41 = vld [vmem:[%s8280_s19 + $0x12] sm:$0x1]  ;;  %v387_v42 = vsel %vm386_vm6, %v385_v15, %v384_v36  ;;  %v720_v43 = vsel %vm371_vm1, %v719_v31, %v703_v19  ;;  %v731_v44 = vrot.slane %v710_v29, 1  ;;  %v1038_v45 = vld [vmem:[%s8280_s19 + $0x22] sm:$0x1]  ;;  %v8148_v8 = vmov 1  }
  0x45   : > { %v1039_v46 = vld [vmem:[%s8280_s19 + $0x32] sm:$0x1]  ;;  %v1052_v47 = vrot.slane %v1037_v41, 7  ;;  %v390_v48 = vsel %vm389_vm7, %v388_v18, %v387_v42  ;;  %v722_v49 = vsel %vm374_vm2, %v721_v32, %v720_v43  ;;  %v1040_v50 = vld [vmem:[%s8280_s19 + $0x42] sm:$0x1]  ;;  %v1054_v56 = vrot.slane %v1038_v45, 6  ;;  %7915 = vset.pattern.permute.xlu0 %v8148_v8 }
  0x46   : > { %v1041_v51 = vld [vmem:[%s8280_s19 + $0x52] sm:$0x1]  ;;  %v1042_v52 = vld [vmem:[%s8280_s19 + $0x62] sm:$0x1]  ;;  %7603 = vmatprep.subr.mxu0 %v390_v48  ;;  %v724_v53 = vsel %vm377_vm3, %v723_v33, %v722_v49  ;;  %v1056_v57 = vrot.slane %v1039_v46, 5  ;;  %v1058_v60 = vrot.slane %v1040_v50, 4 }
  0x47   : > { %v1043_v54 = vld [vmem:[%s8280_s19 + $0x72] sm:$0x1]  ;;  %v1053_v55 = vsel %vm371_vm1, %v1052_v47, %v1036_v34  ;;  %v1369_v58 = vld [vmem:[%s8280_s19 + $0x3] sm:$0x1]  ;;  %7604 = vmatpush3.msra.mxu0 %v390_v48  ;;  %v726_v59 = vsel %vm380_vm4, %v725_v38, %v724_v53  ;;  %v1060_v61 = vrot.slane %v1041_v51, 3  ;;  %v1062_v62 = vrot.slane %v1042_v52, 2 }
  0x48   : > { %v1370_v63 = vld [vmem:[%s8280_s19 + $0x13] sm:$0x1]  ;;  %7606 = vmatmul.mubr.msk.f32.vlgmr.msra.gmra.mrb[0].mxu0 %vm392_vm8, %v8358_v37  ;;  %v728_v2 = vsel %vm383_vm5, %v727_v39, %v726_v59  ;;  %v1055_v3 = vsel %vm374_vm2, %v1054_v56, %v1053_v55  ;;  %v1064_v4 = vrot.slane %v1043_v54, 1  ;;  %v1371_v5 = vld [vmem:[%s8280_s19 + $0x23] sm:$0x1]  ;;  %vm488_vm9 = vcmask 130048  }
  0x49   : > { %v1372_v6 = vld [vmem:[%s8280_s19 + $0x33] sm:$0x1]  ;;  %v1385_v7 = vrot.slane %v1370_v63, 7  ;;  %v730_v9 = vsel %vm386_vm6, %v729_v40, %v728_v2  ;;  %7617 = vmatprep.mubr.msk.f32.mxu0 %vm392_vm8, %v8331_v16  ;;  %v1057_v10 = vsel %vm377_vm3, %v1056_v57, %v1055_v3  ;;  %v1373_v11 = vld [vmem:[%s8280_s19 + $0x43] sm:$0x1]  ;;  %v1387_v19 = vrot.slane %v1371_v5, 6 }
  0x4a   : > { %v1374_v12 = vld [vmem:[%s8280_s19 + $0x53] sm:$0x1]  ;;  %v1375_v13 = vld [vmem:[%s8280_s19 + $0x63] sm:$0x1]  ;;  %v732_v14 = vsel %vm389_vm7, %v731_v44, %v730_v9  ;;  %v1059_v15 = vsel %vm380_vm4, %v1058_v60, %v1057_v10  ;;  %v1389_v21 = vrot.slane %v1372_v6, 5  ;;  %v1391_v22 = vrot.slane %v1373_v11, 4 }
  0x4b   : > { %v1376_v17 = vld [vmem:[%s8280_s19 + $0x73] sm:$0x1]  ;;  %v1386_v18 = vsel %vm371_vm1, %v1385_v7, %v1369_v58  ;;  %7615 = vmatprep.subr.mxu0 %v732_v14  ;;  %v1061_v20 = vsel %vm383_vm5, %v1060_v61, %v1059_v15  ;;  %v1393_v23 = vrot.slane %v1374_v12, 3  ;;  %v1702_v24 = vld [vmem:[%s8280_s19 + $0x4] sm:$0x1]  ;;  %v1395_v28 = vrot.slane %v1375_v13, 2 }
  0x4c   : > { %v1703_v25 = vld [vmem:[%s8280_s19 + $0x14] sm:$0x1]  ;;  %7616 = vmatpush3.msra.mxu0 %v732_v14  ;;  %v1063_v26 = vsel %vm386_vm6, %v1062_v62, %v1061_v20  ;;  %v1388_v27 = vsel %vm374_vm2, %v1387_v19, %v1386_v18  ;;  %v1397_v29 = vrot.slane %v1376_v17, 1  ;;  %v1704_v30 = vld [vmem:[%s8280_s19 + $0x24] sm:$0x1]  ;;  %vm272_vm10 = vcmask 195584  }
  0x4d   : > { %v1705_v31 = vld [vmem:[%s8280_s19 + $0x34] sm:$0x1]  ;;  %7618 = vmatmul.mubr.msk.f32.vlgmr.msra.gmra.mrb[2].mxu0 %vm392_vm8, %v8358_v37  ;;  %v1065_v32 = vsel %vm389_vm7, %v1064_v4, %v1063_v26  ;;  %v1390_v33 = vsel %vm377_vm3, %v1389_v21, %v1388_v27  ;;  %v1706_v34 = vld [vmem:[%s8280_s19 + $0x44] sm:$0x1]  ;;  %v1718_v40 = vrot.slane %v1703_v25, 7  ;;  %v1720_v41 = vrot.slane %v1704_v30, 6 }
  0x4e   : > { %v1707_v35 = vld [vmem:[%s8280_s19 + $0x54] sm:$0x1]  ;;  %v1708_v36 = vld [vmem:[%s8280_s19 + $0x64] sm:$0x1]  ;;  %7627 = vmatprep.subr.mxu0 %v1065_v32  ;;  %7629 = vmatprep.mubr.msk.f32.mxu0 %vm392_vm8, %v8331_v16  ;;  %v1392_v38 = vsel %vm380_vm4, %v1391_v22, %v1390_v33  ;;  %v1722_v42 = vrot.slane %v1705_v31, 5  ;;  %v1724_v44 = vrot.slane %v1706_v34, 4 }
  0x4f   : > { %v1709_v39 = vld [vmem:[%s8280_s19 + $0x74] sm:$0x1]  ;;  %7628 = vmatpush3.msra.mxu0 %v1065_v32  ;;  %v1394_v43 = vsel %vm383_vm5, %v1393_v23, %v1392_v38  ;;  %v1726_v45 = vrot.slane %v1707_v35, 3  ;;  %v2035_v46 = vld [vmem:[%s8280_s19 + $0x5] sm:$0x1]  ;;  %v1719_v48 = vsel %vm371_vm1, %v1718_v40, %v1702_v24  ;;  %v1728_v49 = vrot.slane %v1708_v36, 2 }
  0x50   : > { %v1396_v47 = vsel %vm386_vm6, %v1395_v28, %v1394_v43  ;;  %v1730_v50 = vrot.slane %v1709_v39, 1  ;;  %v2036_v51 = vld [vmem:[%s8280_s19 + $0x15] sm:$0x1]  ;;  %v2037_v52 = vld [vmem:[%s8280_s19 + $0x25] sm:$0x1]  ;;  %v1721_v54 = vsel %vm374_vm2, %v1720_v41, %v1719_v48  ;;  %s8158_s9 = smov 120  }
  0x51   : > { %7630 = vmatmul.mubr.msk.f32.vlgmr.msra.gmra.mrb[4].mxu0 %vm392_vm8, %v8358_v37  ;;  %v1398_v53 = vsel %vm389_vm7, %v1397_v29, %v1396_v47  ;;  %v2038_v55 = vld [vmem:[%s8280_s19 + $0x35] sm:$0x1]  ;;  %v2039_v56 = vld [vmem:[%s8280_s19 + $0x45] sm:$0x1]  ;;  %v1723_v58 = vsel %vm377_vm3, %v1722_v42, %v1721_v54  ;;  %v2051_v61 = vrot.slane %v2036_v51, 7  ;;  %v2053_v62 = vrot.slane %v2037_v52, 6 }
  0x52   : > { %v2040_v57 = vld [vmem:[%s8280_s19 + $0x55] sm:$0x1]  ;;  %7639 = vmatprep.subr.mxu0 %v1398_v53  ;;  %7641 = vmatprep.mubr.msk.f32.mxu0 %vm392_vm8, %v8331_v16  ;;  %v2041_v59 = vld [vmem:[%s8280_s19 + $0x65] sm:$0x1]  ;;  %v1725_v63 = vsel %vm380_vm4, %v1724_v44, %v1723_v58  ;;  %v2055_v2 = vrot.slane %v2038_v55, 5  ;;  %v2057_v3 = vrot.slane %v2039_v56, 4 }
  0x53   : > { %v2042_v60 = vld [vmem:[%s8280_s19 + $0x75] sm:$0x1]  ;;  %7640 = vmatpush3.msra.mxu0 %v1398_v53  ;;  %v2059_v4 = vrot.slane %v2040_v57, 3  ;;  %v2368_v5 = vld [vmem:[%s8280_s19 + $0x6] sm:$0x1]  ;;  %v1727_v6 = vsel %vm383_vm5, %v1726_v45, %v1725_v63  ;;  %v2052_v7 = vsel %vm371_vm1, %v2051_v61, %v2035_v46  ;;  %v2061_v9 = vrot.slane %v2041_v59, 2 }
  0x54   : > { %v2063_v10 = vrot.slane %v2042_v60, 1  ;;  %v2369_v11 = vld [vmem:[%s8280_s19 + $0x16] sm:$0x1]  ;;  %v2370_v12 = vld [vmem:[%s8280_s19 + $0x26] sm:$0x1]  ;;  %v1729_v13 = vsel %vm386_vm6, %v1728_v49, %v1727_v6  ;;  %v2054_v14 = vsel %vm374_vm2, %v2053_v62, %v2052_v7  ;;  %p267_p7 = scmp.lt.s32.totalorder %s8213_s25, 1 }
  0x55   : > { %7642 = vmatmul.mubr.msk.f32.vlgmr.msra.gmra.mrb[6].mxu0 %vm392_vm8, %v8358_v37  ;;  %v2371_v15 = vld [vmem:[%s8280_s19 + $0x36] sm:$0x1]  ;;  %v2372_v17 = vld [vmem:[%s8280_s19 + $0x46] sm:$0x1]  ;;  %v1731_v19 = vsel %vm389_vm7, %v1730_v50, %v1729_v13  ;;  %v2056_v20 = vsel %vm377_vm3, %v2055_v2, %v2054_v14  ;;  %v2384_v23 = vrot.slane %v2369_v11, 7  ;;  %v2386_v24 = vrot.slane %v2370_v12, 6 }
  0x56   : > { %v2373_v18 = vld [vmem:[%s8280_s19 + $0x56] sm:$0x1]  ;;  %7653 = vmatprep.mubr.msk.f32.mxu0 %vm392_vm8, %v8331_v16  ;;  %v2374_v21 = vld [vmem:[%s8280_s19 + $0x66] sm:$0x1]  ;;  %7651 = vmatprep.subr.mxu0 %v1731_v19  ;;  %v2058_v25 = vsel %vm380_vm4, %v2057_v3, %v2056_v20  ;;  %v2388_v26 = vrot.slane %v2371_v15, 5  ;;  %v2390_v27 = vrot.slane %v2372_v17, 4 }
  0x57   : > { %v2375_v22 = vld [vmem:[%s8280_s19 + $0x76] sm:$0x1]  ;;  %v2392_v28 = vrot.slane %v2373_v18, 3  ;;  %v2701_v29 = vld [vmem:[%s8280_s19 + $0x7] sm:$0x1]  ;;  %7652 = vmatpush3.msra.mxu0 %v1731_v19  ;;  %v2060_v30 = vsel %vm383_vm5, %v2059_v4, %v2058_v25  ;;  %v2385_v31 = vsel %vm371_vm1, %v2384_v23, %v2368_v5  ;;  %v2394_v32 = vrot.slane %v2374_v21, 2 }
  0x58   : > { %v2396_v33 = vrot.slane %v2375_v22, 1  ;;  %v2702_v34 = vld [vmem:[%s8280_s19 + $0x17] sm:$0x1]  ;;  %v2703_v35 = vld [vmem:[%s8280_s19 + $0x27] sm:$0x1]  ;;  %v2062_v36 = vsel %vm386_vm6, %v2061_v9, %v2060_v30  ;;  %v2387_v38 = vsel %vm374_vm2, %v2386_v24, %v2385_v31  ;;  %s11019_s25 = smov (!%p267_p7, %s8213_s25), 1 }
  0x59   : > { %7654 = vmatmul.mubr.msk.f32.vlgmr.msra.gmra.mrb[8].mxu0 %vm392_vm8, %v8358_v37  ;;  %v2704_v39 = vld [vmem:[%s8280_s19 + $0x37] sm:$0x1]  ;;  %v2705_v40 = vld [vmem:[%s8280_s19 + $0x47] sm:$0x1]  ;;  %v2064_v42 = vsel %vm389_vm7, %v2063_v10, %v2062_v36  ;;  %v2389_v43 = vsel %vm377_vm3, %v2388_v26, %v2387_v38  ;;  %v2717_v46 = vrot.slane %v2702_v34, 7  ;;  %v2719_v47 = vrot.slane %v2703_v35, 6 }
  0x5a   : > { %v2706_v41 = vld [vmem:[%s8280_s19 + $0x57] sm:$0x1]  ;;  %7665 = vmatprep.mubr.msk.f32.mxu0 %vm392_vm8, %v8331_v16  ;;  %v2707_v44 = vld [vmem:[%s8280_s19 + $0x67] sm:$0x1]  ;;  %7663 = vmatprep.subr.mxu0 %v2064_v42  ;;  %v2391_v48 = vsel %vm380_vm4, %v2390_v27, %v2389_v43  ;;  %v2721_v49 = vrot.slane %v2704_v39, 5  ;;  %v2723_v50 = vrot.slane %v2705_v40, 4 }
  0x5b   : > { %v2708_v45 = vld [vmem:[%s8280_s19 + $0x77] sm:$0x1]  ;;  %v2725_v51 = vrot.slane %v2706_v41, 3  ;;  %v3034_v52 = vld [vmem:[%s8280_s19 + $0x8] sm:$0x1]  ;;  %7664 = vmatpush3.msra.mxu0 %v2064_v42  ;;  %v2393_v53 = vsel %vm383_vm5, %v2392_v28, %v2391_v48  ;;  %v2718_v54 = vsel %vm371_vm1, %v2717_v46, %v2701_v29  ;;  %v2727_v55 = vrot.slane %v2707_v44, 2 }
  0x5c   : > { %v2729_v56 = vrot.slane %v2708_v45, 1  ;;  %v3035_v57 = vld [vmem:[%s8280_s19 + $0x18] sm:$0x1]  ;;  %v3036_v58 = vld [vmem:[%s8280_s19 + $0x28] sm:$0x1]  ;;  %v2395_v59 = vsel %vm386_vm6, %v2394_v32, %v2393_v53  ;;  %v2720_v60 = vsel %vm374_vm2, %v2719_v47, %v2718_v54  ;;  %s7490_s13 = sshll.u32 %s11019_s25, 7 }
  0x5d   : > { %7666 = vmatmul.mubr.msk.f32.vlgmr.msra.gmra.mrb[10].mxu0 %vm392_vm8, %v8358_v37  ;;  %v3037_v61 = vld [vmem:[%s8280_s19 + $0x38] sm:$0x1]  ;;  %v3038_v62 = vld [vmem:[%s8280_s19 + $0x48] sm:$0x1]  ;;  %v2397_v2 = vsel %vm389_vm7, %v2396_v33, %v2395_v59  ;;  %v2722_v3 = vsel %vm377_vm3, %v2721_v49, %v2720_v60  ;;  %v3050_v6 = vrot.slane %v3035_v57, 7  ;;  %v3052_v7 = vrot.slane %v3036_v58, 6 }
  0x5e   : > { %v3039_v63 = vld [vmem:[%s8280_s19 + $0x58] sm:$0x1]  ;;  %7677 = vmatprep.mubr.msk.f32.mxu0 %vm392_vm8, %v8331_v16  ;;  %v3040_v4 = vld [vmem:[%s8280_s19 + $0x68] sm:$0x1]  ;;  %7675 = vmatprep.subr.mxu0 %v2397_v2  ;;  %v2724_v9 = vsel %vm380_vm4, %v2723_v50, %v2722_v3  ;;  %v3054_v10 = vrot.slane %v3037_v61, 5  ;;  %v3056_v11 = vrot.slane %v3038_v62, 4 }
  0x5f   : > { %v3041_v5 = vld [vmem:[%s8280_s19 + $0x78] sm:$0x1]  ;;  %v3058_v12 = vrot.slane %v3039_v63, 3  ;;  %v3367_v13 = vld [vmem:[%s8280_s19 + $0x9] sm:$0x1]  ;;  %7676 = vmatpush3.msra.mxu0 %v2397_v2  ;;  %v2726_v14 = vsel %vm383_vm5, %v2725_v51, %v2724_v9  ;;  %v3051_v15 = vsel %vm371_vm1, %v3050_v6, %v3034_v52  ;;  %v3060_v17 = vrot.slane %v3040_v4, 2 }
  0x60   : > { %v3062_v18 = vrot.slane %v3041_v5, 1  ;;  %v3368_v19 = vld [vmem:[%s8280_s19 + $0x19] sm:$0x1]  ;;  %v3369_v20 = vld [vmem:[%s8280_s19 + $0x29] sm:$0x1]  ;;  %v2728_v21 = vsel %vm386_vm6, %v2727_v55, %v2726_v14  ;;  %v3053_v22 = vsel %vm374_vm2, %v3052_v7, %v3051_v15 }
  0x61   : > { %7678 = vmatmul.mubr.msk.f32.vlgmr.msra.gmra.mrb[12].mxu0 %vm392_vm8, %v8358_v37  ;;  %v3370_v23 = vld [vmem:[%s8280_s19 + $0x39] sm:$0x1]  ;;  %v3371_v24 = vld [vmem:[%s8280_s19 + $0x49] sm:$0x1]  ;;  %v2730_v26 = vsel %vm389_vm7, %v2729_v56, %v2728_v21  ;;  %v3055_v27 = vsel %vm377_vm3, %v3054_v10, %v3053_v22  ;;  %v3383_v30 = vrot.slane %v3368_v19, 7  ;;  %v3385_v31 = vrot.slane %v3369_v20, 6 }
  0x62   : > { %v3372_v25 = vld [vmem:[%s8280_s19 + $0x59] sm:$0x1]  ;;  %7689 = vmatprep.mubr.msk.f32.mxu0 %vm392_vm8, %v8331_v16  ;;  %v3373_v28 = vld [vmem:[%s8280_s19 + $0x69] sm:$0x1]  ;;  %7687 = vmatprep.subr.mxu0 %v2730_v26  ;;  %v3057_v32 = vsel %vm380_vm4, %v3056_v11, %v3055_v27  ;;  %v3387_v33 = vrot.slane %v3370_v23, 5  ;;  %v3389_v34 = vrot.slane %v3371_v24, 4 }
  0x63   : > { %v3374_v29 = vld [vmem:[%s8280_s19 + $0x79] sm:$0x1]  ;;  %v3391_v35 = vrot.slane %v3372_v25, 3  ;;  %v3700_v36 = vld [vmem:[%s8280_s19 + $0xa] sm:$0x1]  ;;  %7688 = vmatpush3.msra.mxu0 %v2730_v26  ;;  %v3059_v38 = vsel %vm383_vm5, %v3058_v12, %v3057_v32  ;;  %v3384_v39 = vsel %vm371_vm1, %v3383_v30, %v3367_v13  ;;  %v3393_v40 = vrot.slane %v3373_v28, 2 }
  0x64   : > { %v3395_v41 = vrot.slane %v3374_v29, 1  ;;  %v3701_v42 = vld [vmem:[%s8280_s19 + $0x1a] sm:$0x1]  ;;  %v3702_v43 = vld [vmem:[%s8280_s19 + $0x2a] sm:$0x1]  ;;  %v3061_v44 = vsel %vm386_vm6, %v3060_v17, %v3059_v38  ;;  %v3386_v45 = vsel %vm374_vm2, %v3385_v31, %v3384_v39 }
  0x65   : > { %7690 = vmatmul.mubr.msk.f32.vlgmr.msra.gmra.mrb[14].mxu0 %vm392_vm8, %v8358_v37  ;;  %v3703_v46 = vld [vmem:[%s8280_s19 + $0x3a] sm:$0x1]  ;;  %v3704_v47 = vld [vmem:[%s8280_s19 + $0x4a] sm:$0x1]  ;;  %v3063_v49 = vsel %vm389_vm7, %v3062_v18, %v3061_v44  ;;  %v3388_v50 = vsel %vm377_vm3, %v3387_v33, %v3386_v45  ;;  %v3716_v53 = vrot.slane %v3701_v42, 7  ;;  %v3718_v54 = vrot.slane %v3702_v43, 6 }
  0x66   : > { %v3705_v48 = vld [vmem:[%s8280_s19 + $0x5a] sm:$0x1]  ;;  %7701 = vmatprep.mubr.msk.f32.mxu0 %vm392_vm8, %v8331_v16  ;;  %v3706_v51 = vld [vmem:[%s8280_s19 + $0x6a] sm:$0x1]  ;;  %7699 = vmatprep.subr.mxu0 %v3063_v49  ;;  %v3390_v55 = vsel %vm380_vm4, %v3389_v34, %v3388_v50  ;;  %v3720_v56 = vrot.slane %v3703_v46, 5  ;;  %v3722_v57 = vrot.slane %v3704_v47, 4 }
  0x67   : > { %v3707_v52 = vld [vmem:[%s8280_s19 + $0x7a] sm:$0x1]  ;;  %v3724_v58 = vrot.slane %v3705_v48, 3  ;;  %v4033_v59 = vld [vmem:[%s8280_s19 + $0xb] sm:$0x1]  ;;  %7700 = vmatpush3.msra.mxu0 %v3063_v49  ;;  %v3392_v60 = vsel %vm383_vm5, %v3391_v35, %v3390_v55  ;;  %v3717_v61 = vsel %vm371_vm1, %v3716_v53, %v3700_v36  ;;  %v3726_v62 = vrot.slane %v3706_v51, 2 }
  0x68   : > { %v3728_v63 = vrot.slane %v3707_v52, 1  ;;  %v4034_v2 = vld [vmem:[%s8280_s19 + $0x1b] sm:$0x1]  ;;  %v4035_v3 = vld [vmem:[%s8280_s19 + $0x2b] sm:$0x1]  ;;  %v3394_v4 = vsel %vm386_vm6, %v3393_v40, %v3392_v60  ;;  %v3719_v5 = vsel %vm374_vm2, %v3718_v54, %v3717_v61 }
  0x69   : > { %7702 = vmatmul.mubr.msk.f32.vlgmr.msra.gmra.mrb[16].mxu0 %vm392_vm8, %v8358_v37  ;;  %v4036_v6 = vld [vmem:[%s8280_s19 + $0x3b] sm:$0x1]  ;;  %v4037_v7 = vld [vmem:[%s8280_s19 + $0x4b] sm:$0x1]  ;;  %v3396_v10 = vsel %vm389_vm7, %v3395_v41, %v3394_v4  ;;  %v3721_v11 = vsel %vm377_vm3, %v3720_v56, %v3719_v5  ;;  %v4049_v14 = vrot.slane %v4034_v2, 7  ;;  %v4051_v15 = vrot.slane %v4035_v3, 6 }
  0x6a   : > { %v4038_v9 = vld [vmem:[%s8280_s19 + $0x5b] sm:$0x1]  ;;  %7713 = vmatprep.mubr.msk.f32.mxu0 %vm392_vm8, %v8331_v16  ;;  %v4039_v12 = vld [vmem:[%s8280_s19 + $0x6b] sm:$0x1]  ;;  %7711 = vmatprep.subr.mxu0 %v3396_v10  ;;  %v3723_v17 = vsel %vm380_vm4, %v3722_v57, %v3721_v11  ;;  %v4053_v18 = vrot.slane %v4036_v6, 5  ;;  %v4055_v19 = vrot.slane %v4037_v7, 4 }
  0x6b   : > { %v4040_v13 = vld [vmem:[%s8280_s19 + $0x7b] sm:$0x1]  ;;  %v4057_v20 = vrot.slane %v4038_v9, 3  ;;  %v4366_v21 = vld [vmem:[%s8280_s19 + $0xc] sm:$0x1]  ;;  %7712 = vmatpush3.msra.mxu0 %v3396_v10  ;;  %v3725_v22 = vsel %vm383_vm5, %v3724_v58, %v3723_v17  ;;  %v4050_v23 = vsel %vm371_vm1, %v4049_v14, %v4033_v59  ;;  %v4059_v24 = vrot.slane %v4039_v12, 2 }
  0x6c   : > { %v4061_v25 = vrot.slane %v4040_v13, 1  ;;  %v4367_v26 = vld [vmem:[%s8280_s19 + $0x1c] sm:$0x1]  ;;  %v4368_v27 = vld [vmem:[%s8280_s19 + $0x2c] sm:$0x1]  ;;  %v3727_v28 = vsel %vm386_vm6, %v3726_v62, %v3725_v22  ;;  %v4052_v29 = vsel %vm374_vm2, %v4051_v15, %v4050_v23 }
  0x6d   : > { %7714 = vmatmul.mubr.msk.f32.vlgmr.msra.gmra.mrb[18].mxu0 %vm392_vm8, %v8358_v37  ;;  %v4369_v30 = vld [vmem:[%s8280_s19 + $0x3c] sm:$0x1]  ;;  %v4370_v31 = vld [vmem:[%s8280_s19 + $0x4c] sm:$0x1]  ;;  %v3729_v33 = vsel %vm389_vm7, %v3728_v63, %v3727_v28  ;;  %v4054_v34 = vsel %vm377_vm3, %v4053_v18, %v4052_v29  ;;  %v4382_v38 = vrot.slane %v4367_v26, 7  ;;  %v4384_v39 = vrot.slane %v4368_v27, 6 }
  0x6e   : > { %v4371_v32 = vld [vmem:[%s8280_s19 + $0x5c] sm:$0x1]  ;;  %7725 = vmatprep.mubr.msk.f32.mxu0 %vm392_vm8, %v8331_v16  ;;  %v4372_v35 = vld [vmem:[%s8280_s19 + $0x6c] sm:$0x1]  ;;  %7723 = vmatprep.subr.mxu0 %v3729_v33  ;;  %v4056_v40 = vsel %vm380_vm4, %v4055_v19, %v4054_v34  ;;  %v4386_v41 = vrot.slane %v4369_v30, 5  ;;  %v4388_v42 = vrot.slane %v4370_v31, 4 }
  0x6f   : > { %v4373_v36 = vld [vmem:[%s8280_s19 + $0x7c] sm:$0x1]  ;;  %v4390_v43 = vrot.slane %v4371_v32, 3  ;;  %v4699_v44 = vld [vmem:[%s8280_s19 + $0xd] sm:$0x1]  ;;  %7724 = vmatpush3.msra.mxu0 %v3729_v33  ;;  %v4058_v45 = vsel %vm383_vm5, %v4057_v20, %v4056_v40  ;;  %v4383_v46 = vsel %vm371_vm1, %v4382_v38, %v4366_v21  ;;  %v4392_v47 = vrot.slane %v4372_v35, 2 }
  0x70   : > { %v4394_v48 = vrot.slane %v4373_v36, 1  ;;  %v4700_v49 = vld [vmem:[%s8280_s19 + $0x1d] sm:$0x1]  ;;  %v4701_v50 = vld [vmem:[%s8280_s19 + $0x2d] sm:$0x1]  ;;  %v4060_v51 = vsel %vm386_vm6, %v4059_v24, %v4058_v45  ;;  %v4385_v52 = vsel %vm374_vm2, %v4384_v39, %v4383_v46 }
  0x71   : > { %7726 = vmatmul.mubr.msk.f32.vlgmr.msra.gmra.mrb[20].mxu0 %vm392_vm8, %v8358_v37  ;;  %v4702_v53 = vld [vmem:[%s8280_s19 + $0x3d] sm:$0x1]  ;;  %v4703_v54 = vld [vmem:[%s8280_s19 + $0x4d] sm:$0x1]  ;;  %v4062_v56 = vsel %vm389_vm7, %v4061_v25, %v4060_v51  ;;  %v4387_v57 = vsel %vm377_vm3, %v4386_v41, %v4385_v52  ;;  %v4715_v60 = vrot.slane %v4700_v49, 7  ;;  %v4717_v61 = vrot.slane %v4701_v50, 6 }
  0x72   : > { %v4704_v55 = vld [vmem:[%s8280_s19 + $0x5d] sm:$0x1]  ;;  %7737 = vmatprep.mubr.msk.f32.mxu0 %vm392_vm8, %v8331_v16  ;;  %v4705_v58 = vld [vmem:[%s8280_s19 + $0x6d] sm:$0x1]  ;;  %7735 = vmatprep.subr.mxu0 %v4062_v56  ;;  %v4389_v62 = vsel %vm380_vm4, %v4388_v42, %v4387_v57  ;;  %v4719_v63 = vrot.slane %v4702_v53, 5  ;;  %v4721_v2 = vrot.slane %v4703_v54, 4 }
  0x73   : > { %v4706_v59 = vld [vmem:[%s8280_s19 + $0x7d] sm:$0x1]  ;;  %v4723_v3 = vrot.slane %v4704_v55, 3  ;;  %v5032_v4 = vld [vmem:[%s8280_s19 + $0xe] sm:$0x1]  ;;  %7736 = vmatpush3.msra.mxu0 %v4062_v56  ;;  %v4391_v5 = vsel %vm383_vm5, %v4390_v43, %v4389_v62  ;;  %v4716_v6 = vsel %vm371_vm1, %v4715_v60, %v4699_v44  ;;  %v4725_v7 = vrot.slane %v4705_v58, 2 }
  0x74   : > { %v4727_v9 = vrot.slane %v4706_v59, 1  ;;  %v5033_v10 = vld [vmem:[%s8280_s19 + $0x1e] sm:$0x1]  ;;  %v5034_v11 = vld [vmem:[%s8280_s19 + $0x2e] sm:$0x1]  ;;  %v4393_v12 = vsel %vm386_vm6, %v4392_v47, %v4391_v5  ;;  %v4718_v13 = vsel %vm374_vm2, %v4717_v61, %v4716_v6 }
  0x75   : > { %7738 = vmatmul.mubr.msk.f32.vlgmr.msra.gmra.mrb[22].mxu0 %vm392_vm8, %v8358_v37  ;;  %v5035_v14 = vld [vmem:[%s8280_s19 + $0x3e] sm:$0x1]  ;;  %v5036_v15 = vld [vmem:[%s8280_s19 + $0x4e] sm:$0x1]  ;;  %v4395_v18 = vsel %vm389_vm7, %v4394_v48, %v4393_v12  ;;  %v4720_v19 = vsel %vm377_vm3, %v4719_v63, %v4718_v13  ;;  %v5048_v22 = vrot.slane %v5033_v10, 7  ;;  %v5050_v23 = vrot.slane %v5034_v11, 6 }
  0x76   : > { %v5037_v17 = vld [vmem:[%s8280_s19 + $0x5e] sm:$0x1]  ;;  %7749 = vmatprep.mubr.msk.f32.mxu0 %vm392_vm8, %v8331_v16  ;;  %v5038_v20 = vld [vmem:[%s8280_s19 + $0x6e] sm:$0x1]  ;;  %7747 = vmatprep.subr.mxu0 %v4395_v18  ;;  %v4722_v24 = vsel %vm380_vm4, %v4721_v2, %v4720_v19  ;;  %v5052_v25 = vrot.slane %v5035_v14, 5  ;;  %v5054_v26 = vrot.slane %v5036_v15, 4 }
  0x77   : > { %v5039_v21 = vld [vmem:[%s8280_s19 + $0x7e] sm:$0x1]  ;;  %v5056_v27 = vrot.slane %v5037_v17, 3  ;;  %v5365_v28 = vld [vmem:[%s8280_s19 + $0xf] sm:$0x1]  ;;  %7748 = vmatpush3.msra.mxu0 %v4395_v18  ;;  %v4724_v29 = vsel %vm383_vm5, %v4723_v3, %v4722_v24  ;;  %v5049_v30 = vsel %vm371_vm1, %v5048_v22, %v5032_v4  ;;  %v5058_v31 = vrot.slane %v5038_v20, 2 }
  0x78   : > { %v5060_v32 = vrot.slane %v5039_v21, 1  ;;  %v5366_v33 = vld [vmem:[%s8280_s19 + $0x1f] sm:$0x1]  ;;  %v5367_v34 = vld [vmem:[%s8280_s19 + $0x2f] sm:$0x1]  ;;  %v4726_v35 = vsel %vm386_vm6, %v4725_v7, %v4724_v29  ;;  %v5051_v36 = vsel %vm374_vm2, %v5050_v23, %v5049_v30  ;;  %v342_v17 = vld [vmem:[%s10789_s3] sm:$0xff] }
  0x79   : > { %7750 = vmatmul.mubr.msk.f32.vlgmr.msra.gmra.mrb[24].mxu0 %vm392_vm8, %v8358_v37  ;;  %v5368_v38 = vld [vmem:[%s8280_s19 + $0x3f] sm:$0x1]  ;;  %v5369_v39 = vld [vmem:[%s8280_s19 + $0x4f] sm:$0x1]  ;;  %v4728_v41 = vsel %vm389_vm7, %v4727_v9, %v4726_v35  ;;  %v5053_v42 = vsel %vm377_vm3, %v5052_v25, %v5051_v36  ;;  %v5381_v44 = vrot.slane %v5366_v33, 7  ;;  %v5383_v45 = vrot.slane %v5367_v34, 6 }
  0x7a   : > { %v5370_v40 = vld [vmem:[%s8280_s19 + $0x5f] sm:$0x1]  ;;  %7761 = vmatprep.mubr.msk.f32.mxu0 %vm392_vm8, %v8331_v16  ;;  %v5371_v43 = vld [vmem:[%s8280_s19 + $0x6f] sm:$0x1]  ;;  %7759 = vmatprep.subr.mxu0 %v4728_v41  ;;  %v5055_v46 = vsel %vm380_vm4, %v5054_v26, %v5053_v42  ;;  %v5385_v48 = vrot.slane %v5368_v38, 5  ;;  %v5387_v49 = vrot.slane %v5369_v39, 4 }
  0x7b   : > { %v5372_v47 = vld [vmem:[%s8280_s19 + $0x7f] sm:$0x1]  ;;  %v8624_v50 = vld [vmem:[%s10790_s4] ss:$0 sm:$0xff]  ;;  %7760 = vmatpush3.msra.mxu0 %v4728_v41  ;;  %v5057_v51 = vsel %vm383_vm5, %v5056_v27, %v5055_v46  ;;  %v5382_v52 = vsel %vm371_vm1, %v5381_v44, %v5365_v28  ;;  %v5389_v53 = vrot.slane %v5370_v40, 3  ;;  %v5391_v56 = vrot.slane %v5371_v43, 2  ;;  %s10687_s19 = scalar_lea.vmem %s10792_s6, %s7490_s13 }
  0x7c   : > { %5811 = vperm.xlu1 %7914, %v8624_v50   ;;  %v5059_v54 = vsel %vm386_vm6, %v5058_v31, %v5057_v51  ;;  %v5384_v55 = vsel %vm374_vm2, %v5383_v45, %v5382_v52  ;;  %v8636_v57 = vld [vmem:[%s10790_s4 + $0x1] ss:$0 sm:$0xff]  ;;  %5907 = vperm.xlu0 %7915, %v8624_v50   ;;  %v5393_v60 = vrot.slane %v5372_v47, 1  ;;  %v8649_v63 = vld [vmem:[%s10790_s4 + $0x3] ss:$0 sm:$0xff]  ;;  %v8149_v9 = vmov 2  }
  0x7d   : > { %7762 = vmatmul.mubr.msk.f32.vlgmr.msra.gmra.mrb[26].mxu0 %vm392_vm8, %v8358_v37  ;;  %v5061_v58 = vsel %vm389_vm7, %v5060_v32, %v5059_v54  ;;  %v5386_v59 = vsel %vm377_vm3, %v5385_v48, %v5384_v55  ;;  %v8662_v4 = vld [vmem:[%s10790_s4 + $0x5] ss:$0 sm:$0xff]  ;;  %v8678_v5 = vld [vmem:[%s10790_s4 + $0x9] ss:$0 sm:$0xff]  ;;  %v8692_v6 = vld [vmem:[%s10790_s4 + $0xd] ss:$0 sm:$0xff] }
  0x7e   : > { %7773 = vmatprep.mubr.msk.f32.mxu0 %vm392_vm8, %v8331_v16  ;;  %7771 = vmatprep.subr.mxu0 %v5061_v58  ;;  %v5388_v61 = vsel %vm380_vm4, %v5387_v49, %v5386_v59  ;;  %v8699_v7 = vld [vmem:[%s10790_s4 + $0xf] ss:$0 sm:$0xff]  ;;  %v8709_v10 = vld [vmem:[%s10790_s4 + $0x4] ss:$0 sm:$0xff]  ;;  %v8714_v11 = vld [vmem:[%s10790_s4 + $0x2] ss:$0 sm:$0xff] }
  0x7f   : > { %7772 = vmatpush3.msra.mxu0 %v5061_v58  ;;  %v5390_v62 = vsel %vm383_vm5, %v5389_v53, %v5388_v61  ;;  %v8728_v12 = vld [vmem:[%s10790_s4 + $0x8] ss:$0 sm:$0xff]  ;;  %v8735_v13 = vld [vmem:[%s10790_s4 + $0xa] ss:$0 sm:$0xff]  ;;  %v8742_v14 = vld [vmem:[%s10790_s4 + $0xc] ss:$0 sm:$0xff] }
  0x80   : > { %5815 = vperm.xlu1 %7914, %v8636_v57   ;;  %v5392_v2 = vsel %vm386_vm6, %v5391_v56, %v5390_v62  ;;  %5919 = vperm.xlu0 %7915, %v8649_v63   ;;  %v8749_v15 = vld [vmem:[%s10790_s4 + $0xe] ss:$0 sm:$0xff]  ;;  %v8150_v20 = vmov 3   ;;  %v8151_v21 = vmov 4   ;;  %v8152_v22 = vmov 5  }
  0x81   : > { %7774 = vmatmul.mubr.msk.f32.vlgmr.msra.gmra.mrb[28].mxu0 %vm392_vm8, %v8358_v37  ;;  %v5394_v3 = vsel %vm389_vm7, %v5393_v60, %v5392_v2  ;;  %v343_v18 = vld [vmem:[%s10789_s3 + $0x8] sm:$0xff]  ;;  %v10798_v34 = vmov 6  }
  0x82   : > { %7785 = vmatprep.mubr.msk.f32.mxu0 %vm392_vm8, %v8331_v16  ;;  %7783 = vmatprep.subr.mxu0 %v5394_v3  ;;  %v8671_v16 = vld [vmem:[%s10790_s4 + $0x7] ss:$0 sm:$0xff]  ;;  %v8759_v19 = vpack.c.bf16 %v343_v18, %v342_v17 }
  0x83   : > { %7784 = vmatpush3.msra.mxu0 %v5394_v3 }
  0x84   : > { %5823 = vperm.xlu1 %7914, %v8649_v63   ;;  %5927 = vperm.xlu0 %7915, %v8662_v4  }
  0x85   : > { %7786 = vmatmul.mubr.msk.f32.vlgmr.msra.gmra.mrb[30].mxu0 %vm392_vm8, %v8358_v37  ;;  %v8685_v37 = vld [vmem:[%s10790_s4 + $0xb] ss:$0 sm:$0xff]  ;;  %7796 = vmatprep.subr.bf16.mxu1 %v8759_v19 }
  0x86   : > { %7798 = vmatpush3.bf16.msra.mxu1 %v8759_v19 }
  0x87   : > { %7800 = vmatprep.subr.bf16.mxu1 %v8759_v19 }
  0x88   : > { %5831 = vperm.xlu1 %7914, %v8662_v4   ;;  %5935 = vperm.xlu0 %7915, %v8671_v16  }
  0x8c   : > { %5839 = vperm.xlu1 %7914, %v8671_v16   ;;  %5943 = vperm.xlu0 %7915, %v8678_v5  }
  0x90   : > { %5847 = vperm.xlu1 %7914, %v8678_v5   ;;  %5951 = vperm.xlu0 %7915, %v8685_v37  }
  0x94   : > { %5855 = vperm.xlu1 %7914, %v8685_v37   ;;  %5959 = vperm.xlu0 %7915, %v8692_v6  }
  0x98   : > { %5863 = vperm.xlu1 %7914, %v8692_v6   ;;  %5967 = vperm.xlu0 %7915, %v8699_v7  }
  0x9c   : > { %5871 = vperm.xlu1 %7914, %v8699_v7   ;;  %7918 = vset.pattern.permute.xlu0 %v8149_v9 }
  0x9d   : > { %6071 = vperm.xlu0 %7918, %v8636_v57  }
  0xa0   : > { %7916 = vset.pattern.permute.xlu1 %v8148_v8  ;;  %v8721_v8 = vld [vmem:[%s10790_s4 + $0x6] ss:$0 sm:$0xff] }
  0xa1   : > { %5911 = vperm.xlu1 %7916, %v8636_v57   ;;  %6083 = vperm.xlu0 %7918, %v8709_v10  }
  0xa5   : > { %5915 = vperm.xlu1 %7916, %v8714_v11   ;;  %6091 = vperm.xlu0 %7918, %v8721_v8  }
  0xa9   : > { %5923 = vperm.xlu1 %7916, %v8709_v10   ;;  %6099 = vperm.xlu0 %7918, %v8728_v12  }
  0xad   : > { %5931 = vperm.xlu1 %7916, %v8721_v8   ;;  %6107 = vperm.xlu0 %7918, %v8735_v13  }
  0xb1   : > { %5939 = vperm.xlu1 %7916, %v8728_v12   ;;  %6115 = vperm.xlu0 %7918, %v8742_v14  }
  0xb5   : > { %5947 = vperm.xlu1 %7916, %v8735_v13   ;;  %6123 = vperm.xlu0 %7918, %v8749_v15  }
  0xb8   : > { %v8816_v28 = vpop.permute.xlu0 %354 }
  0xb9   : > { %5955 = vperm.xlu1 %7916, %v8742_v14   ;;  %7919 = vset.pattern.permute.xlu0 %v8150_v20 }
  0xba   : > { %6243 = vperm.xlu0 %7919, %v8624_v50  }
  0xbd   : > { %5963 = vperm.xlu1 %7916, %v8749_v15  }
  0xbe   : > { %6255 = vperm.xlu0 %7919, %v8649_v63  }
  0xbf   : > { %v8825_v31 = vpop.permute.xlu0 %359 }
  0xc1   : > { %7917 = vset.pattern.permute.xlu1 %v8149_v9 }
  0xc2   : > { %6067 = vperm.xlu1 %7917, %v8624_v50   ;;  %6263 = vperm.xlu0 %7919, %v8662_v4  }
  0xc6   : > { %6075 = vperm.xlu1 %7917, %v8714_v11   ;;  %6271 = vperm.xlu0 %7919, %v8671_v16  }
  0xca   : > { %6079 = vperm.xlu1 %7917, %v8649_v63   ;;  %6279 = vperm.xlu0 %7919, %v8678_v5  }
  0xce   : > { %6087 = vperm.xlu1 %7917, %v8662_v4   ;;  %6287 = vperm.xlu0 %7919, %v8685_v37  }
  0xd2   : > { %6095 = vperm.xlu1 %7917, %v8671_v16   ;;  %6295 = vperm.xlu0 %7919, %v8692_v6  }
  0xd6   : > { %6103 = vperm.xlu1 %7917, %v8678_v5   ;;  %6303 = vperm.xlu0 %7919, %v8699_v7  }
  0xda   : > { %6111 = vperm.xlu1 %7917, %v8685_v37   ;;  %7922 = vset.pattern.permute.xlu0 %v8151_v21 }
  0xdb   : > { %6343 = vperm.xlu0 %7922, %v8636_v57  }
  0xde   : > { %6119 = vperm.xlu1 %7917, %v8692_v6  }
  0xdf   : > { %6355 = vperm.xlu0 %7922, %v8709_v10  }
  0xe2   : > { %6127 = vperm.xlu1 %7917, %v8699_v7  }
  0xe3   : > { %6363 = vperm.xlu0 %7922, %v8721_v8  }
  0xe6   : > { %7920 = vset.pattern.permute.xlu1 %v8150_v20 }
  0xe7   : > { %6247 = vperm.xlu1 %7920, %v8636_v57   ;;  %6371 = vperm.xlu0 %7922, %v8728_v12  }
  0xeb   : > { %6251 = vperm.xlu1 %7920, %v8714_v11   ;;  %6379 = vperm.xlu0 %7922, %v8735_v13  }
  0xef   : > { %6259 = vperm.xlu1 %7920, %v8709_v10   ;;  %6387 = vperm.xlu0 %7922, %v8742_v14  }
  0xf3   : > { %6267 = vperm.xlu1 %7920, %v8721_v8   ;;  %6395 = vperm.xlu0 %7922, %v8749_v15  }
  0xf7   : > { %6275 = vperm.xlu1 %7920, %v8728_v12   ;;  %7923 = vset.pattern.permute.xlu0 %v8152_v22 }
  0xf8   : > { %6499 = vperm.xlu0 %7923, %v8624_v50  }
  0xfb   : > { %6283 = vperm.xlu1 %7920, %v8735_v13   ;;  %v8797_v23 = vpop.permute.xlu1 %5811  ;;  %v8831_v33 = vpop.permute.xlu0 %5907 }
  0xfc   : > { %10806 = vst [vmem:[#allocation6_spill] sm:$0xff] %v8797_v23  ;;  %6511 = vperm.xlu0 %7923, %v8649_v63  }
  0xff   : > { %6291 = vperm.xlu1 %7920, %v8742_v14   ;;  %v8801_v24 = vpop.permute.xlu1 %5815  ;;  %v8847_v43 = vpop.permute.xlu0 %5919 }
 0x100   : > { %10807 = vst [vmem:[#allocation7_spill] sm:$0xff] %v8801_v24  ;;  %6519 = vperm.xlu0 %7923, %v8662_v4  }
 0x103   : > { %6299 = vperm.xlu1 %7920, %v8749_v15   ;;  %v8805_v25 = vpop.permute.xlu1 %5823  ;;  %v8865_v55 = vpop.permute.xlu0 %5927 }
 0x104   : > { %10808 = vst [vmem:[#allocation8_spill] sm:$0xff] %v8805_v25  ;;  %6527 = vperm.xlu0 %7923, %v8671_v16  }
 0x107   : > { %7921 = vset.pattern.permute.xlu1 %v8151_v21  ;;  %v8808_v26 = vpop.permute.xlu1 %5831  ;;  %v8884_v21 = vpop.permute.xlu0 %5935 }
 0x108   : > { %10809 = vst [vmem:[#allocation9_spill] sm:$0xff] %v8808_v26  ;;  %6339 = vperm.xlu1 %7921, %v8624_v50   ;;  %6535 = vperm.xlu0 %7923, %v8678_v5   ;;  %10815 = vst [vmem:[#allocation15_spill] sm:$0xff] %v8884_v21 }
 0x10b   : > { %v8812_v27 = vpop.permute.xlu1 %5839 }
 0x10c   : > { %10810 = vst [vmem:[#allocation10_spill] sm:$0xff] %v8812_v27  ;;  %6347 = vperm.xlu1 %7921, %v8714_v11   ;;  %6543 = vperm.xlu0 %7923, %v8685_v37  }
 0x10f   : > { %v8818_v29 = vpop.permute.xlu1 %5847 }
 0x110   : > { %10811 = vst [vmem:[#allocation11_spill] sm:$0xff] %v8818_v29  ;;  %6351 = vperm.xlu1 %7921, %v8649_v63   ;;  %6551 = vperm.xlu0 %7923, %v8692_v6  }
 0x113   : > { %v8822_v30 = vpop.permute.xlu1 %5855 }
 0x114   : > { %10812 = vst [vmem:[#allocation12_spill] sm:$0xff] %v8822_v30  ;;  %6359 = vperm.xlu1 %7921, %v8662_v4   ;;  %6559 = vperm.xlu0 %7923, %v8699_v7  }
 0x117   : > { %v8828_v32 = vpop.permute.xlu1 %5863 }
 0x118   : > { %10813 = vst [vmem:[#allocation13_spill] sm:$0xff] %v8828_v32  ;;  %6367 = vperm.xlu1 %7921, %v8671_v16   ;;  %7926 = vset.pattern.permute.xlu0 %v10798_v34 }
 0x119   : > { %6679 = vperm.xlu0 %7926, %v8636_v57  }
 0x11b   : > { %v7607_v35 = vpop.f32.mrb[0].mxu0  ;;  %v8835_v36 = vpop.permute.xlu1 %5871 }
 0x11c   : > { %10814 = vst [vmem:[#allocation14_spill] sm:$0xff] %v8835_v36  ;;  %v8838_v38 = vadd.f32 %v7607_v35, %v8825_v31  ;;  %v465_v39 = vpop.f32.mrb[1].mxu0  ;;  %6375 = vperm.xlu1 %7921, %v8678_v5  }
 0x11d   : > { %v8842_v40 = vadd.f32 %v465_v39, %v8816_v28  ;;  %6691 = vperm.xlu0 %7926, %v8709_v10  }
 0x11e   : > { %v7362_v41 = vmul.f32 -1.442695, %v8838_v38 }
 0x11f   : > { %v7361_v42 = vmul.f32 -1.442695, %v8842_v40 }
 0x120   : > { %7933 = vpow2.f32 %v7362_v41  ;;  %v7619_v44 = vpop.f32.mrb[2].mxu0  ;;  %6383 = vperm.xlu1 %7921, %v8685_v37   ;;  %v8853_v47 = vpop.permute.xlu1 %5911 }
 0x121   : > { %7935 = vpow2.f32 %v7361_v42  ;;  %v8851_v45 = vadd.f32 %v7619_v44, %v8825_v31  ;;  %v800_v46 = vpop.f32.mrb[3].mxu0  ;;  %6699 = vperm.xlu0 %7926, %v8721_v8  }
 0x122   : > { %v8856_v48 = vadd.f32 %v800_v46, %v8816_v28 }
 0x123   : > { %v7368_v49 = vmul.f32 -1.442695, %v8851_v45 }
 0x124   : > { %v7367_v51 = vmul.f32 -1.442695, %v8856_v48  ;;  %v7631_v52 = vpop.f32.mrb[4].mxu0  ;;  %6391 = vperm.xlu1 %7921, %v8692_v6   ;;  %v8872_v59 = vpop.permute.xlu1 %5915 }
 0x125   : > { %7937 = vpow2.f32 %v7368_v49  ;;  %v8863_v53 = vadd.f32 %v7631_v52, %v8825_v31  ;;  %v1133_v54 = vpop.f32.mrb[5].mxu0  ;;  %6707 = vperm.xlu0 %7926, %v8728_v12  }
 0x126   : > { %7939 = vpow2.f32 %v7367_v51  ;;  %v8868_v56 = vadd.f32 %v1133_v54, %v8816_v28 }
 0x127   : > { %v7374_v58 = vmul.f32 -1.442695, %v8863_v53 }
 0x128   : > { %v7373_v60 = vmul.f32 -1.442695, %v8868_v56  ;;  %v7643_v61 = vpop.f32.mrb[6].mxu0  ;;  %6399 = vperm.xlu1 %7921, %v8699_v7   ;;  %v8892_v46 = vpop.permute.xlu1 %5923 }
 0x129   : > { %7941 = vpow2.f32 %v7374_v58  ;;  %v8877_v62 = vadd.f32 %v7643_v61, %v8825_v31  ;;  %v1466_v2 = vpop.f32.mrb[7].mxu0  ;;  %6715 = vperm.xlu0 %7926, %v8735_v13  }
 0x12a   : > { %v7934_v3 = vpop.eup %7933  ;;  %7943 = vpow2.f32 %v7373_v60  ;;  %v8880_v9 = vadd.f32 %v1466_v2, %v8816_v28 }
 0x12b   : > { %v7936_v17 = vpop.eup %7935  ;;  %v481_v18 = vadd.f32 1.0, %v7934_v3  ;;  %v7380_v20 = vmul.f32 -1.442695, %v8877_v62 }
 0x12c   : > { %v480_v35 = vadd.f32 1.0, %v7936_v17  ;;  %v7379_v39 = vmul.f32 -1.442695, %v8880_v9  ;;  %v7655_v41 = vpop.f32.mrb[8].mxu0  ;;  %7924 = vset.pattern.permute.xlu1 %v8152_v22  ;;  %v8904_v17 = vpop.permute.xlu0 %5943 }
 0x12d   : > { %7945 = vrcp.f32 %v481_v18  ;;  %v8889_v42 = vadd.f32 %v7655_v41, %v8825_v31  ;;  %v1799_v44 = vpop.f32.mrb[9].mxu0  ;;  %6503 = vperm.xlu1 %7924, %v8636_v57   ;;  %6723 = vperm.xlu0 %7926, %v8742_v14  }
 0x12e   : > { %7947 = vrcp.f32 %v480_v35  ;;  %v8895_v49 = vadd.f32 %v1799_v44, %v8816_v28 }
 0x12f   : > { %v7938_v51 = vpop.eup %7937  ;;  %7949 = vpow2.f32 %v7380_v20  ;;  %v7386_v52 = vmul.f32 -1.442695, %v8889_v42 }
 0x130   : > { %v7940_v22 = vpop.eup %7939  ;;  %v816_v54 = vadd.f32 1.0, %v7938_v51  ;;  %7951 = vpow2.f32 %v7379_v39  ;;  %v7385_v58 = vmul.f32 -1.442695, %v8895_v49  ;;  %v7667_v60 = vpop.f32.mrb[10].mxu0 }
 0x131   : > { %v815_v61 = vadd.f32 1.0, %v7940_v22  ;;  %7953 = vpow2.f32 %v7386_v52  ;;  %v8901_v2 = vadd.f32 %v7667_v60, %v8825_v31  ;;  %v2132_v3 = vpop.f32.mrb[11].mxu0  ;;  %6507 = vperm.xlu1 %7924, %v8714_v11   ;;  %6731 = vperm.xlu0 %7926, %v8749_v15   ;;  %v8911_v39 = vpop.permute.xlu1 %5931 }
 0x132   : > { %7955 = vrcp.f32 %v816_v54  ;;  %v8907_v18 = vadd.f32 %v2132_v3, %v8816_v28  ;;  %v10795_v3 = vmov 7   ;;  %v8923_v1 = vpop.permute.xlu0 %5951 }
 0x133   : > { %v7942_v20 = vpop.eup %7941  ;;  %7957 = vrcp.f32 %v815_v61  ;;  %v7392_v35 = vmul.f32 -1.442695, %v8901_v2 }
 0x134   : > { %v7944_v41 = vpop.eup %7943  ;;  %v1149_v44 = vadd.f32 1.0, %v7942_v20  ;;  %7959 = vpow2.f32 %v7385_v58  ;;  %v7391_v51 = vmul.f32 -1.442695, %v8907_v18  ;;  %v7679_v52 = vpop.f32.mrb[12].mxu0 }
 0x135   : > { %v1148_v22 = vadd.f32 1.0, %v7944_v41  ;;  %7961 = vpow2.f32 %v7392_v35  ;;  %v8915_v54 = vadd.f32 %v7679_v52, %v8825_v31  ;;  %v2465_v60 = vpop.f32.mrb[13].mxu0  ;;  %6515 = vperm.xlu1 %7924, %v8709_v10   ;;  %7927 = vset.pattern.permute.xlu0 %v10795_v3  ;;  %v8931_v0 = vpop.permute.xlu1 %5939 }
 0x136   : > { %7963 = vrcp.f32 %v1149_v44  ;;  %v8919_v61 = vadd.f32 %v2465_v60, %v8816_v28  ;;  %6771 = vperm.xlu0 %7927, %v8624_v50  }
 0x137   : > { %v7946_v20 = vpop.eup %7945  ;;  %7965 = vrcp.f32 %v1148_v22  ;;  %v7398_v58 = vmul.f32 -1.442695, %v8915_v54 }
 0x138   : > { %v7948_v35 = vpop.eup %7947  ;;  %7967 = vpow2.f32 %v7391_v51  ;;  %v7397_v41 = vmul.f32 -1.442695, %v8919_v61  ;;  %v7691_v52 = vpop.f32.mrb[14].mxu0  ;;  %v487_v27 = vmul.f32 %v7946_v20, %v8838_v38 }
 0x139   : > { %v7950_v44 = vpop.eup %7949  ;;  %7969 = vpow2.f32 %v7398_v58  ;;  %v8928_v60 = vadd.f32 %v7691_v52, %v8825_v31  ;;  %v2798_v3 = vpop.f32.mrb[15].mxu0  ;;  %v486_v22 = vmul.f32 %v7948_v35, %v8842_v40  ;;  %6523 = vperm.xlu1 %7924, %v8721_v8  }
 0x13a   : > { %v7952_v34 = vpop.eup %7951  ;;  %v1482_v51 = vadd.f32 1.0, %v7950_v44  ;;  %7971 = vpow2.f32 %v7397_v41  ;;  %v8936_v36 = vadd.f32 %v2798_v3, %v8816_v28  ;;  %6783 = vperm.xlu0 %7927, %v8649_v63   ;;  %v8947_v20 = vpop.permute.xlu0 %5959 }
 0x13b   : > { %v7954_v26 = vpop.eup %7953  ;;  %v1481_v58 = vadd.f32 1.0, %v7952_v34  ;;  %v7404_v52 = vmul.f32 -1.442695, %v8928_v60  ;;  %7612 = vmatprep.mubr.msk.f32.mxu1 %vm488_vm9, %v486_v22 }
 0x13c   : > { %v7956_v40 = vpop.eup %7955  ;;  %7973 = vrcp.f32 %v1482_v51  ;;  %v1815_v35 = vadd.f32 1.0, %v7954_v26  ;;  %v7403_v25 = vmul.f32 -1.442695, %v8936_v36  ;;  %v7703_v32 = vpop.f32.mrb[16].mxu0  ;;  %7613 = vmatmul.mubr.msk.f32.vlgmr.msra.gmra.mrb[0].mxu1 %vm488_vm9, %v487_v27 }
 0x13d   : > { %v7958_v38 = vpop.eup %7957  ;;  %7975 = vrcp.f32 %v1481_v58  ;;  %v8944_v3 = vadd.f32 %v7703_v32, %v8825_v31  ;;  %v3131_v34 = vpop.f32.mrb[17].mxu0  ;;  %7802 = vmatpush3.bf16.msra.mxu1 %v8759_v19  ;;  %6531 = vperm.xlu1 %7924, %v8728_v12   ;;  %v822_v32 = vmul.f32 %v7956_v40, %v8851_v45 }
 0x13e   : > { %v7960_v41 = vpop.eup %7959  ;;  %v821_v26 = vmul.f32 %v7958_v38, %v8856_v48  ;;  %7977 = vrcp.f32 %v1815_v35  ;;  %v8952_v44 = vadd.f32 %v3131_v34, %v8816_v28  ;;  %7804 = vmatprep.subr.bf16.mxu1 %v8759_v19  ;;  %v8957_v58 = vpop.permute.xlu1 %5947  ;;  %6791 = vperm.xlu0 %7927, %v8662_v4  }
 0x13f   : > { %v7962_v27 = vpop.eup %7961  ;;  %v1814_v22 = vadd.f32 1.0, %v7960_v41  ;;  %7979 = vpow2.f32 %v7404_v52  ;;  %v7410_v51 = vmul.f32 -1.442695, %v8944_v3 }
 0x140   : > { %v7964_v30 = vpop.eup %7963  ;;  %v2148_v24 = vadd.f32 1.0, %v7962_v27  ;;  %7981 = vpow2.f32 %v7403_v25  ;;  %v7409_v48 = vmul.f32 -1.442695, %v8952_v44  ;;  %7624 = vmatprep.mubr.msk.f32.mxu1 %vm488_vm9, %v821_v26  ;;  %v7715_v35 = vpop.f32.mrb[18].mxu0 }
 0x141   : > { %v7966_v38 = vpop.eup %7965  ;;  %7983 = vrcp.f32 %v1814_v22  ;;  %v8963_v45 = vadd.f32 %v7715_v35, %v8825_v31  ;;  %7625 = vmatmul.mubr.msk.f32.vlgmr.msra.gmra.mrb[2].mxu1 %vm488_vm9, %v822_v32  ;;  %v3464_v52 = vpop.f32.mrb[19].mxu0  ;;  %6539 = vperm.xlu1 %7924, %v8735_v13   ;;  %v1155_v26 = vmul.f32 %v7964_v30, %v8863_v53 }
 0x142   : > { %v7968_v40 = vpop.eup %7967  ;;  %v1154_v34 = vmul.f32 %v7966_v38, %v8868_v56  ;;  %7985 = vrcp.f32 %v2148_v24  ;;  %v8969_v25 = vadd.f32 %v3464_v52, %v8816_v28  ;;  %7806 = vmatpush3.bf16.msra.mxu1 %v8759_v19  ;;  %v8974_v32 = vpop.permute.xlu0 %5967  ;;  %6799 = vperm.xlu0 %7927, %v8671_v16  }
 0x143   : > { %v7970_v41 = vpop.eup %7969  ;;  %v2147_v27 = vadd.f32 1.0, %v7968_v40  ;;  %7987 = vpow2.f32 %v7410_v51  ;;  %7808 = vmatprep.subr.bf16.mxu1 %v8759_v19  ;;  %10816 = vst [vmem:[#allocation16_spill] sm:$0xff] %v8974_v32  ;;  %v7416_v24 = vmul.f32 -1.442695, %v8963_v45  ;;  %v8984_v52 = vpop.permute.xlu1 %5955 }
 0x144   : > { %v7972_v22 = vpop.eup %7971  ;;  %v2481_v35 = vadd.f32 1.0, %v7970_v41  ;;  %7989 = vpow2.f32 %v7409_v48  ;;  %7636 = vmatprep.mubr.msk.f32.mxu1 %vm488_vm9, %v1154_v34  ;;  %v7727_v56 = vpop.f32.mrb[20].mxu0  ;;  %v7415_v30 = vmul.f32 -1.442695, %v8969_v25 }
 0x145   : > { %7991 = vrcp.f32 %v2147_v27  ;;  %v2480_v38 = vadd.f32 1.0, %v7972_v22  ;;  %v8981_v53 = vadd.f32 %v7727_v56, %v8825_v31  ;;  %7637 = vmatmul.mubr.msk.f32.vlgmr.msra.gmra.mrb[4].mxu1 %vm488_vm9, %v1155_v26  ;;  %v3797_v51 = vpop.f32.mrb[21].mxu0  ;;  %6547 = vperm.xlu1 %7924, %v8742_v14  }
 0x146   : > { %v7974_v48 = vpop.eup %7973  ;;  %7993 = vrcp.f32 %v2481_v35  ;;  %v8988_v40 = vadd.f32 %v3797_v51, %v8816_v28  ;;  %7810 = vmatpush3.bf16.msra.mxu1 %v8759_v19  ;;  %6807 = vperm.xlu0 %7927, %v8678_v5   ;;  %v9000_v23 = vpop.permute.xlu0 %6071 }
 0x147   : > { %v7976_v34 = vpop.eup %7975  ;;  %7995 = vrcp.f32 %v2480_v38  ;;  %v7422_v41 = vmul.f32 -1.442695, %v8981_v53  ;;  %7812 = vmatprep.subr.bf16.mxu1 %v8759_v19  ;;  %v1488_v51 = vmul.f32 %v7974_v48, %v8877_v62 }
 0x148   : > { %v7978_v26 = vpop.eup %7977  ;;  %v1487_v27 = vmul.f32 %v7976_v34, %v8880_v9  ;;  %7997 = vpow2.f32 %v7416_v24  ;;  %v7421_v22 = vmul.f32 -1.442695, %v8988_v40  ;;  %v7739_v35 = vpop.f32.mrb[22].mxu0 }
 0x149   : > { %v7980_v56 = vpop.eup %7979  ;;  %7999 = vpow2.f32 %v7415_v30  ;;  %v8998_v29 = vadd.f32 %v7739_v35, %v8825_v31  ;;  %v4130_v38 = vpop.f32.mrb[23].mxu0  ;;  %6555 = vperm.xlu1 %7924, %v8749_v15  }
 0x14a   : > { %v7982_v21 = vpop.eup %7981  ;;  %v2814_v32 = vadd.f32 1.0, %v7980_v56  ;;  %8001 = vpow2.f32 %v7422_v41  ;;  %7648 = vmatprep.mubr.msk.f32.mxu1 %vm488_vm9, %v1487_v27  ;;  %v9005_v9 = vadd.f32 %v4130_v38, %v8816_v28  ;;  %v9009_v30 = vpop.permute.xlu1 %5963  ;;  %6815 = vperm.xlu0 %7927, %v8685_v37  }
 0x14b   : > { %v7984_v24 = vpop.eup %7983  ;;  %v2813_v34 = vadd.f32 1.0, %v7982_v21  ;;  %8003 = vpow2.f32 %v7421_v22  ;;  %v7428_v62 = vmul.f32 -1.442695, %v8998_v29  ;;  %7649 = vmatmul.mubr.msk.f32.vlgmr.msra.gmra.mrb[6].mxu1 %vm488_vm9, %v1488_v51  ;;  %v1821_v21 = vmul.f32 %v7978_v26, %v8889_v42 }
 0x14c   : > { %v7986_v15 = vpop.eup %7985  ;;  %v1820_v48 = vmul.f32 %v7984_v24, %v8895_v49  ;;  %8005 = vrcp.f32 %v2814_v32  ;;  %v7427_v41 = vmul.f32 -1.442695, %v9005_v9  ;;  %7814 = vmatpush3.bf16.msra.mxu1 %v8759_v19  ;;  %v7751_v27 = vpop.f32.mrb[24].mxu0  ;;  %v10817_v51 = vmov 6  }
 0x14d   : > { %v7988_v35 = vpop.eup %7987  ;;  %8007 = vrcp.f32 %v2813_v34  ;;  %v9017_v22 = vadd.f32 %v7751_v27, %v8825_v31  ;;  %7816 = vmatprep.subr.bf16.mxu1 %v8759_v19  ;;  %v4463_v56 = vpop.f32.mrb[25].mxu0  ;;  %7925 = vset.pattern.permute.xlu1 %v10817_v51 }
 0x14e   : > { %v7990_v38 = vpop.eup %7989  ;;  %v3147_v49 = vadd.f32 1.0, %v7988_v35  ;;  %8009 = vpow2.f32 %v7428_v62  ;;  %7660 = vmatprep.mubr.msk.f32.mxu1 %vm488_vm9, %v1820_v48  ;;  %v9023_v32 = vadd.f32 %v4463_v56, %v8816_v28  ;;  %6675 = vperm.xlu1 %7925, %v8624_v50   ;;  %v9028_v34 = vpop.permute.xlu0 %6083 }
 0x14f   : > { %v7992_v42 = vpop.eup %7991  ;;  %v3146_v26 = vadd.f32 1.0, %v7990_v38  ;;  %8011 = vpow2.f32 %v7427_v41  ;;  %v7434_v24 = vmul.f32 -1.442695, %v9017_v22  ;;  %7661 = vmatmul.mubr.msk.f32.vlgmr.msra.gmra.mrb[8].mxu1 %vm488_vm9, %v1821_v21  ;;  %6823 = vperm.xlu0 %7927, %v8692_v6   ;;  %v2154_v41 = vmul.f32 %v7986_v15, %v8901_v2  ;;  %v9039_v6 = vpop.permute.xlu1 %6067 }
 0x150   : > { %v7994_v27 = vpop.eup %7993  ;;  %v2153_v62 = vmul.f32 %v7992_v42, %v8907_v18  ;;  %8013 = vrcp.f32 %v3147_v49  ;;  %v7433_v48 = vmul.f32 -1.442695, %v9023_v32  ;;  %7818 = vmatpush3.bf16.msra.mxu1 %v8759_v19  ;;  %v7763_v50 = vpop.f32.mrb[26].mxu0 }
 0x151   : > { %v7996_v35 = vpop.eup %7995  ;;  %8015 = vrcp.f32 %v3146_v26  ;;  %v9036_v56 = vadd.f32 %v7763_v50, %v8825_v31  ;;  %7820 = vmatprep.subr.bf16.mxu1 %v8759_v19  ;;  %v4796_v21 = vpop.f32.mrb[27].mxu0  ;;  %v2487_v42 = vmul.f32 %v7994_v27, %v8915_v54 }
 0x152   : > { %v7998_v51 = vpop.eup %7997  ;;  %v2486_v18 = vmul.f32 %v7996_v35, %v8919_v61  ;;  %8017 = vpow2.f32 %v7434_v24  ;;  %7672 = vmatprep.mubr.msk.f32.mxu1 %vm488_vm9, %v2153_v62  ;;  %v9044_v38 = vadd.f32 %v4796_v21, %v8816_v28  ;;  %6683 = vperm.xlu1 %7925, %v8714_v11   ;;  %v9057_v50 = vpop.permute.xlu0 %6091 }
 0x153   : > { %v8000_v2 = vpop.eup %7999  ;;  %v3480_v15 = vadd.f32 1.0, %v7998_v51  ;;  %8019 = vpow2.f32 %v7433_v48  ;;  %7673 = vmatmul.mubr.msk.f32.vlgmr.msra.gmra.mrb[10].mxu1 %vm488_vm9, %v2154_v41  ;;  %6831 = vperm.xlu0 %7927, %v8699_v7   ;;  %v7440_v11 = vmul.f32 -1.442695, %v9036_v56  ;;  %v9065_v51 = vpop.permute.xlu1 %6075 }
 0x154   : > { %v8002_v49 = vpop.eup %8001  ;;  %v3479_v26 = vadd.f32 1.0, %v8000_v2  ;;  %7822 = vmatpush3.bf16.msra.mxu1 %v8759_v19  ;;  %7684 = vmatprep.mubr.msk.f32.mxu1 %vm488_vm9, %v2486_v18  ;;  %v7775_v61 = vpop.f32.mrb[28].mxu0  ;;  %v7439_v35 = vmul.f32 -1.442695, %v9044_v38  ;;  %v8155_v18 = vmov 8  }
 0x155   : > { %v8004_v24 = vpop.eup %8003  ;;  %8021 = vrcp.f32 %v3480_v15  ;;  %v3813_v62 = vadd.f32 1.0, %v8002_v49  ;;  %v9054_v48 = vadd.f32 %v7775_v61, %v8825_v31  ;;  %7824 = vmatprep.subr.bf16.mxu1 %v8759_v19  ;;  %v5129_v7 = vpop.f32.mrb[29].mxu0 }
 0x156   : > { %v8006_v54 = vpop.eup %8005  ;;  %8023 = vrcp.f32 %v3479_v26  ;;  %v3812_v27 = vadd.f32 1.0, %v8004_v24  ;;  %v9061_v41 = vadd.f32 %v5129_v7, %v8816_v28  ;;  %6687 = vperm.xlu1 %7925, %v8649_v63  }
 0x157   : > { %v8008_v21 = vpop.eup %8007  ;;  %8025 = vrcp.f32 %v3813_v62  ;;  %7685 = vmatmul.mubr.msk.f32.vlgmr.msra.gmra.mrb[12].mxu1 %vm488_vm9, %v2487_v42  ;;  %7930 = vset.pattern.permute.xlu0 %v8155_v18  ;;  %v2820_v15 = vmul.f32 %v8006_v54, %v8928_v60  ;;  %v7446_v42 = vmul.f32 -1.442695, %v9054_v48 }
 0x158   : > { %v8010_v2 = vpop.eup %8009  ;;  %v2819_v49 = vmul.f32 %v8008_v21, %v8936_v36  ;;  %8027 = vrcp.f32 %v3812_v27  ;;  %7826 = vmatpush3.bf16.msra.mxu1 %v8759_v19  ;;  %v7787_v26 = vpop.f32.mrb[30].mxu0  ;;  %6935 = vperm.xlu0 %7930, %v8636_v57   ;;  %v7445_v36 = vmul.f32 -1.442695, %v9061_v41 }
 0x159   : > { %v8012_v63 = vpop.eup %8011  ;;  %v4146_v61 = vadd.f32 1.0, %v8010_v2  ;;  %8029 = vpow2.f32 %v7440_v11  ;;  %v9074_v24 = vadd.f32 %v7787_v26, %v8825_v31  ;;  %7828 = vmatprep.subr.bf16.mxu1 %v8759_v19  ;;  %v5462_v62 = vpop.f32.mrb[31].mxu0 }
 0x15a   : > { %v8014_v60 = vpop.eup %8013  ;;  %v4145_v7 = vadd.f32 1.0, %v8012_v63  ;;  %8031 = vpow2.f32 %v7439_v35  ;;  %7696 = vmatprep.mubr.msk.f32.mxu1 %vm488_vm9, %v2819_v49  ;;  %v9080_v57 = vadd.f32 %v5462_v62, %v8816_v28  ;;  %6695 = vperm.xlu1 %7925, %v8662_v4   ;;  %v9084_v31 = vpop.permute.xlu0 %6099 }
 0x15b   : > { %v8016_v11 = vpop.eup %8015  ;;  %8033 = vrcp.f32 %v4146_v61  ;;  %7697 = vmatmul.mubr.msk.f32.vlgmr.msra.gmra.mrb[14].mxu1 %vm488_vm9, %v2820_v15  ;;  %v3153_v28 = vmul.f32 %v8014_v60, %v8944_v3  ;;  %v7452_v4 = vmul.f32 -1.442695, %v9074_v24  ;;  %v9092_v2 = vpop.permute.xlu1 %6079 }
 0x15c   : > { %v8018_v54 = vpop.eup %8017  ;;  %v3152_v27 = vmul.f32 %v8016_v11, %v8952_v44  ;;  %8035 = vrcp.f32 %v4145_v7  ;;  %7830 = vmatpush3.bf16.msra.mxu1 %v8759_v19  ;;  %6947 = vperm.xlu0 %7930, %v8709_v10   ;;  %v7451_v44 = vmul.f32 -1.442695, %v9080_v57 }
 0x15d   : > { %v8020_v35 = vpop.eup %8019  ;;  %v4479_v21 = vadd.f32 1.0, %v8018_v54  ;;  %8037 = vpow2.f32 %v7446_v42  ;;  %7832 = vmatprep.subr.bf16.mxu1 %v8759_v19  ;;  %v10818_v42 = vmov 0.0  }
 0x15e   : > { %v4478_v15 = vadd.f32 1.0, %v8020_v35  ;;  %8039 = vpow2.f32 %v7445_v36  ;;  %7708 = vmatprep.mubr.msk.f32.mxu1 %vm488_vm9, %v3152_v27  ;;  %6703 = vperm.xlu1 %7925, %v8671_v16   ;;  %v9102_v63 = vpop.permute.xlu0 %6107  ;;  %308 = vst.msk [vmem:[#allocation2 + $0x110] sm:$0xff] %vm272_vm10, %v10818_v42  ;;  %312 = vst.msk [vmem:[#allocation2 + $0x130] sm:$0xff] %vm272_vm10, %v10818_v42 }
 0x15f   : > { %v8022_v10 = vpop.eup %8021  ;;  %8041 = vrcp.f32 %v4479_v21  ;;  %7709 = vmatmul.mubr.msk.f32.vlgmr.msra.gmra.mrb[16].mxu1 %vm488_vm9, %v3153_v28  ;;  %316 = vst.msk [vmem:[#allocation2 + $0x150] sm:$0xff] %vm272_vm10, %v10818_v42  ;;  %320 = vst.msk [vmem:[#allocation2 + $0x170] sm:$0xff] %vm272_vm10, %v10818_v42 }
 0x160   : > { %v8024_v3 = vpop.eup %8023  ;;  %8043 = vrcp.f32 %v4478_v15  ;;  %7834 = vmatpush3.bf16.msra.mxu1 %v8759_v19  ;;  %6955 = vperm.xlu0 %7930, %v8721_v8   ;;  %v3486_v61 = vmul.f32 %v8022_v10, %v8963_v45  ;;  %324 = vst.msk [vmem:[#allocation2 + $0x190] sm:$0xff] %vm272_vm10, %v10818_v42  ;;  %328 = vst.msk [vmem:[#allocation2 + $0x1b0] sm:$0xff] %vm272_vm10, %v10818_v42  ;;  %v9172_v45 = vpop.permute.xlu1 %6087 }
 0x161   : > { %v8026_v49 = vpop.eup %8025  ;;  %v3485_v26 = vmul.f32 %v8024_v3, %v8969_v25  ;;  %8045 = vpow2.f32 %v7452_v4  ;;  %7836 = vmatprep.subr.bf16.mxu1 %v8759_v19  ;;  %332 = vst.msk [vmem:[#allocation2 + $0x1d0] sm:$0xff] %vm272_vm10, %v10818_v42  ;;  %336 = vst.msk [vmem:[#allocation2 + $0x1f0] sm:$0xff] %vm272_vm10, %v10818_v42  ;;  %v9195_v4 = vld [vmem:[%s10790_s4 + $0xd] ss:$0 sm:$0xff] }
 0x162   : > { %v8028_v16 = vpop.eup %8027  ;;  %8047 = vpow2.f32 %v7451_v44  ;;  %6711 = vperm.xlu1 %7925, %v8678_v5   ;;  %273 = vst.msk [vmem:[#allocation2] sm:$0xff] %vm272_vm10, %v10818_v42  ;;  %276 = vst.msk [vmem:[#allocation2 + $0x10] sm:$0xff] %vm272_vm10, %v10818_v42  ;;  %v3819_v11 = vmul.f32 %v8026_v49, %v8981_v53  ;;  %v9182_v27 = vpop.permute.xlu0 %6115 }
 0x163   : > { %278 = vst.msk [vmem:[#allocation2 + $0x20] sm:$0xff] %vm272_vm10, %v10818_v42  ;;  %280 = vst.msk [vmem:[#allocation2 + $0x30] sm:$0xff] %vm272_vm10, %v10818_v42  ;;  %v8030_v5 = vpop.eup %8029  ;;  %v3818_v8 = vmul.f32 %v8028_v16, %v8988_v40  ;;  %7720 = vmatprep.mubr.msk.f32.mxu1 %vm488_vm9, %v3485_v26 }
 0x164   : > { %282 = vst.msk [vmem:[#allocation2 + $0x40] sm:$0xff] %vm272_vm10, %v10818_v42  ;;  %284 = vst.msk [vmem:[#allocation2 + $0x50] sm:$0xff] %vm272_vm10, %v10818_v42  ;;  %v8032_v25 = vpop.eup %8031  ;;  %v4812_v62 = vadd.f32 1.0, %v8030_v5  ;;  %7721 = vmatmul.mubr.msk.f32.vlgmr.msra.gmra.mrb[18].mxu1 %vm488_vm9, %v3486_v61  ;;  %6963 = vperm.xlu0 %7930, %v8728_v12   ;;  %v9188_v53 = vpop.permute.xlu1 %6095 }
 0x165   : > { %286 = vst.msk [vmem:[#allocation2 + $0x60] sm:$0xff] %vm272_vm10, %v10818_v42  ;;  %288 = vst.msk [vmem:[#allocation2 + $0x70] sm:$0xff] %vm272_vm10, %v10818_v42  ;;  %v8034_v60 = vpop.eup %8033  ;;  %v4811_v7 = vadd.f32 1.0, %v8032_v25  ;;  %7838 = vmatpush3.bf16.msra.mxu1 %v8759_v19  ;;  %7732 = vmatprep.mubr.msk.f32.mxu1 %vm488_vm9, %v3818_v8  ;;  %v8064_v25 = vld [vmem:[%s10790_s4 + $0x1] ss:$0 sm:$0xff] }
 0x166   : > { %290 = vst.msk [vmem:[#allocation2 + $0x80] sm:$0xff] %vm272_vm10, %v10818_v42  ;;  %292 = vst.msk [vmem:[#allocation2 + $0x90] sm:$0xff] %vm272_vm10, %v10818_v42  ;;  %v8036_v36 = vpop.eup %8035  ;;  %8049 = vrcp.f32 %v4812_v62  ;;  %7840 = vmatprep.subr.bf16.mxu1 %v8759_v19  ;;  %6719 = vperm.xlu1 %7925, %v8685_v37   ;;  %v9203_v3 = vpop.permute.xlu0 %6123 }
 0x167   : > { %294 = vst.msk [vmem:[#allocation2 + $0xa0] sm:$0xff] %vm272_vm10, %v10818_v42  ;;  %296 = vst.msk [vmem:[#allocation2 + $0xb0] sm:$0xff] %vm272_vm10, %v10818_v42  ;;  %v8038_v40 = vpop.eup %8037  ;;  %v4151_v54 = vmul.f32 %v8036_v36, %v9005_v9  ;;  %8051 = vrcp.f32 %v4811_v7  ;;  %v4152_v9 = vmul.f32 %v8034_v60, %v8998_v29  ;;  %v10822_v60 = vmov 0  }
 0x168   : > { %298 = vst.msk [vmem:[#allocation2 + $0xc0] sm:$0xff] %vm272_vm10, %v10818_v42  ;;  %300 = vst.msk [vmem:[#allocation2 + $0xd0] sm:$0xff] %vm272_vm10, %v10818_v42  ;;  %v8040_v12 = vpop.eup %8039  ;;  %v5145_v35 = vadd.f32 1.0, %v8038_v40  ;;  %7733 = vmatmul.mubr.msk.f32.vlgmr.msra.gmra.mrb[20].mxu1 %vm488_vm9, %v3819_v11  ;;  %6971 = vperm.xlu0 %7930, %v8735_v13  }
 0x169   : > { %302 = vst.msk [vmem:[#allocation2 + $0xe0] sm:$0xff] %vm272_vm10, %v10818_v42  ;;  %304 = vst.msk [vmem:[#allocation2 + $0xf0] sm:$0xff] %vm272_vm10, %v10818_v42  ;;  %v8042_v28 = vpop.eup %8041  ;;  %v5144_v21 = vadd.f32 1.0, %v8040_v12  ;;  %7842 = vmatpush3.bf16.msra.mxu1 %v8759_v19  ;;  %7744 = vmatprep.mubr.msk.f32.mxu1 %vm488_vm9, %v4151_v54 }
 0x16a   : > { %306 = vst.msk [vmem:[#allocation2 + $0x100] sm:$0xff] %vm272_vm10, %v10818_v42  ;;  %310 = vst.msk [vmem:[#allocation2 + $0x120] sm:$0xff] %vm272_vm10, %v10818_v42  ;;  %v8044_v37 = vpop.eup %8043  ;;  %8053 = vrcp.f32 %v5145_v35  ;;  %7844 = vmatprep.subr.bf16.mxu1 %v8759_v19  ;;  %6727 = vperm.xlu1 %7925, %v9195_v4   ;;  %v4485_v49 = vmul.f32 %v8042_v28, %v9017_v22  ;;  %v8063_v22 = vld [vmem:[%s10790_s4 + $0xe] ss:$0 sm:$0xff]  ;;  %v9224_v8 = vpop.permute.xlu0 %6243  ;;  %v8066_v35 = vld [vmem:[%s10790_s4 + $0x4] ss:$0 sm:$0xff] }
 0x16b   : > { %314 = vst.msk [vmem:[#allocation2 + $0x140] sm:$0xff] %vm272_vm10, %v10818_v42  ;;  %318 = vst.msk [vmem:[#allocation2 + $0x160] sm:$0xff] %vm272_vm10, %v10818_v42  ;;  %v8046_v13 = vpop.eup %8045  ;;  %v4484_v15 = vmul.f32 %v8044_v37, %v9023_v32  ;;  %8055 = vrcp.f32 %v5144_v21  ;;  %v9210_v32 = vld [vmem:[%s10790_s4 + $0xf] ss:$0 sm:$0xff]  ;;  %v8067_v21 = vld [vmem:[%s10790_s4 + $0x6] ss:$0 sm:$0xff] }
 0x16c   : > { %322 = vst.msk [vmem:[#allocation2 + $0x180] sm:$0xff] %vm272_vm10, %v10818_v42  ;;  %326 = vst.msk [vmem:[#allocation2 + $0x1a0] sm:$0xff] %vm272_vm10, %v10818_v42  ;;  %v8048_v44 = vpop.eup %8047  ;;  %v5478_v10 = vadd.f32 1.0, %v8046_v13  ;;  %7745 = vmatmul.mubr.msk.f32.vlgmr.msra.gmra.mrb[22].mxu1 %vm488_vm9, %v4152_v9  ;;  %6979 = vperm.xlu0 %7930, %v8742_v14   ;;  %v9213_v14 = vpop.permute.xlu1 %6103  ;;  %v8069_v9 = vld [vmem:[%s10790_s4 + $0xa] ss:$0 sm:$0xff] }
 0x16d   : > { %330 = vst.msk [vmem:[#allocation2 + $0x1c0] sm:$0xff] %vm272_vm10, %v10818_v42  ;;  %334 = vst.msk [vmem:[#allocation2 + $0x1e0] sm:$0xff] %vm272_vm10, %v10818_v42  ;;  %v5477_v29 = vadd.f32 1.0, %v8048_v44  ;;  %7846 = vmatpush3.bf16.msra.mxu1 %v8759_v19  ;;  %7756 = vmatprep.mubr.msk.f32.mxu1 %vm488_vm9, %v4484_v15  ;;  %v10820_v42 = vmov 7   ;;  %v8070_v15 = vld [vmem:[%s10790_s4 + $0xc] ss:$0 sm:$0xff] }
 0x16e   : > { %10819 = vst [vmem:[#allocation17_spill] sm:$0xff] %v9188_v53  ;;  %8057 = vrcp.f32 %v5478_v10  ;;  %7848 = vmatprep.subr.bf16.mxu1 %v8759_v19  ;;  %6735 = vperm.xlu1 %7925, %v9210_v32   ;;  %10821 = vst [vmem:[#allocation18_spill] sm:$0xff] %v9224_v8  ;;  %v9243_v12 = vpop.permute.xlu0 %6255 }
 0x16f   : > { %8059 = vrcp.f32 %v5477_v29  ;;  %10823 = vst [vmem:[#allocation19_spill] sm:$0xff] %v9243_v12  ;;  %v7472_v29 = vld [vmem:[%s10791_s5 + $0x1] ss:$0 sm:$0xff] }
 0x170   : > { %v8050_v26 = vpop.eup %8049  ;;  %7757 = vmatmul.mubr.msk.f32.vlgmr.msra.gmra.mrb[24].mxu1 %vm488_vm9, %v4485_v49  ;;  %6987 = vperm.xlu0 %7930, %v8063_v22  }
 0x171   : > { %v8052_v16 = vpop.eup %8051  ;;  %7850 = vmatpush3.bf16.msra.mxu1 %v8759_v19  ;;  %v4818_v5 = vmul.f32 %v8050_v26, %v9036_v56  ;;  %v8065_v56 = vld [vmem:[%s10790_s4 + $0x2] ss:$0 sm:$0xff]  ;;  %v7475_v26 = vld [vmem:[%s10791_s5 + $0x4] ss:$0 sm:$0xff] }
 0x172   : > { %v4817_v61 = vmul.f32 %v8052_v16, %v9044_v38  ;;  %7852 = vmatprep.subr.bf16.mxu1 %v8759_v19  ;;  %7928 = vset.pattern.permute.xlu1 %v10820_v42  ;;  %v9232_v38 = vpop.permute.xlu1 %6111  ;;  %v9258_v37 = vpop.permute.xlu0 %6263 }
 0x173   : > { %6775 = vperm.xlu1 %7928, %v8064_v25   ;;  %10824 = vst [vmem:[#allocation20_spill] sm:$0xff] %v9258_v37  ;;  %v8072_v25 = vld [vmem:[%s10790_s4 + $0x3] ss:$0 sm:$0xff] }
 0x174   : > { %v8054_v62 = vpop.eup %8053  ;;  %7768 = vmatprep.mubr.msk.f32.mxu1 %vm488_vm9, %v4817_v61  ;;  %7931 = vset.pattern.permute.xlu0 %v10822_v60  ;;  %v8071_v61 = vld [vmem:[%s10790_s4] ss:$0 sm:$0xff] }
 0x175   : > { %v8056_v7 = vpop.eup %8055  ;;  %7769 = vmatmul.mubr.msk.f32.vlgmr.msra.gmra.mrb[26].mxu1 %vm488_vm9, %v4818_v5  ;;  %5819 = vperm.xlu0 %7931, %v8065_v56   ;;  %v5151_v11 = vmul.f32 %v8054_v62, %v9054_v48 }
 0x176   : > { %v5150_v36 = vmul.f32 %v8056_v7, %v9061_v41  ;;  %7854 = vmatpush3.bf16.msra.mxu1 %v8759_v19  ;;  %v9251_v28 = vpop.permute.xlu1 %6119  ;;  %v7481_v7 = vld [vmem:[%s10791_s5 + $0xa] ss:$0 sm:$0xff] }
 0x177   : > { %7856 = vmatprep.subr.bf16.mxu1 %v8759_v19  ;;  %6779 = vperm.xlu1 %7928, %v8065_v56  }
 0x178   : > { %v8058_v40 = vpop.eup %8057  ;;  %7780 = vmatprep.mubr.msk.f32.mxu1 %vm488_vm9, %v5150_v36  ;;  %v8073_v36 = vld [vmem:[%s10790_s4 + $0x5] ss:$0 sm:$0xff] }
 0x179   : > { %v8060_v54 = vpop.eup %8059  ;;  %7781 = vmatmul.mubr.msk.f32.vlgmr.msra.gmra.mrb[28].mxu1 %vm488_vm9, %v5151_v11  ;;  %5827 = vperm.xlu0 %7931, %v8066_v35   ;;  %v5484_v48 = vmul.f32 %v8058_v40, %v9074_v24  ;;  %v9265_v24 = vpop.permute.xlu0 %6271  ;;  %v7483_v11 = vld [vmem:[%s10791_s5 + $0xc] ss:$0 sm:$0xff] }
 0x17a   : > { %v5483_v41 = vmul.f32 %v8060_v54, %v9080_v57  ;;  %7858 = vmatpush3.bf16.msra.mxu1 %v8759_v19  ;;  %v9260_v57 = vpop.permute.xlu1 %6127  ;;  %v8068_v19 = vld [vmem:[%s10790_s4 + $0x8] ss:$0 sm:$0xff]  ;;  %10825 = vst [vmem:[#allocation21_spill] sm:$0xff] %v9265_v24  ;;  %v8074_v54 = vld [vmem:[%s10790_s4 + $0x7] ss:$0 sm:$0xff] }
 0x17b   : > { %6787 = vperm.xlu1 %7928, %v8066_v35  }
 0x17c   : > { %7792 = vmatprep.mubr.msk.f32.mxu1 %vm488_vm9, %v5483_v41  ;;  %v7485_v41 = vld [vmem:[%s10791_s5 + $0xe] ss:$0 sm:$0xff] }
 0x17d   : > { %7793 = vmatmul.mubr.msk.f32.vlgmr.msra.gmra.mrb[30].mxu1 %vm488_vm9, %v5484_v48  ;;  %5835 = vperm.xlu0 %7931, %v8067_v21   ;;  %v9275_v44 = vpop.permute.xlu0 %6279  ;;  %v8075_v48 = vld [vmem:[%s10790_s4 + $0x9] ss:$0 sm:$0xff] }
 0x17e   : > { %v9270_v13 = vpop.permute.xlu1 %6247  ;;  %10827 = vst [vmem:[#allocation23_spill] sm:$0xff] %v9275_v44 }
 0x17f   : > { %6795 = vperm.xlu1 %7928, %v8067_v21   ;;  %10826 = vst [vmem:[#allocation22_spill] sm:$0xff] %v9270_v13 }
 0x181   : > { %5843 = vperm.xlu0 %7931, %v8068_v19   ;;  %v9282_v49 = vpop.permute.xlu0 %6287 }
 0x182   : > { %v9277_v10 = vpop.permute.xlu1 %6251  ;;  %10829 = vst [vmem:[#allocation25_spill] sm:$0xff] %v9282_v49 }
 0x183   : > { %6803 = vperm.xlu1 %7928, %v8068_v19   ;;  %10828 = vst [vmem:[#allocation24_spill] sm:$0xff] %v9277_v10 }
 0x185   : > { %5851 = vperm.xlu0 %7931, %v8069_v9   ;;  %v9296_v42 = vpop.permute.xlu0 %6295 }
 0x186   : > { %v9287_v16 = vpop.permute.xlu1 %6259  ;;  %10831 = vst [vmem:[#allocation27_spill] sm:$0xff] %v9296_v42 }
 0x187   : > { %6811 = vperm.xlu1 %7928, %v8069_v9   ;;  %10830 = vst [vmem:[#allocation26_spill] sm:$0xff] %v9287_v16  ;;  %v8076_v9 = vld [vmem:[%s10790_s4 + $0xb] ss:$0 sm:$0xff]  ;;  %v8156_v16 = vmov 1966171168  }
 0x188   : > { %v574_v13 = vunpack.c.l.s4 %v8156_v16 }
 0x189   : > { %5859 = vperm.xlu0 %7931, %v8070_v15   ;;  %v9306_v62 = vpop.permute.xlu0 %6303 }
 0x18a   : > { %v9298_v5 = vpop.permute.xlu1 %6267  ;;  %10833 = vst [vmem:[#allocation29_spill] sm:$0xff] %v9306_v62  ;;  %v575_v44 = vunpack.c.0.s8 %v574_v13 }
 0x18b   : > { %6819 = vperm.xlu1 %7928, %v8070_v15   ;;  %10832 = vst [vmem:[#allocation28_spill] sm:$0xff] %v9298_v5 }
 0x18d   : > { %5867 = vperm.xlu0 %7931, %v8063_v22   ;;  %v9319_v40 = vpop.permute.xlu0 %6343 }
 0x18e   : > { %10835 = vst [vmem:[#allocation31_spill] sm:$0xff] %v9319_v40 }
 0x18f   : > { %6827 = vperm.xlu1 %7928, %v8063_v22   ;;  %v7477_v22 = vld [vmem:[%s10791_s5 + $0x6] ss:$0 sm:$0xff] }
 0x191   : > { %7191 = vperm.xlu0 %7931, %v7472_v29   ;;  %v9332_v21 = vpop.permute.xlu0 %6355  ;;  %v7471_v29 = vld [vmem:[%s10791_s5] ss:$0 sm:$0xff] }
 0x192   : > { %10837 = vst [vmem:[#allocation33_spill] sm:$0xff] %v9332_v21 }
 0x193   : > { %7929 = vset.pattern.permute.xlu1 %v8155_v18  ;;  %v7479_v18 = vld [vmem:[%s10791_s5 + $0x8] ss:$0 sm:$0xff] }
 0x194   : > { %6931 = vperm.xlu1 %7929, %v8071_v61   ;;  %v7473_v61 = vld [vmem:[%s10791_s5 + $0x2] ss:$0 sm:$0xff] }
 0x195   : > { %7203 = vperm.xlu0 %7931, %v7475_v26  }
 0x198   : > { %6939 = vperm.xlu1 %7929, %v8065_v56   ;;  %v9311_v56 = vpop.permute.xlu1 %6275 }
 0x199   : > { %7211 = vperm.xlu0 %7931, %v7477_v22   ;;  %10834 = vst [vmem:[#allocation30_spill] sm:$0xff] %v9311_v56 }
 0x19c   : > { %6943 = vperm.xlu1 %7929, %v8072_v25   ;;  %v9324_v35 = vpop.permute.xlu1 %6283  ;;  %v7478_v25 = vld [vmem:[%s10791_s5 + $0x7] ss:$0 sm:$0xff] }
 0x19d   : > { %7219 = vperm.xlu0 %7931, %v7479_v18   ;;  %10836 = vst [vmem:[#allocation32_spill] sm:$0xff] %v9324_v35 }
 0x1a0   : > { %6951 = vperm.xlu1 %7929, %v8073_v36   ;;  %v9334_v19 = vpop.permute.xlu1 %6291  ;;  %v7480_v36 = vld [vmem:[%s10791_s5 + $0x9] ss:$0 sm:$0xff] }
 0x1a1   : > { %7227 = vperm.xlu0 %7931, %v7481_v7   ;;  %10838 = vst [vmem:[#allocation34_spill] sm:$0xff] %v9334_v19 }
 0x1a4   : > { %6959 = vperm.xlu1 %7929, %v8074_v54   ;;  %v9340_v15 = vpop.permute.xlu1 %6299  ;;  %v7482_v54 = vld [vmem:[%s10791_s5 + $0xb] ss:$0 sm:$0xff] }
 0x1a5   : > { %7235 = vperm.xlu0 %7931, %v7483_v11   ;;  %10839 = vst [vmem:[#allocation35_spill] sm:$0xff] %v9340_v15 }
 0x1a8   : > { %6967 = vperm.xlu1 %7929, %v8075_v48   ;;  %v9346_v26 = vpop.permute.xlu1 %6339 }
 0x1a9   : > { %7243 = vperm.xlu0 %7931, %v7485_v41  }
 0x1ac   : > { %6975 = vperm.xlu1 %7929, %v8076_v9   ;;  %v9352_v22 = vpop.permute.xlu1 %6347  ;;  %v7484_v9 = vld [vmem:[%s10791_s5 + $0xd] ss:$0 sm:$0xff] }
 0x1ad   : > { %10840 = vst [vmem:[#allocation36_spill] sm:$0xff] %v9352_v22 }
 0x1b0   : > { %6983 = vperm.xlu1 %7929, %v9195_v4   ;;  %v7474_v4 = vld [vmem:[%s10791_s5 + $0x3] ss:$0 sm:$0xff]  ;;  %v9360_v18 = vpop.permute.xlu1 %6351 }
 0x1b1   : > { %10841 = vst [vmem:[#allocation37_spill] sm:$0xff] %v9360_v18 }
 0x1b4   : > { %6991 = vperm.xlu1 %7929, %v9210_v32   ;;  %v7476_v32 = vld [vmem:[%s10791_s5 + $0x5] ss:$0 sm:$0xff]  ;;  %v9367_v7 = vpop.permute.xlu1 %6359 }
 0x1b5   : > { %10843 = vst [vmem:[#allocation39_spill] sm:$0xff] %v9367_v7 }
 0x1b8   : > { %7932 = vset.pattern.permute.xlu1 %v10822_v60  ;;  %v9362_v60 = vpop.permute.xlu0 %6363  ;;  %v9377_v41 = vpop.permute.xlu1 %6367 }
 0x1b9   : > { %7187 = vperm.xlu1 %7932, %v7471_v29   ;;  %10842 = vst [vmem:[#allocation38_spill] sm:$0xff] %v9362_v60  ;;  %10844 = vst [vmem:[#allocation40_spill] sm:$0xff] %v9377_v41  ;;  %v576_v41 = vlaneseq }
 0x1bb   : > { %v577_v35 = vshrl.u32 %v576_v41, 7 }
 0x1bc   : > { %v9372_v11 = vpop.permute.xlu0 %6371  ;;  %v9384_v29 = vpop.permute.xlu1 %6375 }
 0x1bd   : > { %7195 = vperm.xlu1 %7932, %v7473_v61  }
 0x1c0   : > { %v9379_v48 = vpop.permute.xlu0 %6379 }
 0x1c1   : > { %7199 = vperm.xlu1 %7932, %v7474_v4   ;;  %v9388_v4 = vpop.permute.xlu1 %6383 }
 0x1c2   : > { %10845 = vst [vmem:[#allocation41_spill] sm:$0xff] %v9388_v4 }
 0x1c4   : > { %v9386_v61 = vpop.permute.xlu0 %6387 }
 0x1c5   : > { %7207 = vperm.xlu1 %7932, %v7476_v32  }
 0x1c8   : > { %v9390_v32 = vpop.permute.xlu0 %6395 }
 0x1c9   : > { %7215 = vperm.xlu1 %7932, %v7478_v25   ;;  %10846 = vst [vmem:[#allocation42_spill] sm:$0xff] %v9390_v32  ;;  %v9392_v25 = vpop.permute.xlu1 %6391 }
 0x1ca   : > { %10847 = vst [vmem:[#allocation43_spill] sm:$0xff] %v9392_v25 }
 0x1cd   : > { %7223 = vperm.xlu1 %7932, %v7480_v36   ;;  %v9394_v36 = vpop.permute.xlu0 %6499  ;;  %v9396_v24 = vpop.permute.xlu1 %6399 }
 0x1ce   : > { %10848 = vst [vmem:[#allocation44_spill] sm:$0xff] %v9396_v24 }
 0x1d1   : > { %7231 = vperm.xlu1 %7932, %v7482_v54   ;;  %v9398_v54 = vpop.permute.xlu0 %6511  ;;  %v9400_v62 = vpop.permute.xlu1 %6503 }
 0x1d2   : > { %10849 = vst [vmem:[#allocation45_spill] sm:$0xff] %v9398_v54  ;;  %10850 = vst [vmem:[#allocation46_spill] sm:$0xff] %v9400_v62 }
 0x1d5   : > { %7239 = vperm.xlu1 %7932, %v7484_v9   ;;  %v9402_v37 = vpop.permute.xlu0 %6519  ;;  %v9404_v5 = vpop.permute.xlu1 %6507 }
 0x1d6   : > { %10851 = vst [vmem:[#allocation47_spill] sm:$0xff] %v9402_v37  ;;  %10852 = vst [vmem:[#allocation48_spill] sm:$0xff] %v9404_v5 }
 0x1d9   : > { %v9406_v9 = vpop.permute.xlu0 %6527  ;;  %v9408_v12 = vpop.permute.xlu1 %6515 }
 0x1da   : > { %10853 = vst [vmem:[#allocation49_spill] sm:$0xff] %v9406_v9  ;;  %10854 = vst [vmem:[#allocation50_spill] sm:$0xff] %v9408_v12  ;;  %v9422_v9 = vsub.s32 %v575_v44, %v577_v35 }
 0x1dd   : > { %v9410_v42 = vpop.permute.xlu0 %6535  ;;  %v9412_v15 = vpop.permute.xlu1 %6523 }
 0x1de   : > { %10855 = vst [vmem:[#allocation51_spill] sm:$0xff] %v9410_v42  ;;  %10856 = vst [vmem:[#allocation52_spill] sm:$0xff] %v9412_v15 }
 0x1e1   : > { %v9414_v49 = vpop.permute.xlu0 %6543  ;;  %v9416_v10 = vpop.permute.xlu1 %6531 }
 0x1e2   : > { %10857 = vst [vmem:[#allocation53_spill] sm:$0xff] %v9414_v49 }
 0x1e5   : > { %v9418_v19 = vpop.permute.xlu0 %6551  ;;  %v9420_v24 = vpop.permute.xlu1 %6539 }
 0x1e6   : > { %10858 = vst [vmem:[#allocation54_spill] sm:$0xff] %v9418_v19  ;;  %10859 = vst [vmem:[#allocation55_spill] sm:$0xff] %v9420_v24 }
 0x1e9   : > { %v9424_v8 = vpop.permute.xlu0 %6559  ;;  %v9427_v56 = vpop.permute.xlu1 %6547 }
 0x1ea   : > { %10860 = vst [vmem:[#allocation56_spill] sm:$0xff] %v9424_v8  ;;  %10861 = vst [vmem:[#allocation57_spill] sm:$0xff] %v9427_v56 }
 0x1ed   : > { %v9432_v19 = vpop.permute.xlu0 %6679 }
 0x1ee   : > { %10862 = vst [vmem:[#allocation58_spill] sm:$0xff] %v9432_v19 }
 0x20f   : > { %v7614_v37 = vpop.f32.mrb[0].mxu1 }
 0x210   : > { %v621_v7 = vcombine.high %v7614_v37, %v7614_v37  ;;  %v628_v15 = vrot.slane %v7614_v37, %v9422_v9  ;;  %v561_v54 = vpop.f32.mrb[1].mxu1 }
 0x211   : > { %v572_v16 = vcombine.high %v561_v54, %v561_v54  ;;  %v579_v18 = vrot.slane %v561_v54, %v9422_v9 }
 0x212   : > { %v635_v60 = vrot.slane %v621_v7, %v9422_v9  ;;  %v636_v13 = vcombine.high %v628_v15, %v628_v15  ;;  %v644_v41 = vrot.slane %v628_v15, %v9422_v9 }
 0x213   : > { %v586_v44 = vrot.slane %v572_v16, %v9422_v9  ;;  %v587_v35 = vcombine.high %v579_v18, %v579_v18  ;;  %v595_v8 = vrot.slane %v579_v18, %v9422_v9 }
 0x214   : > { %v637_v25 = vcombine.high %v635_v60, %v635_v60  ;;  %v651_v37 = vrot.slane %v635_v60, %v9422_v9  ;;  %v658_v49 = vrot.slane %v636_v13, %v9422_v9  ;;  %v666_v4 = vcombine.high %v644_v41, %v644_v41  ;;  %695 = vst.msk [vmem:[#allocation2 + $0x110] sm:$0x1] %vm274_vm0, %v644_v41  ;;  %v7626_v54 = vpop.f32.mrb[2].mxu1  ;;  %v9446_v13 = vpop.permute.xlu1 %6555 }
 0x215   : > { %v588_v7 = vcombine.high %v586_v44, %v586_v44  ;;  %v602_v32 = vrot.slane %v586_v44, %v9422_v9  ;;  %v609_v15 = vrot.slane %v587_v35, %v9422_v9  ;;  %v617_v19 = vcombine.high %v595_v8, %v595_v8  ;;  %687 = vst.msk [vmem:[#allocation2 + $0x10] sm:$0x1] %vm274_vm0, %v595_v8  ;;  %v895_v16 = vpop.f32.mrb[3].mxu1 }
 0x216   : > { %v665_v18 = vrot.slane %v637_v25, %v9422_v9  ;;  %v667_v12 = vcombine.high %v651_v37, %v651_v37  ;;  %v668_v62 = vcombine.high %v658_v49, %v658_v49  ;;  %696 = vst.msk [vmem:[#allocation2 + $0x130] sm:$0x1] %vm274_vm0, %v658_v49  ;;  %697 = vst.msk [vmem:[#allocation2 + $0x150] sm:$0x1] %vm274_vm0, %v666_v4 }
 0x217   : > { %699 = vst.msk [vmem:[#allocation2 + $0x190] sm:$0x1] %vm274_vm0, %v651_v37  ;;  %v955_v60 = vcombine.high %v7626_v54, %v7626_v54  ;;  %10863 = vst [vmem:[#allocation59_spill] sm:$0xff] %v9446_v13  ;;  %v616_v41 = vrot.slane %v588_v7, %v9422_v9  ;;  %v618_v44 = vcombine.high %v602_v32, %v602_v32 }
 0x218   : > { %v619_v35 = vcombine.high %v609_v15, %v609_v15  ;;  %688 = vst.msk [vmem:[#allocation2 + $0x30] sm:$0x1] %vm274_vm0, %v609_v15  ;;  %689 = vst.msk [vmem:[#allocation2 + $0x50] sm:$0x1] %vm274_vm0, %v617_v19  ;;  %v962_v8 = vrot.slane %v7626_v54, %v9422_v9  ;;  %v669_v49 = vcombine.high %v665_v18, %v665_v18  ;;  %v7638_v7 = vpop.f32.mrb[4].mxu1  ;;  %v9458_v15 = vpop.permute.xlu0 %6691 }
 0x219   : > { %691 = vst.msk [vmem:[#allocation2 + $0x90] sm:$0x1] %vm274_vm0, %v602_v32  ;;  %698 = vst.msk [vmem:[#allocation2 + $0x170] sm:$0x1] %vm274_vm0, %v668_v62  ;;  %v969_v4 = vrot.slane %v955_v60, %v9422_v9  ;;  %v906_v25 = vcombine.high %v895_v16, %v895_v16  ;;  %v913_v37 = vrot.slane %v895_v16, %v9422_v9  ;;  %v9475_v5 = vpop.permute.xlu1 %6675 }
 0x21a   : > { %700 = vst.msk [vmem:[#allocation2 + $0x1b0] sm:$0x1] %vm274_vm0, %v665_v18  ;;  %701 = vst.msk [vmem:[#allocation2 + $0x1d0] sm:$0x1] %vm274_vm0, %v667_v12  ;;  %v620_v19 = vcombine.high %v616_v41, %v616_v41  ;;  %v970_v62 = vcombine.high %v962_v8, %v962_v8  ;;  %v978_v32 = vrot.slane %v962_v8, %v9422_v9  ;;  %v1228_v12 = vpop.f32.mrb[5].mxu1 }
 0x21b   : > { %10864 = vst [vmem:[#allocation60_spill] sm:$0xff] %v9458_v15  ;;  %690 = vst.msk [vmem:[#allocation2 + $0x70] sm:$0x1] %vm274_vm0, %v619_v35  ;;  %v1288_v54 = vcombine.high %v7638_v7, %v7638_v7  ;;  %v971_v18 = vcombine.high %v969_v4, %v969_v4  ;;  %v985_v16 = vrot.slane %v969_v4, %v9422_v9 }
 0x21c   : > { %692 = vst.msk [vmem:[#allocation2 + $0xb0] sm:$0x1] %vm274_vm0, %v616_v41  ;;  %693 = vst.msk [vmem:[#allocation2 + $0xd0] sm:$0x1] %vm274_vm0, %v618_v44  ;;  %v920_v60 = vrot.slane %v906_v25, %v9422_v9  ;;  %v921_v15 = vcombine.high %v913_v37, %v913_v37  ;;  %v992_v35 = vrot.slane %v970_v62, %v9422_v9 }
 0x21d   : > { %702 = vst.msk [vmem:[#allocation2 + $0x1f0] sm:$0x1] %vm274_vm0, %v669_v49  ;;  %694 = vst.msk [vmem:[#allocation2 + $0xf0] sm:$0x1] %vm274_vm0, %v620_v19  ;;  %v1000_v41 = vcombine.high %v978_v32, %v978_v32  ;;  %v929_v44 = vrot.slane %v913_v37, %v9422_v9  ;;  %v1295_v8 = vrot.slane %v7638_v7, %v9422_v9 }
 0x21e   : > { %1028 = vst.msk [vmem:[#allocation2 + $0x101] sm:$0x1] %vm274_vm0, %v978_v32  ;;  %v999_v13 = vrot.slane %v971_v18, %v9422_v9  ;;  %v1001_v49 = vcombine.high %v985_v16, %v985_v16  ;;  %1032 = vst.msk [vmem:[#allocation2 + $0x181] sm:$0x1] %vm274_vm0, %v985_v16  ;;  %v922_v4 = vcombine.high %v920_v60, %v920_v60 }
 0x21f   : > { %v936_v25 = vrot.slane %v920_v60, %v9422_v9  ;;  %10865 = vst [vmem:[#allocation61_spill] sm:$0xff] %v9475_v5  ;;  %v1002_v19 = vcombine.high %v992_v35, %v992_v35  ;;  %1029 = vst.msk [vmem:[#allocation2 + $0x121] sm:$0x1] %vm274_vm0, %v992_v35  ;;  %v943_v62 = vrot.slane %v921_v15, %v9422_v9  ;;  %v7650_v35 = vpop.f32.mrb[6].mxu1 }
 0x220   : > { %1030 = vst.msk [vmem:[#allocation2 + $0x141] sm:$0x1] %vm274_vm0, %v1000_v41  ;;  %v951_v37 = vcombine.high %v929_v44, %v929_v44  ;;  %1020 = vst.msk [vmem:[#allocation2 + $0x1] sm:$0x1] %vm274_vm0, %v929_v44  ;;  %v1302_v7 = vrot.slane %v1288_v54, %v9422_v9  ;;  %v1003_v32 = vcombine.high %v999_v13, %v999_v13  ;;  %v9486_v41 = vpop.permute.xlu0 %6699 }
 0x221   : > { %1033 = vst.msk [vmem:[#allocation2 + $0x1a1] sm:$0x1] %vm274_vm0, %v999_v13  ;;  %1034 = vst.msk [vmem:[#allocation2 + $0x1c1] sm:$0x1] %vm274_vm0, %v1001_v49  ;;  %v950_v18 = vrot.slane %v922_v4, %v9422_v9  ;;  %v952_v16 = vcombine.high %v936_v25, %v936_v25  ;;  %v1303_v60 = vcombine.high %v1295_v8, %v1295_v8  ;;  %v9493_v49 = vpop.f32.mrb[7].mxu1 }
 0x222   : > { %1024 = vst.msk [vmem:[#allocation2 + $0x81] sm:$0x1] %vm274_vm0, %v936_v25  ;;  %10866 = vst [vmem:[#allocation62_spill] sm:$0xff] %v9486_v41  ;;  %v953_v15 = vcombine.high %v943_v62, %v943_v62  ;;  %v1304_v54 = vcombine.high %v1302_v7, %v1302_v7  ;;  %v1311_v13 = vrot.slane %v1295_v8, %v9422_v9 }
 0x223   : > { %1031 = vst.msk [vmem:[#allocation2 + $0x161] sm:$0x1] %vm274_vm0, %v1002_v19  ;;  %1021 = vst.msk [vmem:[#allocation2 + $0x21] sm:$0x1] %vm274_vm0, %v943_v62  ;;  %v1318_v44 = vrot.slane %v1302_v7, %v9422_v9  ;;  %v954_v4 = vcombine.high %v950_v18, %v950_v18  ;;  %v1325_v25 = vrot.slane %v1303_v60, %v9422_v9 }
 0x224   : > { %1022 = vst.msk [vmem:[#allocation2 + $0x41] sm:$0x1] %vm274_vm0, %v951_v37  ;;  %1035 = vst.msk [vmem:[#allocation2 + $0x1e1] sm:$0x1] %vm274_vm0, %v1003_v32  ;;  %v1239_v19 = vcombine.high %v1228_v12, %v1228_v12  ;;  %v1246_v62 = vrot.slane %v1228_v12, %v9422_v9  ;;  %v1332_v8 = vrot.slane %v1304_v54, %v9422_v9  ;;  %v9510_v54 = vpop.permute.xlu1 %6683 }
 0x225   : > { %1025 = vst.msk [vmem:[#allocation2 + $0xa1] sm:$0x1] %vm274_vm0, %v950_v18  ;;  %1026 = vst.msk [vmem:[#allocation2 + $0xc1] sm:$0x1] %vm274_vm0, %v952_v16  ;;  %v1333_v37 = vcombine.high %v1311_v13, %v1311_v13  ;;  %v1334_v7 = vcombine.high %v1318_v44, %v1318_v44  ;;  %v1621_v32 = vcombine.high %v7650_v35, %v7650_v35 }
 0x226   : > { %1023 = vst.msk [vmem:[#allocation2 + $0x61] sm:$0x1] %vm274_vm0, %v953_v15  ;;  %1361 = vst.msk [vmem:[#allocation2 + $0x111] sm:$0x1] %vm274_vm0, %v1311_v13  ;;  %v1335_v18 = vcombine.high %v1325_v25, %v1325_v25  ;;  %v1253_v16 = vrot.slane %v1239_v19, %v9422_v9  ;;  %v1254_v60 = vcombine.high %v1246_v62, %v1246_v62  ;;  %v9508_v15 = vpop.f32.mrb[8].mxu1 }
 0x227   : > { %1365 = vst.msk [vmem:[#allocation2 + $0x191] sm:$0x1] %vm274_vm0, %v1318_v44  ;;  %1027 = vst.msk [vmem:[#allocation2 + $0xe1] sm:$0x1] %vm274_vm0, %v954_v4  ;;  %v1262_v12 = vrot.slane %v1246_v62, %v9422_v9  ;;  %v1336_v41 = vcombine.high %v1332_v8, %v1332_v8  ;;  %v1628_v13 = vrot.slane %v7650_v35, %v9422_v9 }
 0x228   : > { %1362 = vst.msk [vmem:[#allocation2 + $0x131] sm:$0x1] %vm274_vm0, %v1325_v25  ;;  %10867 = vst [vmem:[#allocation63_spill] sm:$0xff] %v9510_v54  ;;  %v1635_v44 = vrot.slane %v1621_v32, %v9422_v9  ;;  %v1572_v4 = vcombine.high %v9493_v49, %v9493_v49  ;;  %v9519_v25 = vpop.f32.mrb[9].mxu1  ;;  %v1255_v19 = vcombine.high %v1253_v16, %v1253_v16 }
 0x229   : > { %1363 = vst.msk [vmem:[#allocation2 + $0x151] sm:$0x1] %vm274_vm0, %v1333_v37  ;;  %1366 = vst.msk [vmem:[#allocation2 + $0x1b1] sm:$0x1] %vm274_vm0, %v1332_v8  ;;  %v1269_v62 = vrot.slane %v1253_v16, %v9422_v9  ;;  %v1276_v37 = vrot.slane %v1254_v60, %v9422_v9  ;;  %v1284_v54 = vcombine.high %v1262_v12, %v1262_v12  ;;  %v9525_v8 = vpop.permute.xlu0 %6707 }
 0x22a   : > { %1367 = vst.msk [vmem:[#allocation2 + $0x1d1] sm:$0x1] %vm274_vm0, %v1334_v7  ;;  %1364 = vst.msk [vmem:[#allocation2 + $0x171] sm:$0x1] %vm274_vm0, %v1335_v18  ;;  %v1636_v35 = vcombine.high %v1628_v13, %v1628_v13  ;;  %v1637_v7 = vcombine.high %v1635_v44, %v1635_v44  ;;  %v1644_v32 = vrot.slane %v1628_v13, %v9422_v9 }
 0x22b   : > { %1353 = vst.msk [vmem:[#allocation2 + $0x11] sm:$0x1] %vm274_vm0, %v1262_v12  ;;  %10868 = vst [vmem:[#allocation64_spill] sm:$0xff] %v9525_v8  ;;  %v1651_v5 = vrot.slane %v1635_v44, %v9422_v9  ;;  %v1283_v18 = vrot.slane %v1255_v19, %v9422_v9  ;;  %v1285_v21 = vcombine.high %v1269_v62, %v1269_v62 }
 0x22c   : > { %1368 = vst.msk [vmem:[#allocation2 + $0x1f1] sm:$0x1] %vm274_vm0, %v1336_v41  ;;  %v1286_v40 = vcombine.high %v1276_v37, %v1276_v37  ;;  %1354 = vst.msk [vmem:[#allocation2 + $0x31] sm:$0x1] %vm274_vm0, %v1276_v37  ;;  %v1579_v16 = vrot.slane %v9493_v49, %v9422_v9  ;;  %v9536_v41 = vpop.f32.mrb[10].mxu1  ;;  %v1658_v60 = vrot.slane %v1636_v35, %v9422_v9  ;;  %v9549_v35 = vpop.permute.xlu1 %6687 }
 0x22d   : > { %1355 = vst.msk [vmem:[#allocation2 + $0x51] sm:$0x1] %vm274_vm0, %v1284_v54  ;;  %1357 = vst.msk [vmem:[#allocation2 + $0x91] sm:$0x1] %vm274_vm0, %v1269_v62  ;;  %v1665_v12 = vrot.slane %v1637_v7, %v9422_v9  ;;  %v1666_v13 = vcombine.high %v1644_v32, %v1644_v32  ;;  %v1667_v44 = vcombine.high %v1651_v5, %v1651_v5  ;;  %v9542_v19 = vpop.f32.mrb[11].mxu1 }
 0x22e   : > { %1694 = vst.msk [vmem:[#allocation2 + $0x102] sm:$0x1] %vm274_vm0, %v1644_v32  ;;  %1698 = vst.msk [vmem:[#allocation2 + $0x182] sm:$0x1] %vm274_vm0, %v1651_v5  ;;  %v1287_v54 = vcombine.high %v1283_v18, %v1283_v18  ;;  %v1586_v49 = vrot.slane %v1572_v4, %v9422_v9  ;;  %v1587_v62 = vcombine.high %v1579_v16, %v1579_v16 }
 0x22f   : > { %1356 = vst.msk [vmem:[#allocation2 + $0x71] sm:$0x1] %vm274_vm0, %v1286_v40  ;;  %1358 = vst.msk [vmem:[#allocation2 + $0xb1] sm:$0x1] %vm274_vm0, %v1283_v18  ;;  %v1595_v37 = vrot.slane %v1579_v16, %v9422_v9  ;;  %v1668_v7 = vcombine.high %v1658_v60, %v1658_v60  ;;  %v1669_v32 = vcombine.high %v1665_v12, %v1665_v12 }
 0x230   : > { %1359 = vst.msk [vmem:[#allocation2 + $0xd1] sm:$0x1] %vm274_vm0, %v1285_v21  ;;  %10869 = vst [vmem:[#allocation65_spill] sm:$0xff] %v9549_v35  ;;  %v1954_v5 = vcombine.high %v9508_v15, %v9508_v15  ;;  %v1961_v40 = vrot.slane %v9508_v15, %v9422_v9  ;;  %v1588_v21 = vcombine.high %v1586_v49, %v1586_v49 }
 0x231   : > { %1695 = vst.msk [vmem:[#allocation2 + $0x122] sm:$0x1] %vm274_vm0, %v1658_v60  ;;  %1696 = vst.msk [vmem:[#allocation2 + $0x142] sm:$0x1] %vm274_vm0, %v1666_v13  ;;  %v1602_v4 = vrot.slane %v1586_v49, %v9422_v9  ;;  %v1609_v18 = vrot.slane %v1587_v62, %v9422_v9  ;;  %v1617_v16 = vcombine.high %v1595_v37, %v1595_v37  ;;  %v9563_v60 = vpop.f32.mrb[12].mxu1 }
 0x232   : > { %1699 = vst.msk [vmem:[#allocation2 + $0x1a2] sm:$0x1] %vm274_vm0, %v1665_v12  ;;  %1700 = vst.msk [vmem:[#allocation2 + $0x1c2] sm:$0x1] %vm274_vm0, %v1667_v44  ;;  %v9565_v12 = vpop.permute.xlu0 %6715  ;;  %v1968_v15 = vrot.slane %v1954_v5, %v9422_v9  ;;  %v1969_v13 = vcombine.high %v1961_v40, %v1961_v40  ;;  %v1977_v44 = vrot.slane %v1961_v40, %v9422_v9  ;;  %v9573_v49 = vpop.f32.mrb[13].mxu1 }
 0x233   : > { %1360 = vst.msk [vmem:[#allocation2 + $0xf1] sm:$0x1] %vm274_vm0, %v1287_v54  ;;  %1686 = vst.msk [vmem:[#allocation2 + $0x2] sm:$0x1] %vm274_vm0, %v1595_v37  ;;  %v1905_v54 = vcombine.high %v9519_v25, %v9519_v25  ;;  %v1616_v62 = vrot.slane %v1588_v21, %v9422_v9  ;;  %v1618_v37 = vcombine.high %v1602_v4, %v1602_v4 }
 0x234   : > { %10870 = vst [vmem:[#allocation66_spill] sm:$0xff] %v9565_v12  ;;  %1697 = vst.msk [vmem:[#allocation2 + $0x162] sm:$0x1] %vm274_vm0, %v1668_v7  ;;  %v1619_v35 = vcombine.high %v1609_v18, %v1609_v18  ;;  %v1912_v7 = vrot.slane %v9519_v25, %v9422_v9  ;;  %v1984_v5 = vrot.slane %v1968_v15, %v9422_v9 }
 0x235   : > { %1701 = vst.msk [vmem:[#allocation2 + $0x1e2] sm:$0x1] %vm274_vm0, %v1669_v32  ;;  %1687 = vst.msk [vmem:[#allocation2 + $0x22] sm:$0x1] %vm274_vm0, %v1609_v18  ;;  %v1970_v32 = vcombine.high %v1968_v15, %v1968_v15  ;;  %v1991_v40 = vrot.slane %v1969_v13, %v9422_v9  ;;  %v1999_v12 = vcombine.high %v1977_v44, %v1977_v44  ;;  %v9591_v15 = vpop.permute.xlu1 %6695 }
 0x236   : > { %1688 = vst.msk [vmem:[#allocation2 + $0x42] sm:$0x1] %vm274_vm0, %v1617_v16  ;;  %1690 = vst.msk [vmem:[#allocation2 + $0x82] sm:$0x1] %vm274_vm0, %v1602_v4  ;;  %v1620_v21 = vcombine.high %v1616_v62, %v1616_v62  ;;  %v1919_v4 = vrot.slane %v1905_v54, %v9422_v9  ;;  %v1920_v18 = vcombine.high %v1912_v7, %v1912_v7  ;;  %v9589_v16 = vpop.f32.mrb[14].mxu1 }
 0x237   : > { %2027 = vst.msk [vmem:[#allocation2 + $0x112] sm:$0x1] %vm274_vm0, %v1977_v44  ;;  %1689 = vst.msk [vmem:[#allocation2 + $0x62] sm:$0x1] %vm274_vm0, %v1619_v35  ;;  %v1928_v25 = vrot.slane %v1912_v7, %v9422_v9  ;;  %v1998_v13 = vrot.slane %v1970_v32, %v9422_v9  ;;  %v2000_v8 = vcombine.high %v1984_v5, %v1984_v5  ;;  %v9599_v54 = vpop.f32.mrb[15].mxu1 }
 0x238   : > { %1691 = vst.msk [vmem:[#allocation2 + $0xa2] sm:$0x1] %vm274_vm0, %v1616_v62  ;;  %1692 = vst.msk [vmem:[#allocation2 + $0xc2] sm:$0x1] %vm274_vm0, %v1618_v37  ;;  %v2001_v44 = vcombine.high %v1991_v40, %v1991_v40  ;;  %v2287_v35 = vcombine.high %v9536_v41, %v9536_v41  ;;  %v1921_v62 = vcombine.high %v1919_v4, %v1919_v4 }
 0x239   : > { %10871 = vst [vmem:[#allocation67_spill] sm:$0xff] %v9591_v15  ;;  %2028 = vst.msk [vmem:[#allocation2 + $0x132] sm:$0x1] %vm274_vm0, %v1991_v40  ;;  %v1935_v37 = vrot.slane %v1919_v4, %v9422_v9  ;;  %v1942_v7 = vrot.slane %v1920_v18, %v9422_v9  ;;  %v1950_v32 = vcombine.high %v1928_v25, %v1928_v25  ;;  %v9605_v40 = vpop.permute.xlu0 %6723 }
 0x23a   : > { %2029 = vst.msk [vmem:[#allocation2 + $0x152] sm:$0x1] %vm274_vm0, %v1999_v12  ;;  %2031 = vst.msk [vmem:[#allocation2 + $0x192] sm:$0x1] %vm274_vm0, %v1984_v5  ;;  %v2002_v12 = vcombine.high %v1998_v13, %v1998_v13  ;;  %v2294_v5 = vrot.slane %v9536_v41, %v9422_v9  ;;  %v2238_v4 = vcombine.high %v9542_v19, %v9542_v19 }
 0x23b   : > { %1693 = vst.msk [vmem:[#allocation2 + $0xe2] sm:$0x1] %vm274_vm0, %v1620_v21  ;;  %2019 = vst.msk [vmem:[#allocation2 + $0x12] sm:$0x1] %vm274_vm0, %v1928_v25  ;;  %v2301_v21 = vrot.slane %v2287_v35, %v9422_v9  ;;  %v1949_v18 = vrot.slane %v1921_v62, %v9422_v9  ;;  %v1951_v25 = vcombine.high %v1935_v37, %v1935_v37 }
 0x23c   : > { %10872 = vst [vmem:[#allocation68_spill] sm:$0xff] %v9605_v40  ;;  %2030 = vst.msk [vmem:[#allocation2 + $0x172] sm:$0x1] %vm274_vm0, %v2001_v44  ;;  %v1952_v15 = vcombine.high %v1942_v7, %v1942_v7  ;;  %v2302_v41 = vcombine.high %v2294_v5, %v2294_v5  ;;  %v2310_v35 = vrot.slane %v2294_v5, %v9422_v9 }
 0x23d   : > { %2032 = vst.msk [vmem:[#allocation2 + $0x1b2] sm:$0x1] %vm274_vm0, %v1998_v13  ;;  %2033 = vst.msk [vmem:[#allocation2 + $0x1d2] sm:$0x1] %vm274_vm0, %v2000_v8  ;;  %v2245_v8 = vrot.slane %v9542_v19, %v9422_v9  ;;  %v9621_v13 = vpop.f32.mrb[16].mxu1  ;;  %v2303_v44 = vcombine.high %v2301_v21, %v2301_v21  ;;  %v2317_v62 = vrot.slane %v2301_v21, %v9422_v9 }
 0x23e   : > { %2020 = vst.msk [vmem:[#allocation2 + $0x32] sm:$0x1] %vm274_vm0, %v1942_v7  ;;  %2021 = vst.msk [vmem:[#allocation2 + $0x52] sm:$0x1] %vm274_vm0, %v1950_v32  ;;  %v9626_v40 = vpop.f32.mrb[17].mxu1  ;;  %v1953_v7 = vcombine.high %v1949_v18, %v1949_v18  ;;  %v2252_v19 = vrot.slane %v2238_v4, %v9422_v9  ;;  %v2324_v5 = vrot.slane %v2302_v41, %v9422_v9 }
 0x23f   : > { %2023 = vst.msk [vmem:[#allocation2 + $0x92] sm:$0x1] %vm274_vm0, %v1935_v37  ;;  %2034 = vst.msk [vmem:[#allocation2 + $0x1f2] sm:$0x1] %vm274_vm0, %v2002_v12  ;;  %v2253_v37 = vcombine.high %v2245_v8, %v2245_v8  ;;  %v2261_v32 = vrot.slane %v2245_v8, %v9422_v9  ;;  %v9633_v12 = vpop.permute.xlu1 %6703  ;;  %v2331_v21 = vrot.slane %v2303_v44, %v9422_v9  ;;  %v9643_v8 = vpop.permute.xlu0 %6731 }
 0x240   : > { %2022 = vst.msk [vmem:[#allocation2 + $0x72] sm:$0x1] %vm274_vm0, %v1952_v15  ;;  %2024 = vst.msk [vmem:[#allocation2 + $0xb2] sm:$0x1] %vm274_vm0, %v1949_v18  ;;  %v2332_v22 = vcombine.high %v2310_v35, %v2310_v35  ;;  %v2333_v53 = vcombine.high %v2317_v62, %v2317_v62  ;;  %v2254_v15 = vcombine.high %v2252_v19, %v2252_v19 }
 0x241   : > { %2025 = vst.msk [vmem:[#allocation2 + $0xd2] sm:$0x1] %vm274_vm0, %v1951_v25  ;;  %10873 = vst [vmem:[#allocation69_spill] sm:$0xff] %v9633_v12  ;;  %v2268_v4 = vrot.slane %v2252_v19, %v9422_v9  ;;  %v2275_v18 = vrot.slane %v2253_v37, %v9422_v9  ;;  %v2283_v25 = vcombine.high %v2261_v32, %v2261_v32 }
 0x242   : > { %2360 = vst.msk [vmem:[#allocation2 + $0x103] sm:$0x1] %vm274_vm0, %v2310_v35  ;;  %2364 = vst.msk [vmem:[#allocation2 + $0x183] sm:$0x1] %vm274_vm0, %v2317_v62  ;;  %v2334_v41 = vcombine.high %v2324_v5, %v2324_v5  ;;  %v2335_v44 = vcombine.high %v2331_v21, %v2331_v21  ;;  %v2620_v35 = vcombine.high %v9563_v60, %v9563_v60 }
 0x243   : > { %2026 = vst.msk [vmem:[#allocation2 + $0xf2] sm:$0x1] %vm274_vm0, %v1953_v7  ;;  %2352 = vst.msk [vmem:[#allocation2 + $0x3] sm:$0x1] %vm274_vm0, %v2261_v32  ;;  %v2627_v62 = vrot.slane %v9563_v60, %v9422_v9  ;;  %v9653_v7 = vpop.f32.mrb[18].mxu1  ;;  %v2282_v19 = vrot.slane %v2254_v15, %v9422_v9  ;;  %v2284_v37 = vcombine.high %v2268_v4, %v2268_v4 }
 0x244   : > { %10874 = vst [vmem:[#allocation70_spill] sm:$0xff] %v9643_v8  ;;  %2361 = vst.msk [vmem:[#allocation2 + $0x123] sm:$0x1] %vm274_vm0, %v2324_v5  ;;  %v2285_v32 = vcombine.high %v2275_v18, %v2275_v18  ;;  %v2634_v60 = vrot.slane %v2620_v35, %v9422_v9  ;;  %v2578_v15 = vrot.slane %v9573_v49, %v9422_v9 }
 0x245   : > { %2362 = vst.msk [vmem:[#allocation2 + $0x143] sm:$0x1] %vm274_vm0, %v2332_v22  ;;  %2365 = vst.msk [vmem:[#allocation2 + $0x1a3] sm:$0x1] %vm274_vm0, %v2331_v21  ;;  %v9661_v22 = vpop.f32.mrb[19].mxu1  ;;  %v2635_v5 = vcombine.high %v2627_v62, %v2627_v62  ;;  %v2643_v21 = vrot.slane %v2627_v62, %v9422_v9 }
 0x246   : > { %2366 = vst.msk [vmem:[#allocation2 + $0x1c3] sm:$0x1] %vm274_vm0, %v2333_v53  ;;  %2353 = vst.msk [vmem:[#allocation2 + $0x23] sm:$0x1] %vm274_vm0, %v2275_v18  ;;  %v2571_v53 = vcombine.high %v9573_v49, %v9573_v49  ;;  %v2286_v18 = vcombine.high %v2282_v19, %v2282_v19  ;;  %v2636_v35 = vcombine.high %v2634_v60, %v2634_v60 }
 0x247   : > { %2354 = vst.msk [vmem:[#allocation2 + $0x43] sm:$0x1] %vm274_vm0, %v2283_v25  ;;  %2356 = vst.msk [vmem:[#allocation2 + $0x83] sm:$0x1] %vm274_vm0, %v2268_v4  ;;  %v2953_v25 = vcombine.high %v9589_v16, %v9589_v16  ;;  %v2650_v49 = vrot.slane %v2634_v60, %v9422_v9  ;;  %v2657_v62 = vrot.slane %v2635_v5, %v9422_v9 }
 0x248   : > { %2363 = vst.msk [vmem:[#allocation2 + $0x163] sm:$0x1] %vm274_vm0, %v2334_v41  ;;  %2367 = vst.msk [vmem:[#allocation2 + $0x1e3] sm:$0x1] %vm274_vm0, %v2335_v44  ;;  %v2585_v4 = vrot.slane %v2571_v53, %v9422_v9  ;;  %v2960_v41 = vrot.slane %v9589_v16, %v9422_v9  ;;  %v9677_v44 = vpop.permute.xlu1 %6711  ;;  %v2594_v12 = vrot.slane %v2578_v15, %v9422_v9 }
 0x249   : > { %2355 = vst.msk [vmem:[#allocation2 + $0x63] sm:$0x1] %vm274_vm0, %v2285_v32  ;;  %2357 = vst.msk [vmem:[#allocation2 + $0xa3] sm:$0x1] %vm274_vm0, %v2282_v19  ;;  %v2665_v32 = vcombine.high %v2643_v21, %v2643_v21  ;;  %v9682_v19 = vpop.f32.mrb[20].mxu1  ;;  %v2664_v60 = vrot.slane %v2636_v35, %v9422_v9  ;;  %v2666_v5 = vcombine.high %v2650_v49, %v2650_v49 }
 0x24a   : > { %2358 = vst.msk [vmem:[#allocation2 + $0xc3] sm:$0x1] %vm274_vm0, %v2284_v37  ;;  %10875 = vst [vmem:[#allocation71_spill] sm:$0xff] %v9677_v44  ;;  %v2586_v37 = vcombine.high %v2578_v15, %v2578_v15  ;;  %v2587_v53 = vcombine.high %v2585_v4, %v2585_v4  ;;  %v2601_v16 = vrot.slane %v2585_v4, %v9422_v9  ;;  %v9687_v8 = vpop.f32.mrb[21].mxu1  ;;  %v9689_v44 = vpop.permute.xlu0 %6771 }
 0x24b   : > { %2693 = vst.msk [vmem:[#allocation2 + $0x113] sm:$0x1] %vm274_vm0, %v2643_v21  ;;  %2359 = vst.msk [vmem:[#allocation2 + $0xe3] sm:$0x1] %vm274_vm0, %v2286_v18  ;;  %v2667_v56 = vcombine.high %v2657_v62, %v2657_v62  ;;  %v2967_v21 = vrot.slane %v2953_v25, %v9422_v9  ;;  %v2616_v4 = vcombine.high %v2594_v12, %v2594_v12 }
 0x24c   : > { %10876 = vst [vmem:[#allocation72_spill] sm:$0xff] %v9689_v44  ;;  %2694 = vst.msk [vmem:[#allocation2 + $0x133] sm:$0x1] %vm274_vm0, %v2657_v62  ;;  %v2608_v15 = vrot.slane %v2586_v37, %v9422_v9  ;;  %v2615_v18 = vrot.slane %v2587_v53, %v9422_v9  ;;  %v2617_v42 = vcombine.high %v2601_v16, %v2601_v16 }
 0x24d   : > { %2695 = vst.msk [vmem:[#allocation2 + $0x153] sm:$0x1] %vm274_vm0, %v2665_v32  ;;  %2697 = vst.msk [vmem:[#allocation2 + $0x193] sm:$0x1] %vm274_vm0, %v2650_v49  ;;  %v2668_v35 = vcombine.high %v2664_v60, %v2664_v60  ;;  %v2968_v49 = vcombine.high %v2960_v41, %v2960_v41  ;;  %v2969_v62 = vcombine.high %v2967_v21, %v2967_v21  ;;  %v9704_v32 = vpop.f32.mrb[22].mxu1 }
 0x24e   : > { %2685 = vst.msk [vmem:[#allocation2 + $0x13] sm:$0x1] %vm274_vm0, %v2594_v12  ;;  %2689 = vst.msk [vmem:[#allocation2 + $0x93] sm:$0x1] %vm274_vm0, %v2601_v16  ;;  %v2976_v25 = vrot.slane %v2960_v41, %v9422_v9  ;;  %v2618_v37 = vcombine.high %v2608_v15, %v2608_v15  ;;  %v2619_v53 = vcombine.high %v2615_v18, %v2615_v18  ;;  %v9713_v16 = vpop.f32.mrb[23].mxu1  ;;  %v9715_v41 = vpop.permute.xlu1 %6719 }
 0x24f   : > { %2696 = vst.msk [vmem:[#allocation2 + $0x173] sm:$0x1] %vm274_vm0, %v2667_v56  ;;  %2698 = vst.msk [vmem:[#allocation2 + $0x1b3] sm:$0x1] %vm274_vm0, %v2664_v60  ;;  %v2983_v56 = vrot.slane %v2967_v21, %v9422_v9  ;;  %v2904_v12 = vcombine.high %v9599_v54, %v9599_v54  ;;  %v2990_v60 = vrot.slane %v2968_v49, %v9422_v9  ;;  %v9731_v49 = vpop.permute.xlu0 %6783 }
 0x250   : > { %2699 = vst.msk [vmem:[#allocation2 + $0x1d3] sm:$0x1] %vm274_vm0, %v2666_v5  ;;  %2686 = vst.msk [vmem:[#allocation2 + $0x33] sm:$0x1] %vm274_vm0, %v2608_v15  ;;  %v2997_v5 = vrot.slane %v2969_v62, %v9422_v9  ;;  %v2998_v15 = vcombine.high %v2976_v25, %v2976_v25 }
 0x251   : > { %2687 = vst.msk [vmem:[#allocation2 + $0x53] sm:$0x1] %vm274_vm0, %v2616_v4  ;;  %2690 = vst.msk [vmem:[#allocation2 + $0xb3] sm:$0x1] %vm274_vm0, %v2615_v18  ;;  %v2999_v21 = vcombine.high %v2983_v56, %v2983_v56  ;;  %v2918_v18 = vrot.slane %v2904_v12, %v9422_v9  ;;  %v3286_v4 = vcombine.high %v9621_v13, %v9621_v13 }
 0x252   : > { %2691 = vst.msk [vmem:[#allocation2 + $0xd3] sm:$0x1] %vm274_vm0, %v2617_v42  ;;  %10877 = vst [vmem:[#allocation73_spill] sm:$0xff] %v9715_v41  ;;  %v2911_v42 = vrot.slane %v9599_v54, %v9422_v9  ;;  %v3000_v62 = vcombine.high %v2990_v60, %v2990_v60  ;;  %v9754_v44 = vpop.permute.xlu1 %6727 }
 0x253   : > { %2700 = vst.msk [vmem:[#allocation2 + $0x1f3] sm:$0x1] %vm274_vm0, %v2668_v35  ;;  %3026 = vst.msk [vmem:[#allocation2 + $0x104] sm:$0x1] %vm274_vm0, %v2976_v25  ;;  %v3293_v35 = vrot.slane %v9621_v13, %v9422_v9  ;;  %v3001_v25 = vcombine.high %v2997_v5, %v2997_v5  ;;  %v2934_v13 = vrot.slane %v2918_v18, %v9422_v9 }
 0x254   : > { %2688 = vst.msk [vmem:[#allocation2 + $0x73] sm:$0x1] %vm274_vm0, %v2618_v37  ;;  %2692 = vst.msk [vmem:[#allocation2 + $0xf3] sm:$0x1] %vm274_vm0, %v2619_v53  ;;  %v2919_v54 = vcombine.high %v2911_v42, %v2911_v42  ;;  %v2927_v37 = vrot.slane %v2911_v42, %v9422_v9  ;;  %v9737_v53 = vpop.f32.mrb[24].mxu1  ;;  %v3300_v12 = vrot.slane %v3286_v4, %v9422_v9 }
 0x255   : > { %3030 = vst.msk [vmem:[#allocation2 + $0x184] sm:$0x1] %vm274_vm0, %v2983_v56  ;;  %10878 = vst [vmem:[#allocation74_spill] sm:$0xff] %v9731_v49  ;;  %v2920_v56 = vcombine.high %v2918_v18, %v2918_v18  ;;  %v3301_v41 = vcombine.high %v3293_v35, %v3293_v35  ;;  %v9742_v49 = vpop.f32.mrb[25].mxu1  ;;  %v3237_v42 = vcombine.high %v9626_v40, %v9626_v40 }
 0x256   : > { %3027 = vst.msk [vmem:[#allocation2 + $0x124] sm:$0x1] %vm274_vm0, %v2990_v60  ;;  %3028 = vst.msk [vmem:[#allocation2 + $0x144] sm:$0x1] %vm274_vm0, %v2998_v15  ;;  %v2941_v60 = vrot.slane %v2919_v54, %v9422_v9  ;;  %v3309_v15 = vrot.slane %v3293_v35, %v9422_v9  ;;  %v2950_v18 = vcombine.high %v2934_v13, %v2934_v13 }
 0x257   : > { %3031 = vst.msk [vmem:[#allocation2 + $0x1a4] sm:$0x1] %vm274_vm0, %v2997_v5  ;;  %3032 = vst.msk [vmem:[#allocation2 + $0x1c4] sm:$0x1] %vm274_vm0, %v2999_v21  ;;  %v2949_v5 = vcombine.high %v2927_v37, %v2927_v37  ;;  %v2948_v21 = vrot.slane %v2920_v56, %v9422_v9  ;;  %v3302_v4 = vcombine.high %v3300_v12, %v3300_v12 }
 0x258   : > { %3029 = vst.msk [vmem:[#allocation2 + $0x164] sm:$0x1] %vm274_vm0, %v3000_v62  ;;  %3033 = vst.msk [vmem:[#allocation2 + $0x1e4] sm:$0x1] %vm274_vm0, %v3001_v25  ;;  %v3316_v62 = vrot.slane %v3300_v12, %v9422_v9  ;;  %v2951_v25 = vcombine.high %v2941_v60, %v2941_v60  ;;  %v3323_v35 = vrot.slane %v3301_v41, %v9422_v9  ;;  %v9769_v41 = vpop.permute.xlu0 %6791 }
 0x259   : > { %3018 = vst.msk [vmem:[#allocation2 + $0x4] sm:$0x1] %vm274_vm0, %v2927_v37  ;;  %3022 = vst.msk [vmem:[#allocation2 + $0x84] sm:$0x1] %vm274_vm0, %v2934_v13  ;;  %v3331_v54 = vcombine.high %v3309_v15, %v3309_v15  ;;  %v3244_v37 = vrot.slane %v9626_v40, %v9422_v9  ;;  %v2952_v56 = vcombine.high %v2948_v21, %v2948_v21 }
 0x25a   : > { %10879 = vst [vmem:[#allocation75_spill] sm:$0xff] %v9754_v44  ;;  %3019 = vst.msk [vmem:[#allocation2 + $0x24] sm:$0x1] %vm274_vm0, %v2941_v60  ;;  %v3330_v13 = vrot.slane %v3302_v4, %v9422_v9  ;;  %v3332_v12 = vcombine.high %v3316_v62, %v3316_v62  ;;  %v3251_v60 = vrot.slane %v3237_v42, %v9422_v9 }
 0x25b   : > { %3020 = vst.msk [vmem:[#allocation2 + $0x44] sm:$0x1] %vm274_vm0, %v2949_v5  ;;  %3359 = vst.msk [vmem:[#allocation2 + $0x114] sm:$0x1] %vm274_vm0, %v3309_v15  ;;  %v9767_v5 = vpop.f32.mrb[26].mxu1  ;;  %v3333_v15 = vcombine.high %v3323_v35, %v3323_v35  ;;  %v3252_v40 = vcombine.high %v3244_v37, %v3244_v37 }
 0x25c   : > { %3023 = vst.msk [vmem:[#allocation2 + $0xa4] sm:$0x1] %vm274_vm0, %v2948_v21  ;;  %3024 = vst.msk [vmem:[#allocation2 + $0xc4] sm:$0x1] %vm274_vm0, %v2950_v18  ;;  %v3260_v21 = vrot.slane %v3244_v37, %v9422_v9  ;;  %v3619_v18 = vcombine.high %v9653_v7, %v9653_v7  ;;  %v9777_v4 = vpop.f32.mrb[27].mxu1  ;;  %v3334_v42 = vcombine.high %v3330_v13, %v3330_v13 }
 0x25d   : > { %3363 = vst.msk [vmem:[#allocation2 + $0x194] sm:$0x1] %vm274_vm0, %v3316_v62  ;;  %10880 = vst [vmem:[#allocation76_spill] sm:$0xff] %v9769_v41  ;;  %v3253_v62 = vcombine.high %v3251_v60, %v3251_v60  ;;  %v9795_v44 = vpop.f32.mrb[28].mxu1 }
 0x25e   : > { %3021 = vst.msk [vmem:[#allocation2 + $0x64] sm:$0x1] %vm274_vm0, %v2951_v25  ;;  %3360 = vst.msk [vmem:[#allocation2 + $0x134] sm:$0x1] %vm274_vm0, %v3323_v35  ;;  %v3267_v25 = vrot.slane %v3251_v60, %v9422_v9  ;;  %v3626_v35 = vrot.slane %v9653_v7, %v9422_v9  ;;  %v3282_v37 = vcombine.high %v3260_v21, %v3260_v21  ;;  %v9804_v41 = vpop.f32.mrb[29].mxu1 }
 0x25f   : > { %3361 = vst.msk [vmem:[#allocation2 + $0x154] sm:$0x1] %vm274_vm0, %v3331_v54  ;;  %3025 = vst.msk [vmem:[#allocation2 + $0xe4] sm:$0x1] %vm274_vm0, %v2952_v56  ;;  %v3274_v54 = vrot.slane %v3252_v40, %v9422_v9  ;;  %v3633_v56 = vrot.slane %v3619_v18, %v9422_v9  ;;  %v9797_v40 = vpop.permute.xlu1 %6735 }
 0x260   : > { %3364 = vst.msk [vmem:[#allocation2 + $0x1b4] sm:$0x1] %vm274_vm0, %v3330_v13  ;;  %3365 = vst.msk [vmem:[#allocation2 + $0x1d4] sm:$0x1] %vm274_vm0, %v3332_v12  ;;  %v3570_v13 = vcombine.high %v9661_v22, %v9661_v22  ;;  %v3281_v12 = vrot.slane %v3253_v62, %v9422_v9  ;;  %v3283_v60 = vcombine.high %v3267_v25, %v3267_v25 }
 0x261   : > { %3362 = vst.msk [vmem:[#allocation2 + $0x174] sm:$0x1] %vm274_vm0, %v3333_v15  ;;  %3351 = vst.msk [vmem:[#allocation2 + $0x14] sm:$0x1] %vm274_vm0, %v3260_v21  ;;  %v3634_v7 = vcombine.high %v3626_v35, %v3626_v35  ;;  %v3642_v15 = vrot.slane %v3626_v35, %v9422_v9  ;;  %v3284_v21 = vcombine.high %v3274_v54, %v3274_v54 }
 0x262   : > { %3366 = vst.msk [vmem:[#allocation2 + $0x1f4] sm:$0x1] %vm274_vm0, %v3334_v42  ;;  %3355 = vst.msk [vmem:[#allocation2 + $0x94] sm:$0x1] %vm274_vm0, %v3267_v25  ;;  %v3635_v18 = vcombine.high %v3633_v56, %v3633_v56  ;;  %v3649_v42 = vrot.slane %v3633_v56, %v9422_v9  ;;  %v3577_v62 = vrot.slane %v9661_v22, %v9422_v9 }
 0x263   : > { %10881 = vst [vmem:[#allocation77_spill] sm:$0xff] %v9797_v40  ;;  %3352 = vst.msk [vmem:[#allocation2 + $0x34] sm:$0x1] %vm274_vm0, %v3274_v54  ;;  %v3285_v25 = vcombine.high %v3281_v12, %v3281_v12  ;;  %v3656_v35 = vrot.slane %v3634_v7, %v9422_v9  ;;  %v3664_v40 = vcombine.high %v3642_v15, %v3642_v15 }
 0x264   : > { %3353 = vst.msk [vmem:[#allocation2 + $0x54] sm:$0x1] %vm274_vm0, %v3282_v37  ;;  %3356 = vst.msk [vmem:[#allocation2 + $0xb4] sm:$0x1] %vm274_vm0, %v3281_v12  ;;  %v3584_v54 = vrot.slane %v3570_v13, %v9422_v9  ;;  %v9811_v37 = vpop.permute.xlu0 %6799  ;;  %v3663_v22 = vrot.slane %v3635_v18, %v9422_v9  ;;  %v3665_v56 = vcombine.high %v3649_v42, %v3649_v42 }
 0x265   : > { %3357 = vst.msk [vmem:[#allocation2 + $0xd4] sm:$0x1] %vm274_vm0, %v3283_v60  ;;  %3692 = vst.msk [vmem:[#allocation2 + $0x105] sm:$0x1] %vm274_vm0, %v3642_v15  ;;  %v3585_v24 = vcombine.high %v3577_v62, %v3577_v62  ;;  %v3593_v12 = vrot.slane %v3577_v62, %v9422_v9  ;;  %v3666_v60 = vcombine.high %v3656_v35, %v3656_v35 }
 0x266   : > { %10882 = vst [vmem:[#allocation78_spill] sm:$0xff] %v9811_v37  ;;  %3354 = vst.msk [vmem:[#allocation2 + $0x74] sm:$0x1] %vm274_vm0, %v3284_v21  ;;  %v3586_v13 = vcombine.high %v3584_v54, %v3584_v54  ;;  %v3600_v7 = vrot.slane %v3584_v54, %v9422_v9  ;;  %v3952_v15 = vcombine.high %v9682_v19, %v9682_v19  ;;  %v9823_v21 = vpop.f32.mrb[30].mxu1 }
 0x267   : > { %3696 = vst.msk [vmem:[#allocation2 + $0x185] sm:$0x1] %vm274_vm0, %v3649_v42  ;;  %3358 = vst.msk [vmem:[#allocation2 + $0xf4] sm:$0x1] %vm274_vm0, %v3285_v25  ;;  %v3667_v18 = vcombine.high %v3663_v22, %v3663_v22  ;;  %v3607_v42 = vrot.slane %v3585_v24, %v9422_v9  ;;  %v3615_v62 = vcombine.high %v3593_v12, %v3593_v12  ;;  %v9831_v25 = vpop.f32.mrb[31].mxu1 }
 0x268   : > { %3693 = vst.msk [vmem:[#allocation2 + $0x125] sm:$0x1] %vm274_vm0, %v3656_v35  ;;  %3694 = vst.msk [vmem:[#allocation2 + $0x145] sm:$0x1] %vm274_vm0, %v3664_v40  ;;  %v3959_v40 = vrot.slane %v9682_v19, %v9422_v9  ;;  %v3614_v35 = vrot.slane %v3586_v13, %v9422_v9  ;;  %v3616_v54 = vcombine.high %v3600_v7, %v3600_v7 }
 0x269   : > { %3697 = vst.msk [vmem:[#allocation2 + $0x1a5] sm:$0x1] %vm274_vm0, %v3663_v22  ;;  %3698 = vst.msk [vmem:[#allocation2 + $0x1c5] sm:$0x1] %vm274_vm0, %v3665_v56  ;;  %v3966_v22 = vrot.slane %v3952_v15, %v9422_v9  ;;  %v3903_v24 = vcombine.high %v9687_v8, %v9687_v8  ;;  %v9839_v56 = vpop.permute.xlu1 %6775  ;;  %v3910_v13 = vrot.slane %v9687_v8, %v9422_v9 }
 0x26a   : > { %3684 = vst.msk [vmem:[#allocation2 + $0x5] sm:$0x1] %vm274_vm0, %v3593_v12  ;;  %3695 = vst.msk [vmem:[#allocation2 + $0x165] sm:$0x1] %vm274_vm0, %v3666_v60  ;;  %v3617_v12 = vcombine.high %v3607_v42, %v3607_v42  ;;  %v3967_v19 = vcombine.high %v3959_v40, %v3959_v40  ;;  %v3975_v60 = vrot.slane %v3959_v40, %v9422_v9 }
 0x26b   : > { %3688 = vst.msk [vmem:[#allocation2 + $0x85] sm:$0x1] %vm274_vm0, %v3600_v7  ;;  %10883 = vst [vmem:[#allocation79_spill] sm:$0xff] %v9839_v56  ;;  %v3618_v7 = vcombine.high %v3614_v35, %v3614_v35  ;;  %v3968_v15 = vcombine.high %v3966_v22, %v3966_v22  ;;  %v3982_v37 = vrot.slane %v3966_v22, %v9422_v9  ;;  %v9851_v56 = vpop.permute.xlu0 %6807 }
 0x26c   : > { %3699 = vst.msk [vmem:[#allocation2 + $0x1e5] sm:$0x1] %vm274_vm0, %v3667_v18  ;;  %3685 = vst.msk [vmem:[#allocation2 + $0x25] sm:$0x1] %vm274_vm0, %v3607_v42  ;;  %v3917_v18 = vrot.slane %v3903_v24, %v9422_v9  ;;  %v3989_v42 = vrot.slane %v3967_v19, %v9422_v9  ;;  %v3918_v8 = vcombine.high %v3910_v13, %v3910_v13 }
 0x26d   : > { %3686 = vst.msk [vmem:[#allocation2 + $0x45] sm:$0x1] %vm274_vm0, %v3615_v62  ;;  %3689 = vst.msk [vmem:[#allocation2 + $0xa5] sm:$0x1] %vm274_vm0, %v3614_v35  ;;  %v3997_v62 = vcombine.high %v3975_v60, %v3975_v60  ;;  %v3926_v40 = vrot.slane %v3910_v13, %v9422_v9  ;;  %v3996_v35 = vrot.slane %v3968_v15, %v9422_v9 }
 0x26e   : > { %3690 = vst.msk [vmem:[#allocation2 + $0xc5] sm:$0x1] %vm274_vm0, %v3616_v54  ;;  %10884 = vst [vmem:[#allocation80_spill] sm:$0xff] %v9851_v56  ;;  %v3998_v54 = vcombine.high %v3982_v37, %v3982_v37  ;;  %v3919_v22 = vcombine.high %v3917_v18, %v3917_v18  ;;  %v3933_v24 = vrot.slane %v3917_v18, %v9422_v9  ;;  %v9873_v18 = vpop.permute.xlu1 %6779 }
 0x26f   : > { %3687 = vst.msk [vmem:[#allocation2 + $0x65] sm:$0x1] %vm274_vm0, %v3617_v12  ;;  %4025 = vst.msk [vmem:[#allocation2 + $0x115] sm:$0x1] %vm274_vm0, %v3975_v60  ;;  %v3999_v56 = vcombine.high %v3989_v42, %v3989_v42  ;;  %v3940_v12 = vrot.slane %v3918_v8, %v9422_v9  ;;  %v3948_v19 = vcombine.high %v3926_v40, %v3926_v40 }
 0x270   : > { %3691 = vst.msk [vmem:[#allocation2 + $0xe5] sm:$0x1] %vm274_vm0, %v3618_v7  ;;  %4029 = vst.msk [vmem:[#allocation2 + $0x195] sm:$0x1] %vm274_vm0, %v3982_v37  ;;  %v4285_v60 = vcombine.high %v9704_v32, %v9704_v32  ;;  %v4000_v13 = vcombine.high %v3996_v35, %v3996_v35  ;;  %v3947_v37 = vrot.slane %v3919_v22, %v9422_v9  ;;  %v9889_v22 = vpop.permute.xlu0 %6815 }
 0x271   : > { %4026 = vst.msk [vmem:[#allocation2 + $0x135] sm:$0x1] %vm274_vm0, %v3989_v42  ;;  %4027 = vst.msk [vmem:[#allocation2 + $0x155] sm:$0x1] %vm274_vm0, %v3997_v62  ;;  %v3949_v7 = vcombine.high %v3933_v24, %v3933_v24  ;;  %v4292_v15 = vrot.slane %v9704_v32, %v9422_v9  ;;  %v3950_v42 = vcombine.high %v3940_v12, %v3940_v12 }
 0x272   : > { %4017 = vst.msk [vmem:[#allocation2 + $0x15] sm:$0x1] %vm274_vm0, %v3926_v40  ;;  %4030 = vst.msk [vmem:[#allocation2 + $0x1b5] sm:$0x1] %vm274_vm0, %v3996_v35  ;;  %v4299_v62 = vrot.slane %v4285_v60, %v9422_v9  ;;  %v4236_v8 = vcombine.high %v9713_v16, %v9713_v16  ;;  %v4243_v40 = vrot.slane %v9713_v16, %v9422_v9 }
 0x273   : > { %4031 = vst.msk [vmem:[#allocation2 + $0x1d5] sm:$0x1] %vm274_vm0, %v3998_v54  ;;  %4021 = vst.msk [vmem:[#allocation2 + $0x95] sm:$0x1] %vm274_vm0, %v3933_v24  ;;  %v3951_v32 = vcombine.high %v3947_v37, %v3947_v37  ;;  %v4308_v35 = vrot.slane %v4292_v15, %v9422_v9  ;;  %v4618_v54 = vcombine.high %v9737_v53, %v9737_v53 }
 0x274   : > { %4028 = vst.msk [vmem:[#allocation2 + $0x175] sm:$0x1] %vm274_vm0, %v3999_v56  ;;  %4018 = vst.msk [vmem:[#allocation2 + $0x35] sm:$0x1] %vm274_vm0, %v3940_v12  ;;  %v4300_v56 = vcombine.high %v4292_v15, %v4292_v15  ;;  %v4301_v24 = vcombine.high %v4299_v62, %v4299_v62  ;;  %v4315_v16 = vrot.slane %v4299_v62, %v9422_v9 }
 0x275   : > { %4019 = vst.msk [vmem:[#allocation2 + $0x55] sm:$0x1] %vm274_vm0, %v3948_v19  ;;  %4032 = vst.msk [vmem:[#allocation2 + $0x1f5] sm:$0x1] %vm274_vm0, %v4000_v13  ;;  %v4250_v12 = vrot.slane %v4236_v8, %v9422_v9  ;;  %v4251_v19 = vcombine.high %v4243_v40, %v4243_v40  ;;  %v4330_v13 = vcombine.high %v4308_v35, %v4308_v35 }
 0x276   : > { %4022 = vst.msk [vmem:[#allocation2 + $0xb5] sm:$0x1] %vm274_vm0, %v3947_v37  ;;  %4023 = vst.msk [vmem:[#allocation2 + $0xd5] sm:$0x1] %vm274_vm0, %v3949_v7  ;;  %v4322_v60 = vrot.slane %v4300_v56, %v9422_v9  ;;  %v4259_v37 = vrot.slane %v4243_v40, %v9422_v9  ;;  %v4625_v7 = vrot.slane %v9737_v53, %v9422_v9  ;;  %v9908_v40 = vpop.permute.xlu1 %6787 }
 0x277   : > { %10885 = vst [vmem:[#allocation81_spill] sm:$0xff] %v9889_v22  ;;  %4020 = vst.msk [vmem:[#allocation2 + $0x75] sm:$0x1] %vm274_vm0, %v3950_v42  ;;  %v4329_v15 = vrot.slane %v4301_v24, %v9422_v9  ;;  %v4331_v42 = vcombine.high %v4315_v16, %v4315_v16  ;;  %v4252_v62 = vcombine.high %v4250_v12, %v4250_v12 }
 0x278   : > { %4024 = vst.msk [vmem:[#allocation2 + $0xf5] sm:$0x1] %vm274_vm0, %v3951_v32  ;;  %4358 = vst.msk [vmem:[#allocation2 + $0x106] sm:$0x1] %vm274_vm0, %v4308_v35  ;;  %v4266_v8 = vrot.slane %v4250_v12, %v9422_v9  ;;  %v4332_v22 = vcombine.high %v4322_v60, %v4322_v60  ;;  %v4273_v32 = vrot.slane %v4251_v19, %v9422_v9 }
 0x279   : > { %4362 = vst.msk [vmem:[#allocation2 + $0x186] sm:$0x1] %vm274_vm0, %v4315_v16  ;;  %4359 = vst.msk [vmem:[#allocation2 + $0x126] sm:$0x1] %vm274_vm0, %v4322_v60  ;;  %v4281_v56 = vcombine.high %v4259_v37, %v4259_v37  ;;  %v4632_v53 = vrot.slane %v4618_v54, %v9422_v9  ;;  %v4333_v35 = vcombine.high %v4329_v15, %v4329_v15 }
 0x27a   : > { %4360 = vst.msk [vmem:[#allocation2 + $0x146] sm:$0x1] %vm274_vm0, %v4330_v13  ;;  %4350 = vst.msk [vmem:[#allocation2 + $0x6] sm:$0x1] %vm274_vm0, %v4259_v37  ;;  %v4280_v24 = vrot.slane %v4252_v62, %v9422_v9  ;;  %v4282_v16 = vcombine.high %v4266_v8, %v4266_v8  ;;  %v4633_v12 = vcombine.high %v4625_v7, %v4625_v7  ;;  %v9919_v37 = vpop.permute.xlu0 %6823 }
 0x27b   : > { %4363 = vst.msk [vmem:[#allocation2 + $0x1a6] sm:$0x1] %vm274_vm0, %v4329_v15  ;;  %4364 = vst.msk [vmem:[#allocation2 + $0x1c6] sm:$0x1] %vm274_vm0, %v4331_v42  ;;  %v4283_v19 = vcombine.high %v4273_v32, %v4273_v32  ;;  %v4634_v54 = vcombine.high %v4632_v53, %v4632_v53  ;;  %v4641_v60 = vrot.slane %v4625_v7, %v9422_v9 }
 0x27c   : > { %4354 = vst.msk [vmem:[#allocation2 + $0x86] sm:$0x1] %vm274_vm0, %v4266_v8  ;;  %4361 = vst.msk [vmem:[#allocation2 + $0x166] sm:$0x1] %vm274_vm0, %v4332_v22  ;;  %v4648_v13 = vrot.slane %v4632_v53, %v9422_v9  ;;  %v4284_v15 = vcombine.high %v4280_v24, %v4280_v24  ;;  %v4655_v22 = vrot.slane %v4633_v12, %v9422_v9 }
 0x27d   : > { %4351 = vst.msk [vmem:[#allocation2 + $0x26] sm:$0x1] %vm274_vm0, %v4273_v32  ;;  %4352 = vst.msk [vmem:[#allocation2 + $0x46] sm:$0x1] %vm274_vm0, %v4281_v56  ;;  %v4569_v42 = vcombine.high %v9742_v49, %v9742_v49  ;;  %v4576_v62 = vrot.slane %v9742_v49, %v9422_v9  ;;  %v4662_v7 = vrot.slane %v4634_v54, %v9422_v9 }
 0x27e   : > { %4365 = vst.msk [vmem:[#allocation2 + $0x1e6] sm:$0x1] %vm274_vm0, %v4333_v35  ;;  %4355 = vst.msk [vmem:[#allocation2 + $0xa6] sm:$0x1] %vm274_vm0, %v4280_v24  ;;  %v4663_v8 = vcombine.high %v4641_v60, %v4641_v60  ;;  %v4664_v32 = vcombine.high %v4648_v13, %v4648_v13  ;;  %v4951_v56 = vcombine.high %v9767_v5, %v9767_v5 }
 0x27f   : > { %4356 = vst.msk [vmem:[#allocation2 + $0xc6] sm:$0x1] %vm274_vm0, %v4282_v16  ;;  %4353 = vst.msk [vmem:[#allocation2 + $0x66] sm:$0x1] %vm274_vm0, %v4283_v19  ;;  %v4665_v53 = vcombine.high %v4655_v22, %v4655_v22  ;;  %v4583_v49 = vrot.slane %v4569_v42, %v9422_v9  ;;  %v4584_v35 = vcombine.high %v4576_v62, %v4576_v62 }
 0x280   : > { %4691 = vst.msk [vmem:[#allocation2 + $0x116] sm:$0x1] %vm274_vm0, %v4641_v60  ;;  %4695 = vst.msk [vmem:[#allocation2 + $0x196] sm:$0x1] %vm274_vm0, %v4648_v13  ;;  %v4592_v24 = vrot.slane %v4576_v62, %v9422_v9  ;;  %v4666_v16 = vcombine.high %v4662_v7, %v4662_v7  ;;  %v4958_v12 = vrot.slane %v9767_v5, %v9422_v9  ;;  %v9947_v60 = vpop.permute.xlu1 %6795 }
 0x281   : > { %4357 = vst.msk [vmem:[#allocation2 + $0xe6] sm:$0x1] %vm274_vm0, %v4284_v15  ;;  %4692 = vst.msk [vmem:[#allocation2 + $0x136] sm:$0x1] %vm274_vm0, %v4655_v22  ;;  %v4965_v19 = vrot.slane %v4951_v56, %v9422_v9  ;;  %v4902_v54 = vcombine.high %v9777_v4, %v9777_v4  ;;  %v4585_v13 = vcombine.high %v4583_v49, %v4583_v49 }
 0x282   : > { %4693 = vst.msk [vmem:[#allocation2 + $0x156] sm:$0x1] %vm274_vm0, %v4663_v8  ;;  %4696 = vst.msk [vmem:[#allocation2 + $0x1b6] sm:$0x1] %vm274_vm0, %v4662_v7  ;;  %v4599_v15 = vrot.slane %v4583_v49, %v9422_v9  ;;  %v4606_v22 = vrot.slane %v4584_v35, %v9422_v9  ;;  %v4614_v42 = vcombine.high %v4592_v24, %v4592_v24 }
 0x283   : > { %4697 = vst.msk [vmem:[#allocation2 + $0x1d6] sm:$0x1] %vm274_vm0, %v4664_v32  ;;  %10886 = vst [vmem:[#allocation82_spill] sm:$0xff] %v9947_v60  ;;  %v4966_v5 = vcombine.high %v4958_v12, %v4958_v12  ;;  %v4967_v62 = vcombine.high %v4965_v19, %v4965_v19  ;;  %v4974_v7 = vrot.slane %v4958_v12, %v9422_v9  ;;  %v9956_v32 = vpop.permute.xlu0 %6831 }
 0x284   : > { %4694 = vst.msk [vmem:[#allocation2 + $0x176] sm:$0x1] %vm274_vm0, %v4665_v53  ;;  %4683 = vst.msk [vmem:[#allocation2 + $0x16] sm:$0x1] %vm274_vm0, %v4592_v24  ;;  %v4981_v8 = vrot.slane %v4965_v19, %v9422_v9  ;;  %v4613_v56 = vrot.slane %v4585_v13, %v9422_v9  ;;  %v4615_v53 = vcombine.high %v4599_v15, %v4599_v15 }
 0x285   : > { %4698 = vst.msk [vmem:[#allocation2 + $0x1f6] sm:$0x1] %vm274_vm0, %v4666_v16  ;;  %10887 = vst [vmem:[#allocation83_spill] sm:$0xff] %v9956_v32  ;;  %v4616_v60 = vcombine.high %v4606_v22, %v4606_v22  ;;  %v4909_v49 = vrot.slane %v9777_v4, %v9422_v9  ;;  %v4988_v35 = vrot.slane %v4966_v5, %v9422_v9 }
 0x286   : > { %4684 = vst.msk [vmem:[#allocation2 + $0x36] sm:$0x1] %vm274_vm0, %v4606_v22  ;;  %4685 = vst.msk [vmem:[#allocation2 + $0x56] sm:$0x1] %vm274_vm0, %v4614_v42  ;;  %v4995_v24 = vrot.slane %v4967_v62, %v9422_v9  ;;  %v4996_v16 = vcombine.high %v4974_v7, %v4974_v7  ;;  %v4997_v12 = vcombine.high %v4981_v8, %v4981_v8 }
 0x287   : > { %4687 = vst.msk [vmem:[#allocation2 + $0x96] sm:$0x1] %vm274_vm0, %v4599_v15  ;;  %5024 = vst.msk [vmem:[#allocation2 + $0x107] sm:$0x1] %vm274_vm0, %v4974_v7  ;;  %v4617_v19 = vcombine.high %v4613_v56, %v4613_v56  ;;  %v4916_v13 = vrot.slane %v4902_v54, %v9422_v9  ;;  %v4917_v4 = vcombine.high %v4909_v49, %v4909_v49  ;;  %v9981_v54 = vpop.permute.xlu1 %6803 }
 0x288   : > { %5028 = vst.msk [vmem:[#allocation2 + $0x187] sm:$0x1] %vm274_vm0, %v4981_v8  ;;  %4686 = vst.msk [vmem:[#allocation2 + $0x76] sm:$0x1] %vm274_vm0, %v4616_v60  ;;  %v4925_v15 = vrot.slane %v4909_v49, %v9422_v9  ;;  %v4998_v22 = vcombine.high %v4988_v35, %v4988_v35  ;;  %v4999_v42 = vcombine.high %v4995_v24, %v4995_v24 }
 0x289   : > { %4688 = vst.msk [vmem:[#allocation2 + $0xb6] sm:$0x1] %vm274_vm0, %v4613_v56  ;;  %4689 = vst.msk [vmem:[#allocation2 + $0xd6] sm:$0x1] %vm274_vm0, %v4615_v53  ;;  %v5284_v60 = vcombine.high %v9795_v44, %v9795_v44  ;;  %v5291_v5 = vrot.slane %v9795_v44, %v9422_v9  ;;  %v4918_v62 = vcombine.high %v4916_v13, %v4916_v13 }
 0x28a   : > { %5025 = vst.msk [vmem:[#allocation2 + $0x127] sm:$0x1] %vm274_vm0, %v4988_v35  ;;  %5026 = vst.msk [vmem:[#allocation2 + $0x147] sm:$0x1] %vm274_vm0, %v4996_v16  ;;  %v4932_v7 = vrot.slane %v4916_v13, %v9422_v9  ;;  %v4939_v8 = vrot.slane %v4917_v4, %v9422_v9  ;;  %v4947_v56 = vcombine.high %v4925_v15, %v4925_v15 }
 0x28b   : > { %5029 = vst.msk [vmem:[#allocation2 + $0x1a7] sm:$0x1] %vm274_vm0, %v4995_v24  ;;  %5030 = vst.msk [vmem:[#allocation2 + $0x1c7] sm:$0x1] %vm274_vm0, %v4997_v12  ;;  %v5298_v53 = vrot.slane %v5284_v60, %v9422_v9  ;;  %v5299_v49 = vcombine.high %v5291_v5, %v5291_v5  ;;  %v5307_v44 = vrot.slane %v5291_v5, %v9422_v9  ;;  %v9993_v24 = vpop.permute.xlu0 %6935 }
 0x28c   : > { %4690 = vst.msk [vmem:[#allocation2 + $0xf6] sm:$0x1] %vm274_vm0, %v4617_v19  ;;  %5016 = vst.msk [vmem:[#allocation2 + $0x7] sm:$0x1] %vm274_vm0, %v4925_v15  ;;  %v5235_v35 = vcombine.high %v9804_v41, %v9804_v41  ;;  %v4946_v16 = vrot.slane %v4918_v62, %v9422_v9  ;;  %v4948_v12 = vcombine.high %v4932_v7, %v4932_v7 }
 0x28d   : > { %5027 = vst.msk [vmem:[#allocation2 + $0x167] sm:$0x1] %vm274_vm0, %v4998_v22  ;;  %5031 = vst.msk [vmem:[#allocation2 + $0x1e7] sm:$0x1] %vm274_vm0, %v4999_v42  ;;  %v4949_v19 = vcombine.high %v4939_v8, %v4939_v8  ;;  %v5242_v13 = vrot.slane %v9804_v41, %v9422_v9  ;;  %v5300_v4 = vcombine.high %v5298_v53, %v5298_v53 }
 0x28e   : > { %5017 = vst.msk [vmem:[#allocation2 + $0x27] sm:$0x1] %vm274_vm0, %v4939_v8  ;;  %5018 = vst.msk [vmem:[#allocation2 + $0x47] sm:$0x1] %vm274_vm0, %v4947_v56  ;;  %v5314_v15 = vrot.slane %v5298_v53, %v9422_v9  ;;  %v5321_v22 = vrot.slane %v5299_v49, %v9422_v9  ;;  %v5329_v42 = vcombine.high %v5307_v44, %v5307_v44  ;;  %v10007_v5 = vld [vmem:[#allocation2 + $0x100] sm:$0xff]  ;;  %v10019_v49 = vpop.permute.xlu1 %6811 }
 0x28f   : > { %5020 = vst.msk [vmem:[#allocation2 + $0x87] sm:$0x1] %vm274_vm0, %v4932_v7  ;;  %5357 = vst.msk [vmem:[#allocation2 + $0x117] sm:$0x1] %vm274_vm0, %v5307_v44  ;;  %v4950_v60 = vcombine.high %v4946_v16, %v4946_v16  ;;  %v5249_v62 = vrot.slane %v5235_v35, %v9422_v9  ;;  %v5250_v41 = vcombine.high %v5242_v13, %v5242_v13 }
 0x290   : > { %5019 = vst.msk [vmem:[#allocation2 + $0x67] sm:$0x1] %vm274_vm0, %v4949_v19  ;;  %5021 = vst.msk [vmem:[#allocation2 + $0xa7] sm:$0x1] %vm274_vm0, %v4946_v16  ;;  %v5258_v7 = vrot.slane %v5242_v13, %v9422_v9  ;;  %v5978_v8 = vmul.f32 %v8931_v0, %v10007_v5  ;;  %v6138_v56 = vmul.f32 %v9084_v31, %v10007_v5  ;;  %v10027_v13 = vpop.permute.xlu0 %6947 }
 0x291   : > { %5022 = vst.msk [vmem:[#allocation2 + $0xc7] sm:$0x1] %vm274_vm0, %v4948_v12  ;;  %v5328_v53 = vrot.slane %v5300_v4, %v9422_v9  ;;  %5358 = vst.msk [vmem:[#allocation2 + $0x137] sm:$0x1] %vm274_vm0, %v5321_v22  ;;  %v5330_v44 = vcombine.high %v5314_v15, %v5314_v15  ;;  %v5331_v35 = vcombine.high %v5321_v22, %v5321_v22 }
 0x292   : > { %5359 = vst.msk [vmem:[#allocation2 + $0x157] sm:$0x1] %vm274_vm0, %v5329_v42  ;;  %5361 = vst.msk [vmem:[#allocation2 + $0x197] sm:$0x1] %vm274_vm0, %v5314_v15  ;;  %v5251_v16 = vcombine.high %v5249_v62, %v5249_v62  ;;  %v5265_v0 = vrot.slane %v5249_v62, %v9422_v9  ;;  %v5272_v12 = vrot.slane %v5250_v41, %v9422_v9  ;;  %6178 = vrot.lane.b32.xlu0 %v6138_v56, %s8157_s8 }
 0x293   : > { %5023 = vst.msk [vmem:[#allocation2 + $0xe7] sm:$0x1] %vm274_vm0, %v4950_v60  ;;  %5349 = vst.msk [vmem:[#allocation2 + $0x17] sm:$0x1] %vm274_vm0, %v5258_v7  ;;  %v5332_v31 = vcombine.high %v5328_v53, %v5328_v53  ;;  %v5280_v19 = vcombine.high %v5258_v7, %v5258_v7  ;;  %6018 = vrot.lane.b32.xlu1 %v5978_v8, %s8158_s9  ;;  %v5617_v42 = vcombine.high %v9823_v21, %v9823_v21 }
 0x294   : > { %5362 = vst.msk [vmem:[#allocation2 + $0x1b7] sm:$0x1] %vm274_vm0, %v5328_v53  ;;  %5360 = vst.msk [vmem:[#allocation2 + $0x177] sm:$0x1] %vm274_vm0, %v5331_v35  ;;  %v5279_v4 = vrot.slane %v5251_v16, %v9422_v9  ;;  %v5281_v15 = vcombine.high %v5265_v0, %v5265_v0  ;;  %v5282_v22 = vcombine.high %v5272_v12, %v5272_v12 }
 0x295   : > { %5363 = vst.msk [vmem:[#allocation2 + $0x1d7] sm:$0x1] %vm274_vm0, %v5330_v44  ;;  %5353 = vst.msk [vmem:[#allocation2 + $0x97] sm:$0x1] %vm274_vm0, %v5265_v0  ;;  %v5624_v60 = vrot.slane %v9823_v21, %v9422_v9  ;;  %v5568_v62 = vcombine.high %v9831_v25, %v9831_v25  ;;  %v5575_v7 = vrot.slane %v9831_v25, %v9422_v9  ;;  %v10051_v44 = vpop.permute.xlu1 %6819 }
 0x296   : > { %5364 = vst.msk [vmem:[#allocation2 + $0x1f7] sm:$0x1] %vm274_vm0, %v5332_v31  ;;  %5350 = vst.msk [vmem:[#allocation2 + $0x37] sm:$0x1] %vm274_vm0, %v5272_v12  ;;  %v5283_v41 = vcombine.high %v5279_v4, %v5279_v4  ;;  %v5631_v8 = vrot.slane %v5617_v42, %v9422_v9 }
 0x297   : > { %5351 = vst.msk [vmem:[#allocation2 + $0x57] sm:$0x1] %vm274_vm0, %v5280_v19  ;;  %5354 = vst.msk [vmem:[#allocation2 + $0xb7] sm:$0x1] %vm274_vm0, %v5279_v4  ;;  %v5632_v56 = vcombine.high %v5624_v60, %v5624_v60  ;;  %v5640_v53 = vrot.slane %v5624_v60, %v9422_v9  ;;  %v5582_v21 = vrot.slane %v5568_v62, %v9422_v9  ;;  %v10058_v19 = vpop.permute.xlu0 %6955  ;;  %v10063_v60 = vld [vmem:[#allocation2] sm:$0xff] }
 0x298   : > { %5355 = vst.msk [vmem:[#allocation2 + $0xd7] sm:$0x1] %vm274_vm0, %v5281_v15  ;;  %5352 = vst.msk [vmem:[#allocation2 + $0x77] sm:$0x1] %vm274_vm0, %v5282_v22  ;;  %v5583_v35 = vcombine.high %v5575_v7, %v5575_v7  ;;  %v5591_v16 = vrot.slane %v5575_v7, %v9422_v9  ;;  %v5633_v0 = vcombine.high %v5631_v8, %v5631_v8 }
 0x299   : > { %5356 = vst.msk [vmem:[#allocation2 + $0xf7] sm:$0x1] %vm274_vm0, %v5283_v41  ;;  %v5647_v31 = vrot.slane %v5631_v8, %v9422_v9  ;;  %v5654_v25 = vrot.slane %v5632_v56, %v9422_v9  ;;  %v5662_v12 = vcombine.high %v5640_v53, %v5640_v53  ;;  %5690 = vst.msk [vmem:[#allocation2 + $0x108] sm:$0x1] %vm274_vm0, %v5640_v53 }
 0x29a   : > { %10888 = vst [vmem:[#allocation84_spill] sm:$0xff] %v10058_v19  ;;  %v5584_v4 = vcombine.high %v5582_v21, %v5582_v21  ;;  %v5598_v15 = vrot.slane %v5582_v21, %v9422_v9  ;;  %v5605_v22 = vrot.slane %v5583_v35, %v9422_v9  ;;  %v5613_v42 = vcombine.high %v5591_v16, %v5591_v16 }
 0x29b   : > { %5682 = vst.msk [vmem:[#allocation2 + $0x8] sm:$0x1] %vm274_vm0, %v5591_v16  ;;  %v5661_v62 = vrot.slane %v5633_v0, %v9422_v9  ;;  %v5663_v41 = vcombine.high %v5647_v31, %v5647_v31  ;;  %v5664_v7 = vcombine.high %v5654_v25, %v5654_v25  ;;  %5691 = vst.msk [vmem:[#allocation2 + $0x128] sm:$0x1] %vm274_vm0, %v5654_v25  ;;  %v10080_v16 = vpop.permute.xlu1 %6827  ;;  %v10082_v0 = vld [vmem:[#allocation2 + $0x140] sm:$0xff]  ;;  %v10335_v32 = vld [vmem:[#allocation2 + $0x1b0] sm:$0xff] }
 0x29c   : > { %5692 = vst.msk [vmem:[#allocation2 + $0x148] sm:$0x1] %vm274_vm0, %v5662_v12  ;;  %5694 = vst.msk [vmem:[#allocation2 + $0x188] sm:$0x1] %vm274_vm0, %v5647_v31  ;;  %v5612_v8 = vrot.slane %v5584_v4, %v9422_v9  ;;  %v5614_v56 = vcombine.high %v5598_v15, %v5598_v15  ;;  %v5615_v53 = vcombine.high %v5605_v22, %v5605_v22  ;;  %v10087_v25 = vld [vmem:[#allocation2 + $0x120] sm:$0xff] }
 0x29d   : > { %5683 = vst.msk [vmem:[#allocation2 + $0x28] sm:$0x1] %vm274_vm0, %v5605_v22  ;;  %5684 = vst.msk [vmem:[#allocation2 + $0x48] sm:$0x1] %vm274_vm0, %v5613_v42  ;;  %v5665_v21 = vcombine.high %v5661_v62, %v5661_v62  ;;  %v6130_v35 = vmul.f32 %v9039_v6, %v10063_v60  ;;  %v5970_v9 = vmul.f32 %v8831_v33, %v10063_v60  ;;  %v10092_v33 = vpop.permute.xlu0 %6963  ;;  %v10099_v4 = vld [vmem:[#allocation2 + $0x180] sm:$0xff] }
 0x29e   : > { %5686 = vst.msk [vmem:[#allocation2 + $0x88] sm:$0x1] %vm274_vm0, %v5598_v15  ;;  %5693 = vst.msk [vmem:[#allocation2 + $0x168] sm:$0x1] %vm274_vm0, %v5664_v7  ;;  %v5616_v31 = vcombine.high %v5612_v8, %v5612_v8  ;;  %v5980_v6 = vmul.f32 %v8957_v58, %v10082_v0  ;;  %v5979_v12 = vmul.f32 %v8904_v17, %v10087_v25  ;;  %v10119_v7 = vld [vmem:[#allocation2 + $0x20] sm:$0xff] }
 0x29f   : > { %5695 = vst.msk [vmem:[#allocation2 + $0x1a8] sm:$0x1] %vm274_vm0, %v5661_v62  ;;  %5696 = vst.msk [vmem:[#allocation2 + $0x1c8] sm:$0x1] %vm274_vm0, %v5663_v41  ;;  %6162 = vrot.lane.b32.xlu0 %v6130_v35, %s8157_s8  ;;  %6002 = vrot.lane.b32.xlu1 %v5970_v9, %s8158_s9  ;;  %v10103_v15 = vpop.permute.xlu1 %6931  ;;  %v6140_v22 = vmul.f32 %v9102_v63, %v10082_v0  ;;  %v5982_v42 = vmul.f32 %v8984_v52, %v10099_v4  ;;  %v10121_v63 = vld [vmem:[#allocation2 + $0x40] sm:$0xff] }
 0x2a0   : > { %5685 = vst.msk [vmem:[#allocation2 + $0x68] sm:$0x1] %vm274_vm0, %v5615_v53  ;;  %5687 = vst.msk [vmem:[#allocation2 + $0xa8] sm:$0x1] %vm274_vm0, %v5612_v8  ;;  %v6142_v17 = vmul.f32 %v9182_v27, %v10099_v4  ;;  %v6139_v58 = vmul.f32 %v9213_v14, %v10087_v25  ;;  %v5971_v8 = vmul.f32 %v8853_v47, %v10119_v7 }
 0x2a1   : > { %5688 = vst.msk [vmem:[#allocation2 + $0xc8] sm:$0x1] %vm274_vm0, %v5614_v56  ;;  %5697 = vst.msk [vmem:[#allocation2 + $0x1e8] sm:$0x1] %vm274_vm0, %v5665_v21  ;;  %v10109_v62 = vpop.permute.xlu0 %6971  ;;  %v5972_v27 = vmul.f32 %v8872_v59, %v10121_v63  ;;  %v10131_v56 = vld [vmem:[#allocation2 + $0x80] sm:$0xff]  ;;  %v6132_v53 = vmul.f32 %v9065_v51, %v10121_v63  ;;  %v6131_v59 = vmul.f32 %v9000_v23, %v10119_v7 }
 0x2a2   : > { %5689 = vst.msk [vmem:[#allocation2 + $0xe8] sm:$0x1] %vm274_vm0, %v5616_v31  ;;  %v5974_v21 = vmul.f32 %v8892_v46, %v10131_v56  ;;  %v6134_v47 = vmul.f32 %v9028_v34, %v10131_v56  ;;  %v10151_v31 = vld [vmem:[#allocation2 + $0x1c0] sm:$0xff] }
 0x2a3   : > { %6020 = vrot.lane.b32.xlu0 %v5979_v12, %s8158_s9  ;;  %6022 = vrot.lane.b32.xlu1 %v5980_v6, %s8158_s9  ;;  %v10117_v41 = vpop.permute.xlu1 %6939  ;;  %v10153_v51 = vld [vmem:[#allocation2 + $0x160] sm:$0xff]  ;;  %v5984_v6 = vmul.f32 %v9009_v30, %v10151_v31 }
 0x2a4   : > { %v5981_v34 = vmul.f32 %v8923_v1, %v10153_v51  ;;  %v10163_v12 = vld [vmem:[#allocation2 + $0x1a0] sm:$0xff]  ;;  %v6144_v1 = vmul.f32 %v9203_v3, %v10151_v31 }
 0x2a5   : > { %v10125_v52 = vpop.permute.xlu0 %6979  ;;  %v6143_v30 = vmul.f32 %v9251_v28, %v10163_v12  ;;  %v10193_v3 = vld [vmem:[#allocation2 + $0x60] sm:$0xff] }
 0x2a7   : > { %6182 = vrot.lane.b32.xlu0 %v6140_v22, %s8157_s8  ;;  %6026 = vrot.lane.b32.xlu1 %v5982_v42, %s8158_s9  ;;  %v10135_v14 = vpop.permute.xlu1 %6943  ;;  %v5983_v22 = vmul.f32 %v8947_v20, %v10163_v12  ;;  %v6141_v42 = vmul.f32 %v9232_v38, %v10153_v51 }
 0x2a8   : > { %10889 = vst [vmem:[#allocation85_spill] sm:$0xff] %v10135_v14 }
 0x2a9   : > { %v10141_v35 = vpop.permute.xlu0 %6987 }
 0x2ab   : > { %6186 = vrot.lane.b32.xlu0 %v6142_v17, %s8157_s8  ;;  %6180 = vrot.lane.b32.xlu1 %v6139_v58, %s8157_s8  ;;  %v10149_v9 = vpop.permute.xlu1 %6951 }
 0x2ac   : > { %10890 = vst [vmem:[#allocation86_spill] sm:$0xff] %v10149_v9 }
 0x2ad   : > { %v10157_v46 = vpop.permute.xlu0 %5819 }
 0x2af   : > { %6004 = vrot.lane.b32.xlu0 %v5971_v8, %s8158_s9  ;;  %6006 = vrot.lane.b32.xlu1 %v5972_v27, %s8158_s9  ;;  %v10167_v23 = vpop.permute.xlu1 %6959  ;;  %v10183_v8 = vld [vmem:[#allocation2 + $0x110] sm:$0xff] }
 0x2b0   : > { %10891 = vst [vmem:[#allocation87_spill] sm:$0xff] %v10167_v23  ;;  %v6410_v38 = vmul.f32 %v9372_v11, %v10183_v8  ;;  %v6570_v27 = vmul.f32 %v9416_v10, %v10183_v8 }
 0x2b1   : > { %v10173_v17 = vpop.permute.xlu0 %5827 }
 0x2b3   : > { %6166 = vrot.lane.b32.xlu0 %v6132_v53, %s8157_s8  ;;  %6010 = vrot.lane.b32.xlu1 %v5974_v21, %s8158_s9  ;;  %v10181_v58 = vpop.permute.xlu1 %6967  ;;  %v10195_v53 = vld [vmem:[#allocation2 + $0xc0] sm:$0xff]  ;;  %v5973_v21 = vmul.f32 %v8847_v43, %v10193_v3 }
 0x2b5   : > { %v10187_v20 = vpop.permute.xlu0 %5835 }
 0x2b7   : > { %6170 = vrot.lane.b32.xlu0 %v6134_v47, %s8157_s8  ;;  %6164 = vrot.lane.b32.xlu1 %v6131_v59, %s8157_s8  ;;  %v10199_v28 = vpop.permute.xlu1 %6975  ;;  %v5976_v47 = vmul.f32 %v8911_v39, %v10195_v53  ;;  %v10207_v59 = vld [vmem:[#allocation2 + $0xa0] sm:$0xff]  ;;  %v6136_v39 = vmul.f32 %v9057_v50, %v10195_v53 }
 0x2b8   : > { %v5975_v10 = vmul.f32 %v8865_v55, %v10207_v59  ;;  %v10237_v50 = vld [vmem:[#allocation2 + $0x1e0] sm:$0xff] }
 0x2b9   : > { %v10205_v11 = vpop.permute.xlu0 %5843  ;;  %10893 = vst [vmem:[#allocation89_spill] sm:$0xff] %v10237_v50 }
 0x2bb   : > { %6024 = vrot.lane.b32.xlu0 %v5981_v34, %s8158_s9  ;;  %6030 = vrot.lane.b32.xlu1 %v5984_v6, %s8158_s9  ;;  %v6133_v6 = vmul.f32 %v9092_v2, %v10193_v3  ;;  %v10215_v34 = vpop.permute.xlu1 %6983 }
 0x2bd   : > { %v10219_v43 = vpop.permute.xlu0 %5851 }
 0x2bf   : > { %6028 = vrot.lane.b32.xlu0 %v5983_v22, %s8158_s9  ;;  %6184 = vrot.lane.b32.xlu1 %v6141_v42, %s8157_s8  ;;  %v6135_v22 = vmul.f32 %v9172_v45, %v10207_v59  ;;  %v10225_v42 = vld [vmem:[#allocation2 + $0x10] sm:$0xff]  ;;  %v10229_v55 = vpop.permute.xlu1 %6991 }
 0x2c0   : > { %10892 = vst [vmem:[#allocation88_spill] sm:$0xff] %v10229_v55  ;;  %v6402_v2 = vmul.f32 %v9346_v26, %v10225_v42  ;;  %v10247_v26 = vld [vmem:[#allocation2 + $0x150] sm:$0xff] }
 0x2c3   : > { %6190 = vrot.lane.b32.xlu0 %v6144_v1, %s8157_s8  ;;  %6188 = vrot.lane.b32.xlu1 %v6143_v30, %s8157_s8  ;;  %v6562_v1 = vmul.f32 %v9394_v36, %v10225_v42  ;;  %v10235_v30 = vpop.permute.xlu0 %5859  ;;  %v10241_v45 = vpop.permute.xlu1 %7187 }
 0x2c4   : > { %10894 = vst [vmem:[#allocation90_spill] sm:$0xff] %v10241_v45  ;;  %v10303_v45 = vld [vmem:[#allocation2 + $0x90] sm:$0xff] }
 0x2c7   : > { %6450 = vrot.lane.b32.xlu0 %v6410_v38, %s8158_s9  ;;  %6610 = vrot.lane.b32.xlu1 %v6570_v27, %s8157_s8  ;;  %v10895_v38 = vld [vmem:[#allocation16_spill] sm:$0xff]  ;;  %v10253_v36 = vpop.permute.xlu0 %5867 }
 0x2c8   : > { %v5985_v27 = vmul.f32 %v10895_v38, %v10237_v50 }
 0x2cb   : > { %6008 = vrot.lane.b32.xlu0 %v5973_v21, %s8158_s9  ;;  %6014 = vrot.lane.b32.xlu1 %v5976_v47, %s8158_s9  ;;  %v6145_v21 = vmul.f32 %v9260_v57, %v10237_v50  ;;  %v10249_v47 = vld [vmem:[#allocation2 + $0x130] sm:$0xff]  ;;  %v10265_v57 = vpop.permute.xlu0 %7191 }
 0x2cc   : > { %10897 = vst [vmem:[#allocation91_spill] sm:$0xff] %v10265_v57  ;;  %v10281_v57 = vld [vmem:[#allocation2 + $0xe0] sm:$0xff]  ;;  %v10379_v50 = vld [vmem:[#allocation2 + $0xb0] sm:$0xff] }
 0x2cf   : > { %6012 = vrot.lane.b32.xlu0 %v5975_v10, %s8158_s9  ;;  %6168 = vrot.lane.b32.xlu1 %v6133_v6, %s8157_s8  ;;  %v6412_v10 = vmul.f32 %v9379_v48, %v10247_v26  ;;  %v6411_v6 = vmul.f32 %v9384_v29, %v10249_v47  ;;  %v10900_v29 = vld [vmem:[#allocation51_spill] sm:$0xff] }
 0x2d3   : > { %6174 = vrot.lane.b32.xlu0 %v6136_v39, %s8157_s8  ;;  %6172 = vrot.lane.b32.xlu1 %v6135_v22, %s8157_s8  ;;  %v10259_v39 = vpop.permute.xlu1 %7195  ;;  %v10261_v22 = vld [vmem:[#allocation2 + $0x190] sm:$0xff] }
 0x2d4   : > { %10896 = vst [vmem:[#allocation16_spill] sm:$0xff] %v10259_v39  ;;  %v10293_v39 = vld [vmem:[#allocation2 + $0x30] sm:$0xff] }
 0x2d7   : > { %6434 = vrot.lane.b32.xlu0 %v6402_v2, %s8158_s9  ;;  %6594 = vrot.lane.b32.xlu1 %v6562_v1, %s8157_s8  ;;  %v6414_v2 = vmul.f32 %v9386_v61, %v10261_v22  ;;  %v10898_v1 = vld [vmem:[#allocation55_spill] sm:$0xff]  ;;  %v10273_v48 = vpop.permute.xlu1 %7199 }
 0x2d8   : > { %v6572_v38 = vmul.f32 %v10898_v1, %v10247_v26  ;;  %10899 = vst [vmem:[#allocation55_spill] sm:$0xff] %v10273_v48  ;;  %v10904_v61 = vld [vmem:[#allocation15_spill] sm:$0xff]  ;;  %v10905_v1 = vld [vmem:[#allocation17_spill] sm:$0xff] }
 0x2db   : > { %6032 = vrot.lane.b32.xlu0 %v5985_v27, %s8158_s9  ;;  %6192 = vrot.lane.b32.xlu1 %v6145_v21, %s8157_s8  ;;  %v6571_v27 = vmul.f32 %v10900_v29, %v10249_v47  ;;  %v10901_v21 = vld [vmem:[#allocation57_spill] sm:$0xff]  ;;  %v10289_v48 = vpop.permute.xlu1 %7207  ;;  %v10291_v29 = vld [vmem:[#allocation2 + $0x50] sm:$0xff] }
 0x2dc   : > { %10903 = vst [vmem:[#allocation57_spill] sm:$0xff] %v10281_v57  ;;  %10906 = vst [vmem:[#allocation15_spill] sm:$0xff] %v10289_v48 }
 0x2df   : > { %6454 = vrot.lane.b32.xlu0 %v6412_v10, %s8158_s9  ;;  %6452 = vrot.lane.b32.xlu1 %v6411_v6, %s8158_s9  ;;  %v6574_v10 = vmul.f32 %v10901_v21, %v10261_v22  ;;  %v10279_v6 = vpop.permute.xlu0 %7203 }
 0x2e0   : > { %10902 = vst [vmem:[#allocation51_spill] sm:$0xff] %v10279_v6 }
 0x2e3   : > { %6458 = vrot.lane.b32.xlu0 %v6414_v2, %s8158_s9  ;;  %6614 = vrot.lane.b32.xlu1 %v6572_v38, %s8157_s8  ;;  %v5977_v2 = vmul.f32 %v10904_v61, %v10281_v57  ;;  %v6137_v38 = vmul.f32 %v10905_v1, %v10281_v57  ;;  %v10297_v21 = vpop.permute.xlu0 %7211  ;;  %v10909_v61 = vld [vmem:[#allocation31_spill] sm:$0xff]  ;;  %v10307_v1 = vpop.permute.xlu1 %7215 }
 0x2e4   : > { %10907 = vst [vmem:[#allocation17_spill] sm:$0xff] %v10297_v21  ;;  %v6403_v6 = vmul.f32 %v10909_v61, %v10293_v39 }
 0x2e7   : > { %6612 = vrot.lane.b32.xlu0 %v6571_v27, %s8157_s8  ;;  %6618 = vrot.lane.b32.xlu1 %v6574_v10, %s8157_s8  ;;  %v10908_v27 = vld [vmem:[#allocation36_spill] sm:$0xff]  ;;  %v10313_v57 = vpop.permute.xlu0 %7219  ;;  %v10321_v55 = vpop.permute.xlu1 %7223 }
 0x2e8   : > { %v6404_v10 = vmul.f32 %v10908_v27, %v10291_v29  ;;  %10910 = vst [vmem:[#allocation36_spill] sm:$0xff] %v10307_v1  ;;  %10913 = vst [vmem:[#allocation31_spill] sm:$0xff] %v10313_v57  ;;  %v10914_v27 = vld [vmem:[#allocation46_spill] sm:$0xff]  ;;  %v10323_v1 = vld [vmem:[#allocation2 + $0x1d0] sm:$0xff] }
 0x2e9   : > { %v6563_v61 = vmul.f32 %v10914_v27, %v10293_v39  ;;  %v10919_v27 = vld [vmem:[#allocation41_spill] sm:$0xff] }
 0x2eb   : > { %6016 = vrot.lane.b32.xlu0 %v5977_v2, %s8158_s9  ;;  %6176 = vrot.lane.b32.xlu1 %v6137_v38, %s8157_s8  ;;  %v10911_v2 = vld [vmem:[#allocation33_spill] sm:$0xff]  ;;  %v10912_v38 = vld [vmem:[#allocation48_spill] sm:$0xff] }
 0x2ec   : > { %v6406_v48 = vmul.f32 %v10911_v2, %v10303_v45  ;;  %v6564_v21 = vmul.f32 %v10912_v38, %v10291_v29  ;;  %10916 = vst [vmem:[#allocation33_spill] sm:$0xff] %v10321_v55  ;;  %v10325_v2 = vld [vmem:[#allocation2 + $0x170] sm:$0xff]  ;;  %v10329_v38 = vpop.permute.xlu0 %7227 }
 0x2ed   : > { %10917 = vst [vmem:[#allocation48_spill] sm:$0xff] %v10329_v38  ;;  %v6413_v57 = vmul.f32 %v10919_v27, %v10325_v2 }
 0x2ef   : > { %6438 = vrot.lane.b32.xlu0 %v6404_v10, %s8158_s9  ;;  %6436 = vrot.lane.b32.xlu1 %v6403_v6, %s8158_s9  ;;  %v10915_v10 = vld [vmem:[#allocation50_spill] sm:$0xff] }
 0x2f0   : > { %v6566_v6 = vmul.f32 %v10915_v10, %v10303_v45  ;;  %v10339_v10 = vpop.permute.xlu1 %7231  ;;  %v10345_v23 = vpop.permute.xlu0 %7235 }
 0x2f1   : > { %10920 = vst [vmem:[#allocation46_spill] sm:$0xff] %v10339_v10  ;;  %10923 = vst [vmem:[#allocation50_spill] sm:$0xff] %v10345_v23  ;;  %v10355_v10 = vld [vmem:[#allocation2 + $0x101] sm:$0xff] }
 0x2f3   : > { %6442 = vrot.lane.b32.xlu0 %v6406_v48, %s8158_s9  ;;  %6598 = vrot.lane.b32.xlu1 %v6564_v21, %s8157_s8  ;;  %v10918_v48 = vld [vmem:[#allocation42_spill] sm:$0xff] }
 0x2f4   : > { %v6416_v21 = vmul.f32 %v10918_v48, %v10323_v1  ;;  %v10924_v48 = vld [vmem:[#allocation54_spill] sm:$0xff]  ;;  %v10353_v9 = vpop.permute.xlu1 %7239 }
 0x2f5   : > { %v6575_v27 = vmul.f32 %v10924_v48, %v10335_v32  ;;  %10926 = vst [vmem:[#allocation42_spill] sm:$0xff] %v10353_v9  ;;  %v10367_v48 = vld [vmem:[#allocation2 + $0xd0] sm:$0xff] }
 0x2f7   : > { %6596 = vrot.lane.b32.xlu0 %v6563_v61, %s8157_s8  ;;  %6602 = vrot.lane.b32.xlu1 %v6566_v6, %s8157_s8  ;;  %v10921_v61 = vld [vmem:[#allocation53_spill] sm:$0xff]  ;;  %v10922_v6 = vld [vmem:[#allocation43_spill] sm:$0xff] }
 0x2f8   : > { %v6573_v55 = vmul.f32 %v10921_v61, %v10325_v2  ;;  %v6415_v38 = vmul.f32 %v10922_v6, %v10335_v32  ;;  %v10359_v61 = vpop.permute.xlu0 %7243  ;;  %v6842_v6 = vmul.f32 %v9981_v54, %v10355_v10  ;;  %10928 = vst [vmem:[#allocation53_spill] sm:$0xff] %v10367_v48  ;;  %v10931_v54 = vld [vmem:[#allocation30_spill] sm:$0xff]  ;;  %10932 = vst [vmem:[#allocation43_spill] sm:$0xff] %v10379_v50 }
 0x2f9   : > { %10927 = vst [vmem:[#allocation41_spill] sm:$0xff] %v10359_v61  ;;  %v10929_v61 = vld [vmem:[#allocation38_spill] sm:$0xff]  ;;  %v6314_v19 = vmul.f32 %v10931_v54, %v10183_v8 }
 0x2fa   : > { %v10935_v8 = vld [vmem:[#allocation6_spill] sm:$0xff] }
 0x2fb   : > { %6462 = vrot.lane.b32.xlu0 %v6416_v21, %s8158_s9  ;;  %6456 = vrot.lane.b32.xlu1 %v6413_v57, %s8158_s9  ;;  %v10925_v21 = vld [vmem:[#allocation59_spill] sm:$0xff] }
 0x2fc   : > { %v6576_v57 = vmul.f32 %v10925_v21, %v10323_v1  ;;  %v10369_v21 = vld [vmem:[#allocation2 + $0x70] sm:$0xff] }
 0x2ff   : > { %6616 = vrot.lane.b32.xlu0 %v6573_v55, %s8157_s8  ;;  %6460 = vrot.lane.b32.xlu1 %v6415_v38, %s8158_s9  ;;  %v5882_v55 = vmul.f32 %v10205_v11, %v10007_v5  ;;  %v7002_v38 = vmul.f32 %v10092_v33, %v10355_v10  ;;  %v6408_v5 = vmul.f32 %v10929_v61, %v10367_v48  ;;  %v10930_v11 = vld [vmem:[#allocation37_spill] sm:$0xff]  ;;  %v10934_v61 = vld [vmem:[#allocation39_spill] sm:$0xff] }
 0x300   : > { %v6405_v33 = vmul.f32 %v10930_v11, %v10369_v21 }
 0x303   : > { %6620 = vrot.lane.b32.xlu0 %v6575_v27, %s8157_s8  ;;  %6622 = vrot.lane.b32.xlu1 %v6576_v57, %s8157_s8 }
 0x304   : > { %v6179_v57 = vpop.permute.xlu0 %6178 }
 0x305   : > { %v6019_v9 = vpop.permute.xlu1 %6018 }
 0x306   : > { %v6058_v27 = vadd.f32 %v6019_v9, %v5882_v55  ;;  %v10933_v9 = vld [vmem:[#allocation45_spill] sm:$0xff] }
 0x307   : > { %7042 = vrot.lane.b32.xlu0 %v7002_v38, %s8157_s8  ;;  %6882 = vrot.lane.b32.xlu1 %v6842_v6, %s8158_s9  ;;  %v6565_v55 = vmul.f32 %v10933_v9, %v10369_v21  ;;  %v6407_v6 = vmul.f32 %v10934_v61, %v10379_v50  ;;  %v10397_v9 = vld [vmem:[#allocation2 + $0x1] sm:$0xff] }
 0x308   : > { %v6218_v23 = vadd.f32 %v6179_v57, %v6058_v27  ;;  %v5874_v27 = vmul.f32 %v10935_v8, %v10063_v60  ;;  %v10938_v60 = vld [vmem:[#allocation11_spill] sm:$0xff]  ;;  %v10939_v8 = vld [vmem:[#allocation18_spill] sm:$0xff] }
 0x30a   : > { %v10383_v38 = vadd.f32 %v6314_v19, %v6218_v23  ;;  %v10937_v19 = vld [vmem:[#allocation52_spill] sm:$0xff] }
 0x30b   : > { %6446 = vrot.lane.b32.xlu0 %v6408_v5, %s8158_s9  ;;  %6440 = vrot.lane.b32.xlu1 %v6405_v33, %s8158_s9  ;;  %v10936_v5 = vld [vmem:[#allocation47_spill] sm:$0xff]  ;;  %v6568_v23 = vmul.f32 %v10937_v19, %v10367_v48  ;;  %v10411_v48 = vld [vmem:[#allocation2 + $0x1f0] sm:$0xff] }
 0x30c   : > { %v6567_v33 = vmul.f32 %v10936_v5, %v10379_v50  ;;  %v6306_v5 = vmul.f32 %v10939_v8, %v10225_v42 }
 0x30f   : > { %6600 = vrot.lane.b32.xlu0 %v6565_v55, %s8157_s8  ;;  %6444 = vrot.lane.b32.xlu1 %v6407_v6, %s8158_s9  ;;  %v5884_v55 = vmul.f32 %v10219_v43, %v10082_v0  ;;  %v5883_v6 = vmul.f32 %v10938_v60, %v10087_v25  ;;  %v5886_v25 = vmul.f32 %v10235_v30, %v10099_v4  ;;  %v10425_v60 = vld [vmem:[#allocation2 + $0x141] sm:$0xff]  ;;  %v10944_v30 = vld [vmem:[#allocation80_spill] sm:$0xff] }
 0x311   : > { %v6163_v57 = vpop.permute.xlu0 %6162  ;;  %v6003_v11 = vpop.permute.xlu1 %6002 }
 0x312   : > { %v6050_v54 = vadd.f32 %v6003_v11, %v5874_v27  ;;  %v6994_v27 = vmul.f32 %v10103_v15, %v10397_v9  ;;  %v10940_v11 = vld [vmem:[#allocation72_spill] sm:$0xff] }
 0x313   : > { %6604 = vrot.lane.b32.xlu0 %v6567_v33, %s8157_s8  ;;  %6606 = vrot.lane.b32.xlu1 %v6568_v23, %s8157_s8  ;;  %v6834_v33 = vmul.f32 %v10940_v11, %v10397_v9  ;;  %v10941_v15 = vld [vmem:[#allocation56_spill] sm:$0xff] }
 0x314   : > { %v6210_v61 = vadd.f32 %v6163_v57, %v6050_v54  ;;  %v6577_v57 = vmul.f32 %v10941_v15, %v10411_v48  ;;  %v10942_v54 = vld [vmem:[#allocation44_spill] sm:$0xff]  ;;  %v10946_v15 = vld [vmem:[#allocation34_spill] sm:$0xff] }
 0x315   : > { %v6021_v14 = vpop.permute.xlu0 %6020  ;;  %v6023_v50 = vpop.permute.xlu1 %6022 }
 0x316   : > { %v6059_v19 = vadd.f32 %v6021_v14, %v5883_v6  ;;  %v6060_v23 = vadd.f32 %v6023_v50, %v5884_v55  ;;  %v10413_v0 = vadd.f32 %v6306_v5, %v6210_v61  ;;  %v6417_v14 = vmul.f32 %v10942_v54, %v10411_v48  ;;  %v10423_v50 = vld [vmem:[#allocation2 + $0x121] sm:$0xff]  ;;  %v10943_v6 = vld [vmem:[#allocation32_spill] sm:$0xff] }
 0x317   : > { %7026 = vrot.lane.b32.xlu0 %v6994_v27, %s8157_s8  ;;  %6866 = vrot.lane.b32.xlu1 %v6834_v33, %s8158_s9  ;;  %v6316_v8 = vmul.f32 %v10943_v6, %v10247_v26  ;;  %v6843_v5 = vmul.f32 %v10944_v30, %v10423_v50  ;;  %v6844_v33 = vmul.f32 %v10019_v49, %v10425_v60  ;;  %v10945_v26 = vld [vmem:[#allocation23_spill] sm:$0xff] }
 0x318   : > { %v10947_v54 = vld [vmem:[#allocation7_spill] sm:$0xff]  ;;  %v5876_v49 = vmul.f32 %v10157_v46, %v10121_v63  ;;  %v7003_v63 = vmul.f32 %v10181_v58, %v10423_v50 }
 0x319   : > { %v6183_v43 = vpop.permute.xlu0 %6182  ;;  %v6027_v42 = vpop.permute.xlu1 %6026 }
 0x31a   : > { %v6220_v55 = vadd.f32 %v6183_v43, %v6060_v23  ;;  %v6062_v61 = vadd.f32 %v6027_v42, %v5886_v25  ;;  %v10437_v43 = vld [vmem:[#allocation2 + $0x181] sm:$0xff]  ;;  %v6315_v42 = vmul.f32 %v10945_v26, %v10249_v47  ;;  %v7004_v47 = vmul.f32 %v10109_v62, %v10425_v60 }
 0x31b   : > { %6624 = vrot.lane.b32.xlu0 %v6577_v57, %s8157_s8  ;;  %6464 = vrot.lane.b32.xlu1 %v6417_v14, %s8158_s9  ;;  %v6318_v57 = vmul.f32 %v10946_v15, %v10261_v22  ;;  %v5875_v14 = vmul.f32 %v10947_v54, %v10119_v7  ;;  %v6846_v22 = vmul.f32 %v10051_v44, %v10437_v43  ;;  %v10465_v44 = vld [vmem:[#allocation2 + $0xf0] sm:$0xff]  ;;  %v10477_v54 = vld [vmem:[#allocation2 + $0x21] sm:$0xff] }
 0x31c   : > { %v10431_v4 = vadd.f32 %v6316_v8, %v6220_v55  ;;  %v5878_v7 = vmul.f32 %v10173_v17, %v10131_v56  ;;  %v7006_v62 = vmul.f32 %v10125_v52, %v10437_v43  ;;  %v10950_v52 = vld [vmem:[#allocation40_spill] sm:$0xff] }
 0x31d   : > { %v6187_v27 = vpop.permute.xlu0 %6186  ;;  %v6181_v11 = vpop.permute.xlu1 %6180 }
 0x31e   : > { %v6222_v23 = vadd.f32 %v6187_v27, %v6062_v61  ;;  %v6219_v25 = vadd.f32 %v6181_v11, %v6059_v19 }
 0x31f   : > { %6884 = vrot.lane.b32.xlu0 %v6843_v5, %s8158_s9  ;;  %6886 = vrot.lane.b32.xlu1 %v6844_v33, %s8158_s9  ;;  %v10948_v33 = vld [vmem:[#allocation24_spill] sm:$0xff] }
 0x320   : > { %v10449_v55 = vadd.f32 %v6315_v42, %v6219_v25  ;;  %v10451_v19 = vadd.f32 %v6318_v57, %v6222_v23  ;;  %v6308_v23 = vmul.f32 %v10948_v33, %v10291_v29  ;;  %v10949_v25 = vld [vmem:[#allocation49_spill] sm:$0xff]  ;;  %v6409_v42 = vmul.f32 %v10950_v52, %v10465_v44  ;;  %v10951_v29 = vld [vmem:[#allocation22_spill] sm:$0xff] }
 0x321   : > { %v6005_v61 = vpop.permute.xlu0 %6004  ;;  %v6007_v6 = vpop.permute.xlu1 %6006  ;;  %v6569_v26 = vmul.f32 %v10949_v25, %v10465_v44  ;;  %v10956_v25 = vld [vmem:[#allocation25_spill] sm:$0xff] }
 0x322   : > { %v6051_v8 = vadd.f32 %v6005_v61, %v5875_v14  ;;  %v6052_v30 = vadd.f32 %v6007_v6, %v5876_v49  ;;  %v10479_v14 = vld [vmem:[#allocation2 + $0x41] sm:$0xff]  ;;  %v6307_v49 = vmul.f32 %v10951_v29, %v10293_v39 }
 0x323   : > { %7046 = vrot.lane.b32.xlu0 %v7004_v47, %s8157_s8  ;;  %6890 = vrot.lane.b32.xlu1 %v6846_v22, %s8158_s9  ;;  %v10952_v61 = vld [vmem:[#allocation26_spill] sm:$0xff]  ;;  %v5888_v47 = vmul.f32 %v10253_v36, %v10151_v31  ;;  %v10953_v22 = vld [vmem:[#allocation12_spill] sm:$0xff]  ;;  %v10954_v39 = vld [vmem:[#allocation79_spill] sm:$0xff] }
 0x324   : > { %v6310_v6 = vmul.f32 %v10952_v61, %v10303_v45  ;;  %v6836_v45 = vmul.f32 %v9873_v18, %v10479_v14  ;;  %v10955_v31 = vld [vmem:[#allocation13_spill] sm:$0xff] }
 0x325   : > { %v6167_v46 = vpop.permute.xlu0 %6166  ;;  %v6011_v5 = vpop.permute.xlu1 %6010 }
 0x326   : > { %v6212_v27 = vadd.f32 %v6167_v46, %v6052_v30  ;;  %v6054_v11 = vadd.f32 %v6011_v5, %v5878_v7  ;;  %v6835_v5 = vmul.f32 %v10954_v39, %v10477_v54 }
 0x327   : > { %7050 = vrot.lane.b32.xlu0 %v7006_v62, %s8157_s8  ;;  %7044 = vrot.lane.b32.xlu1 %v7003_v63, %s8157_s8 }
 0x328   : > { %v10471_v56 = vadd.f32 %v6308_v23, %v6212_v27  ;;  %v6996_v23 = vmul.f32 %v10117_v41, %v10479_v14  ;;  %v6995_v41 = vmul.f32 %v9993_v24, %v10477_v54  ;;  %v10959_v24 = vld [vmem:[#allocation81_spill] sm:$0xff] }
 0x329   : > { %v6171_v17 = vpop.permute.xlu0 %6170  ;;  %v6165_v58 = vpop.permute.xlu1 %6164 }
 0x32a   : > { %v6214_v15 = vadd.f32 %v6171_v17, %v6054_v11  ;;  %v6211_v57 = vadd.f32 %v6165_v58, %v6051_v8  ;;  %v5885_v8 = vmul.f32 %v10953_v22, %v10153_v51  ;;  %v10499_v11 = vld [vmem:[#allocation2 + $0x81] sm:$0xff]  ;;  %v5887_v51 = vmul.f32 %v10955_v31, %v10163_v12  ;;  %v10961_v31 = vld [vmem:[#allocation64_spill] sm:$0xff] }
 0x32b   : > { %6608 = vrot.lane.b32.xlu0 %v6569_v26, %s8157_s8  ;;  %6448 = vrot.lane.b32.xlu1 %v6409_v42, %s8158_s9  ;;  %v6838_v17 = vmul.f32 %v9908_v40, %v10499_v11  ;;  %v6317_v26 = vmul.f32 %v10956_v25, %v10325_v2  ;;  %v10519_v40 = vld [vmem:[#allocation2 + $0x161] sm:$0xff] }
 0x32c   : > { %v10491_v30 = vadd.f32 %v6307_v49, %v6211_v57  ;;  %v10493_v7 = vadd.f32 %v6310_v6, %v6214_v15  ;;  %v6998_v15 = vmul.f32 %v10027_v13, %v10499_v11  ;;  %v10521_v49 = vld [vmem:[#allocation2 + $0x1c1] sm:$0xff] }
 0x32d   : > { %v6025_v63 = vpop.permute.xlu0 %6024  ;;  %v6031_v46 = vpop.permute.xlu1 %6030  ;;  %v10957_v2 = vld [vmem:[#allocation35_spill] sm:$0xff]  ;;  %v6848_v39 = vmul.f32 %v10080_v16, %v10521_v49  ;;  %v7005_v16 = vmul.f32 %v10199_v28, %v10519_v40 }
 0x32e   : > { %v6061_v62 = vadd.f32 %v6025_v63, %v5885_v8  ;;  %v6064_v27 = vadd.f32 %v6031_v46, %v5888_v47  ;;  %v6320_v61 = vmul.f32 %v10957_v2, %v10323_v1  ;;  %v10958_v6 = vld [vmem:[#allocation27_spill] sm:$0xff]  ;;  %v6845_v8 = vmul.f32 %v10959_v24, %v10519_v40  ;;  %v10966_v24 = vld [vmem:[#allocation53_spill] sm:$0xff] }
 0x32f   : > { %6868 = vrot.lane.b32.xlu0 %v6835_v5, %s8158_s9  ;;  %6870 = vrot.lane.b32.xlu1 %v6836_v45, %s8158_s9  ;;  %v6319_v47 = vmul.f32 %v10958_v6, %v10335_v32  ;;  %v10537_v1 = vld [vmem:[#allocation2 + $0x1a1] sm:$0xff]  ;;  %v10960_v45 = vld [vmem:[#allocation8_spill] sm:$0xff] }
 0x331   : > { %v6029_v36 = vpop.permute.xlu0 %6028  ;;  %v6185_v33 = vpop.permute.xlu1 %6184 }
 0x332   : > { %v6063_v18 = vadd.f32 %v6029_v36, %v5887_v51  ;;  %v6221_v58 = vadd.f32 %v6185_v33, %v6061_v62  ;;  %v5877_v62 = vmul.f32 %v10960_v45, %v10193_v3  ;;  %v6746_v51 = vmul.f32 %v10961_v31, %v10355_v10 }
 0x333   : > { %7030 = vrot.lane.b32.xlu0 %v6996_v23, %s8157_s8  ;;  %6874 = vrot.lane.b32.xlu1 %v6838_v17, %s8158_s9 }
 0x334   : > { %v10513_v52 = vadd.f32 %v6317_v26, %v6221_v58  ;;  %v10562_v26 = vld [vmem:[#allocation2 + $0x61] sm:$0xff] }
 0x335   : > { %v6191_v12 = vpop.permute.xlu0 %6190  ;;  %v6189_v42 = vpop.permute.xlu1 %6188 }
 0x336   : > { %v6224_v57 = vadd.f32 %v6191_v12, %v6064_v27  ;;  %v6223_v29 = vadd.f32 %v6189_v42, %v6063_v18  ;;  %v5880_v27 = vmul.f32 %v10187_v20, %v10195_v53  ;;  %v10962_v20 = vld [vmem:[#allocation9_spill] sm:$0xff]  ;;  %v7007_v53 = vmul.f32 %v10215_v34, %v10537_v1  ;;  %v10564_v12 = vld [vmem:[#allocation2 + $0xc1] sm:$0xff] }
 0x337   : > { %7034 = vrot.lane.b32.xlu0 %v6998_v15, %s8157_s8  ;;  %7028 = vrot.lane.b32.xlu1 %v6995_v41, %s8157_s8  ;;  %v5879_v3 = vmul.f32 %v10962_v20, %v10207_v59  ;;  %v10963_v42 = vld [vmem:[#allocation19_spill] sm:$0xff]  ;;  %v10974_v20 = vld [vmem:[#allocation61_spill] sm:$0xff] }
 0x338   : > { %v10529_v13 = vadd.f32 %v6320_v61, %v6224_v57  ;;  %v10531_v22 = vadd.f32 %v6319_v47, %v6223_v29  ;;  %v6309_v15 = vmul.f32 %v10963_v42, %v10369_v21  ;;  %v10964_v57 = vld [vmem:[#allocation74_spill] sm:$0xff]  ;;  %v10967_v21 = vld [vmem:[#allocation28_spill] sm:$0xff] }
 0x339   : > { %v6451_v63 = vpop.permute.xlu0 %6450  ;;  %v6611_v46 = vpop.permute.xlu1 %6610  ;;  %v10965_v29 = vld [vmem:[#allocation82_spill] sm:$0xff] }
 0x33a   : > { %v6490_v32 = vadd.f32 %v6451_v63, %v10383_v38  ;;  %v6847_v38 = vmul.f32 %v9919_v37, %v10537_v1  ;;  %v7008_v37 = vmul.f32 %v10141_v35, %v10521_v49  ;;  %v6837_v35 = vmul.f32 %v10964_v57, %v10562_v26  ;;  %v10576_v47 = vld [vmem:[#allocation2 + $0xa1] sm:$0xff] }
 0x33b   : > { %6888 = vrot.lane.b32.xlu0 %v6845_v8, %s8158_s9  ;;  %6894 = vrot.lane.b32.xlu1 %v6848_v39, %s8158_s9  ;;  %v6840_v2 = vmul.f32 %v10965_v29, %v10564_v12  ;;  %v6312_v8 = vmul.f32 %v10967_v21, %v10966_v24  ;;  %v10968_v63 = vld [vmem:[#allocation43_spill] sm:$0xff] }
 0x33c   : > { %v6650_v5 = vadd.f32 %v6611_v46, %v6490_v32  ;;  %v10969_v46 = vld [vmem:[#allocation20_spill] sm:$0xff]  ;;  %v10605_v42 = vld [vmem:[#allocation2 + $0x1e1] sm:$0xff] }
 0x33d   : > { %v6009_v36 = vpop.permute.xlu0 %6008  ;;  %v6015_v33 = vpop.permute.xlu1 %6014  ;;  %v6311_v39 = vmul.f32 %v10969_v46, %v10968_v63  ;;  %v10980_v46 = vld [vmem:[#allocation78_spill] sm:$0xff] }
 0x33e   : > { %v6053_v23 = vadd.f32 %v6009_v36, %v5877_v62  ;;  %v6056_v17 = vadd.f32 %v6015_v33, %v5880_v27  ;;  %v10552_v18 = vadd.f32 %v6746_v51, %v6650_v5  ;;  %v10970_v27 = vld [vmem:[#allocation76_spill] sm:$0xff]  ;;  %v10971_v51 = vld [vmem:[#allocation85_spill] sm:$0xff] }
 0x33f   : > { %6892 = vrot.lane.b32.xlu0 %v6847_v38, %s8158_s9  ;;  %7048 = vrot.lane.b32.xlu1 %v7005_v16, %s8157_s8  ;;  %v6839_v31 = vmul.f32 %v10970_v27, %v10576_v47  ;;  %v6997_v16 = vmul.f32 %v10971_v51, %v10562_v26  ;;  %v10972_v33 = vld [vmem:[#allocation89_spill] sm:$0xff] }
 0x341   : > { %v6013_v28 = vpop.permute.xlu0 %6012  ;;  %v6169_v10 = vpop.permute.xlu1 %6168 }
 0x342   : > { %v6055_v58 = vadd.f32 %v6013_v28, %v5879_v3  ;;  %v6213_v25 = vadd.f32 %v6169_v10, %v6053_v23  ;;  %v10973_v23 = vld [vmem:[#allocation14_spill] sm:$0xff]  ;;  %v6738_v3 = vmul.f32 %v10974_v20, %v10397_v9  ;;  %v10975_v10 = vld [vmem:[#allocation84_spill] sm:$0xff]  ;;  %v10983_v20 = vld [vmem:[#allocation71_spill] sm:$0xff] }
 0x343   : > { %7054 = vrot.lane.b32.xlu0 %v7008_v37, %s8157_s8  ;;  %7052 = vrot.lane.b32.xlu1 %v7007_v53, %s8157_s8  ;;  %v7000_v37 = vmul.f32 %v10975_v10, %v10564_v12  ;;  %v10986_v10 = vld [vmem:[#allocation10_spill] sm:$0xff] }
 0x344   : > { %v10570_v59 = vadd.f32 %v6309_v15, %v6213_v25 }
 0x345   : > { %v6175_v34 = vpop.permute.xlu0 %6174  ;;  %v6173_v41 = vpop.permute.xlu1 %6172 }
 0x346   : > { %v6216_v61 = vadd.f32 %v6175_v34, %v6056_v17  ;;  %v6215_v6 = vadd.f32 %v6173_v41, %v6055_v58  ;;  %v5889_v17 = vmul.f32 %v10973_v23, %v10972_v33  ;;  %v10976_v58 = vld [vmem:[#allocation86_spill] sm:$0xff]  ;;  %v10977_v41 = vld [vmem:[#allocation29_spill] sm:$0xff] }
 0x347   : > { %6872 = vrot.lane.b32.xlu0 %v6837_v35, %s8158_s9  ;;  %6878 = vrot.lane.b32.xlu1 %v6840_v2, %s8158_s9  ;;  %v6999_v25 = vmul.f32 %v10976_v58, %v10576_v47  ;;  %v6321_v57 = vmul.f32 %v10977_v41, %v10411_v48  ;;  %v10978_v35 = vld [vmem:[#allocation87_spill] sm:$0xff] }
 0x348   : > { %v10584_v32 = vadd.f32 %v6312_v8, %v6216_v61  ;;  %v10586_v5 = vadd.f32 %v6311_v39, %v6215_v6  ;;  %v10979_v2 = vld [vmem:[#allocation83_spill] sm:$0xff] }
 0x349   : > { %v6435_v45 = vpop.permute.xlu0 %6434  ;;  %v6595_v62 = vpop.permute.xlu1 %6594  ;;  %v6849_v61 = vmul.f32 %v10979_v2, %v10605_v42  ;;  %v7486_v48 = vld [vmem:[%s10791_s5 + $0xf] ss:$0 sm:$0xff] }
 0x34a   : > { %v6482_v38 = vadd.f32 %v6435_v45, %v10413_v0  ;;  %v10603_v0 = vld [vmem:[#allocation2 + $0xe1] sm:$0xff] }
 0x34b   : > { %6876 = vrot.lane.b32.xlu0 %v6839_v31, %s8158_s9  ;;  %7032 = vrot.lane.b32.xlu1 %v6997_v16, %s8157_s8  ;;  %v7001_v29 = vmul.f32 %v10978_v35, %v10603_v0  ;;  %v6841_v39 = vmul.f32 %v10980_v46, %v10603_v0 }
 0x34c   : > { %v6642_v36 = vadd.f32 %v6595_v62, %v6482_v38 }
 0x34d   : > { %v6033_v53 = vpop.permute.xlu0 %6032  ;;  %v6193_v28 = vpop.permute.xlu1 %6192 }
 0x34e   : > { %v6065_v15 = vadd.f32 %v6033_v53, %v5889_v17  ;;  %v10607_v34 = vadd.f32 %v6738_v3, %v6642_v36  ;;  %v6747_v3 = vmul.f32 %v10983_v20, %v10423_v50  ;;  %v10984_v53 = vld [vmem:[#allocation68_spill] sm:$0xff] }
 0x34f   : > { %7038 = vrot.lane.b32.xlu0 %v7000_v37, %s8157_s8  ;;  %7036 = vrot.lane.b32.xlu1 %v6999_v25, %s8157_s8 }
 0x350   : > { %v6225_v9 = vadd.f32 %v6193_v28, %v6065_v15  ;;  %v10985_v28 = vld [vmem:[#allocation57_spill] sm:$0xff] }
 0x351   : > { %v6455_v6 = vpop.permute.xlu0 %6454  ;;  %v6453_v24 = vpop.permute.xlu1 %6452 }
 0x352   : > { %v6491_v21 = vadd.f32 %v6453_v24, %v10449_v55  ;;  %v10618_v8 = vadd.f32 %v6321_v57, %v6225_v9  ;;  %v6492_v63 = vadd.f32 %v6455_v6, %v10431_v4  ;;  %v10981_v55 = vld [vmem:[#allocation66_spill] sm:$0xff]  ;;  %v10982_v4 = vld [vmem:[#allocation88_spill] sm:$0xff]  ;;  %v10987_v57 = vld [vmem:[#allocation21_spill] sm:$0xff] }
 0x353   : > { %6896 = vrot.lane.b32.xlu0 %v6849_v61, %s8158_s9  ;;  %7040 = vrot.lane.b32.xlu1 %v7001_v29, %s8157_s8  ;;  %v6748_v31 = vmul.f32 %v10981_v55, %v10425_v60  ;;  %v7009_v38 = vmul.f32 %v10982_v4, %v10605_v42  ;;  %v6750_v60 = vmul.f32 %v10984_v53, %v10437_v43 }
 0x354   : > { %v6313_v35 = vmul.f32 %v10987_v57, %v10465_v44 }
 0x355   : > { %v6459_v45 = vpop.permute.xlu0 %6458  ;;  %v6615_v62 = vpop.permute.xlu1 %6614 }
 0x356   : > { %v6652_v27 = vadd.f32 %v6615_v62, %v6492_v63  ;;  %v6494_v51 = vadd.f32 %v6459_v45, %v10451_v19  ;;  %v5881_v19 = vmul.f32 %v10986_v10, %v10985_v28  ;;  %v10988_v63 = vld [vmem:[#allocation63_spill] sm:$0xff] }
 0x357   : > { %6880 = vrot.lane.b32.xlu0 %v6841_v39, %s8158_s9  ;;  %7247 = vperm.xlu1 %7932, %v7486_v48   ;;  %v6740_v48 = vmul.f32 %v10988_v63, %v10479_v14 }
 0x358   : > { %v10632_v16 = vadd.f32 %v6748_v31, %v6652_v27 }
 0x359   : > { %v6613_v36 = vpop.permute.xlu0 %6612  ;;  %v6619_v33 = vpop.permute.xlu1 %6618 }
 0x35a   : > { %v6651_v23 = vadd.f32 %v6613_v36, %v6491_v21  ;;  %v6654_v17 = vadd.f32 %v6619_v33, %v6494_v51 }
 0x35b   : > { %7056 = vrot.lane.b32.xlu0 %v7009_v38, %s8157_s8 }
 0x35c   : > { %v10643_v37 = vadd.f32 %v6747_v3, %v6651_v23  ;;  %v10645_v58 = vadd.f32 %v6750_v60, %v6654_v17 }
 0x35d   : > { %v6017_v25 = vpop.permute.xlu0 %6016  ;;  %v6177_v15 = vpop.permute.xlu1 %6176 }
 0x35e   : > { %v6057_v9 = vadd.f32 %v6017_v25, %v5881_v19 }
 0x360   : > { %v6217_v41 = vadd.f32 %v6177_v15, %v6057_v9 }
 0x361   : > { %v6439_v50 = vpop.permute.xlu0 %6438  ;;  %v6437_v29 = vpop.permute.xlu1 %6436 }
 0x362   : > { %v6483_v43 = vadd.f32 %v6437_v29, %v10491_v30  ;;  %v10650_v2 = vadd.f32 %v6313_v35, %v6217_v41  ;;  %v6484_v61 = vadd.f32 %v6439_v50, %v10471_v56  ;;  %v10989_v30 = vld [vmem:[#allocation58_spill] sm:$0xff]  ;;  %v10990_v56 = vld [vmem:[#allocation60_spill] sm:$0xff]  ;;  %v10994_v50 = vld [vmem:[#allocation31_spill] sm:$0xff] }
 0x363   : > { %v6739_v55 = vmul.f32 %v10989_v30, %v10477_v54  ;;  %v6742_v31 = vmul.f32 %v10990_v56, %v10499_v11  ;;  %v10991_v54 = vld [vmem:[#allocation73_spill] sm:$0xff]  ;;  %v10997_v30 = vld [vmem:[#allocation67_spill] sm:$0xff] }
 0x364   : > { %v6749_v20 = vmul.f32 %v10991_v54, %v10519_v40 }
 0x365   : > { %v6443_v6 = vpop.permute.xlu0 %6442  ;;  %v6599_v24 = vpop.permute.xlu1 %6598 }
 0x366   : > { %v6644_v21 = vadd.f32 %v6599_v24, %v6484_v61  ;;  %v6486_v46 = vadd.f32 %v6443_v6, %v10493_v7 }
 0x368   : > { %v10656_v39 = vadd.f32 %v6740_v48, %v6644_v21 }
 0x369   : > { %v6597_v44 = vpop.permute.xlu0 %6596  ;;  %v6603_v45 = vpop.permute.xlu1 %6602 }
 0x36a   : > { %v6643_v62 = vadd.f32 %v6597_v44, %v6483_v43  ;;  %v6646_v27 = vadd.f32 %v6603_v45, %v6486_v46 }
 0x36c   : > { %v10662_v51 = vadd.f32 %v6739_v55, %v6643_v62  ;;  %v10664_v4 = vadd.f32 %v6742_v31, %v6646_v27  ;;  %v10996_v27 = vld [vmem:[#allocation62_spill] sm:$0xff]  ;;  %v6743_v55 = vmul.f32 %v10997_v30, %v10576_v47  ;;  %v10999_v47 = vld [vmem:[#allocation77_spill] sm:$0xff]  ;;  %v11006_v30 = vld [vmem:[#allocation91_spill] sm:$0xff] }
 0x36d   : > { %v6463_v14 = vpop.permute.xlu0 %6462  ;;  %v6457_v7 = vpop.permute.xlu1 %6456 }
 0x36e   : > { %v6496_v38 = vadd.f32 %v6463_v14, %v10529_v13  ;;  %v6493_v36 = vadd.f32 %v6457_v7, %v10513_v52  ;;  %v10992_v13 = vld [vmem:[#allocation70_spill] sm:$0xff]  ;;  %v10993_v52 = vld [vmem:[#allocation75_spill] sm:$0xff] }
 0x36f   : > { %v6752_v19 = vmul.f32 %v10992_v13, %v10521_v49  ;;  %v6751_v25 = vmul.f32 %v10993_v52, %v10537_v1 }
 0x371   : > { %v6617_v33 = vpop.permute.xlu0 %6616  ;;  %v6461_v23 = vpop.permute.xlu1 %6460 }
 0x372   : > { %v6653_v17 = vadd.f32 %v6617_v33, %v6493_v36  ;;  %v6495_v11 = vadd.f32 %v6461_v23, %v10531_v22  ;;  %v10998_v36 = vld [vmem:[#allocation90_spill] sm:$0xff] }
 0x374   : > { %v10672_v3 = vadd.f32 %v6749_v20, %v6653_v17  ;;  %v6753_v17 = vmul.f32 %v10999_v47, %v10605_v42 }
 0x375   : > { %v6621_v53 = vpop.permute.xlu0 %6620  ;;  %v6623_v60 = vpop.permute.xlu1 %6622 }
 0x376   : > { %v6655_v28 = vadd.f32 %v6621_v53, %v6495_v11  ;;  %v6656_v10 = vadd.f32 %v6623_v60, %v6496_v38 }
 0x378   : > { %v10679_v15 = vadd.f32 %v6752_v19, %v6656_v10  ;;  %v10681_v9 = vadd.f32 %v6751_v25, %v6655_v28  ;;  %v11000_v10 = vld [vmem:[#allocation48_spill] sm:$0xff] }
 0x379   : > { %v7043_v40 = vpop.permute.xlu0 %7042  ;;  %v6883_v41 = vpop.permute.xlu1 %6882 }
 0x37a   : > { %v6922_v22 = vadd.f32 %v6883_v41, %v10552_v18  ;;  %v10995_v18 = vld [vmem:[#allocation65_spill] sm:$0xff]  ;;  %v11001_v41 = vld [vmem:[#allocation50_spill] sm:$0xff] }
 0x37b   : > { %v6741_v24 = vmul.f32 %v10995_v18, %v10562_v26 }
 0x37c   : > { %v7082_v57 = vadd.f32 %v7043_v40, %v6922_v22 }
 0x37d   : > { %v6447_v49 = vpop.permute.xlu0 %6446  ;;  %v6441_v35 = vpop.permute.xlu1 %6440 }
 0x37e   : > { %v7258_v1 = vadd.f32 %v10994_v50, %v7082_v57  ;;  %v6485_v29 = vadd.f32 %v6441_v35, %v10570_v59  ;;  %v6488_v21 = vadd.f32 %v6447_v49, %v10584_v32  ;;  %v6744_v59 = vmul.f32 %v10996_v27, %v10564_v12  ;;  %v11003_v50 = vld [vmem:[#allocation69_spill] sm:$0xff] }
 0x380   : > { %7274 = vst.msk [vmem:[%s10687_s19 + $0x40] sm:$0xff] %vm392_vm8, %v7258_v1  ;;  %v6745_v1 = vmul.f32 %v11003_v50, %v10603_v0 }
 0x381   : > { %v6601_v43 = vpop.permute.xlu0 %6600  ;;  %v6445_v61 = vpop.permute.xlu1 %6444 }
 0x382   : > { %v6645_v6 = vadd.f32 %v6601_v43, %v6485_v29  ;;  %v6487_v63 = vadd.f32 %v6445_v61, %v10586_v5 }
 0x384   : > { %v10697_v48 = vadd.f32 %v6741_v24, %v6645_v6 }
 0x385   : > { %v6605_v46 = vpop.permute.xlu0 %6604  ;;  %v6607_v44 = vpop.permute.xlu1 %6606 }
 0x386   : > { %v6647_v45 = vadd.f32 %v6605_v46, %v6487_v63  ;;  %v6648_v62 = vadd.f32 %v6607_v44, %v6488_v21  ;;  %v11004_v46 = vld [vmem:[#allocation16_spill] sm:$0xff] }
 0x388   : > { %v10703_v56 = vadd.f32 %v6744_v59, %v6648_v62  ;;  %v10705_v26 = vadd.f32 %v6743_v55, %v6647_v45  ;;  %v11005_v59 = vld [vmem:[#allocation51_spill] sm:$0xff] }
 0x389   : > { %v7027_v32 = vpop.permute.xlu0 %7026  ;;  %v6867_v31 = vpop.permute.xlu1 %6866 }
 0x38a   : > { %v6914_v5 = vadd.f32 %v6867_v31, %v10607_v34 }
 0x38c   : > { %v7074_v14 = vadd.f32 %v7027_v32, %v6914_v5 }
 0x38d   : > { %v6625_v7 = vpop.permute.xlu0 %6624  ;;  %v6465_v38 = vpop.permute.xlu1 %6464 }
 0x38e   : > { %v7250_v33 = vadd.f32 %v10998_v36, %v7074_v14  ;;  %v6497_v23 = vadd.f32 %v6465_v38, %v10618_v8  ;;  %v11007_v36 = vld [vmem:[#allocation46_spill] sm:$0xff] }
 0x390   : > { %7266 = vst.msk [vmem:[%s10687_s19] sm:$0xff] %vm392_vm8, %v7250_v33  ;;  %v6657_v12 = vadd.f32 %v6625_v7, %v6497_v23 }
 0x391   : > { %v6885_v54 = vpop.permute.xlu0 %6884  ;;  %v6887_v20 = vpop.permute.xlu1 %6886 }
 0x392   : > { %v10714_v11 = vadd.f32 %v6753_v17, %v6657_v12  ;;  %v6924_v34 = vadd.f32 %v6887_v20, %v10632_v16  ;;  %v6923_v8 = vadd.f32 %v6885_v54, %v10643_v37  ;;  %v11002_v16 = vld [vmem:[#allocation33_spill] sm:$0xff]  ;;  %v11009_v20 = vld [vmem:[#allocation42_spill] sm:$0xff] }
 0x393   : > { %v11008_v54 = vld [vmem:[#allocation41_spill] sm:$0xff] }
 0x395   : > { %v7047_v53 = vpop.permute.xlu0 %7046  ;;  %v6891_v60 = vpop.permute.xlu1 %6890 }
 0x396   : > { %v7084_v28 = vadd.f32 %v7047_v53, %v6924_v34  ;;  %v6926_v19 = vadd.f32 %v6891_v60, %v10645_v58 }
 0x398   : > { %v7260_v13 = vadd.f32 %v11000_v10, %v7084_v28 }
 0x399   : > { %v7051_v52 = vpop.permute.xlu0 %7050  ;;  %v7045_v25 = vpop.permute.xlu1 %7044 }
 0x39a   : > { %7276 = vst.msk [vmem:[%s10687_s19 + $0x50] sm:$0xff] %vm392_vm8, %v7260_v13  ;;  %v7086_v42 = vadd.f32 %v7051_v52, %v6926_v19  ;;  %v7083_v40 = vadd.f32 %v7045_v25, %v6923_v8  ;;  %v11010_v19 = vld [vmem:[#allocation55_spill] sm:$0xff] }
 0x39c   : > { %v7262_v22 = vadd.f32 %v11001_v41, %v7086_v42  ;;  %v7259_v57 = vadd.f32 %v11002_v16, %v7083_v40 }
 0x39d   : > { %v6609_v49 = vpop.permute.xlu0 %6608  ;;  %v6449_v35 = vpop.permute.xlu1 %6448 }
 0x39e   : > { %7278 = vst.msk [vmem:[%s10687_s19 + $0x60] sm:$0xff] %vm392_vm8, %v7262_v22  ;;  %7275 = vst.msk [vmem:[%s10687_s19 + $0x48] sm:$0xff] %vm392_vm8, %v7259_v57  ;;  %v6489_v37 = vadd.f32 %v6449_v35, %v10650_v2  ;;  %v11011_v22 = vld [vmem:[#allocation17_spill] sm:$0xff] }
 0x3a0   : > { %v6649_v58 = vadd.f32 %v6609_v49, %v6489_v37 }
 0x3a1   : > { %v6869_v29 = vpop.permute.xlu0 %6868  ;;  %v6871_v43 = vpop.permute.xlu1 %6870 }
 0x3a2   : > { %v6761_v61 = vadd.f32 %v6745_v1, %v6649_v58  ;;  %v6916_v6 = vadd.f32 %v6871_v43, %v10656_v39  ;;  %v6915_v63 = vadd.f32 %v6869_v29, %v10662_v51  ;;  %v11013_v58 = vld [vmem:[#allocation36_spill] sm:$0xff] }
 0x3a5   : > { %v7031_v18 = vpop.permute.xlu0 %7030  ;;  %v6875_v24 = vpop.permute.xlu1 %6874 }
 0x3a6   : > { %v7076_v21 = vadd.f32 %v7031_v18, %v6916_v6  ;;  %v6918_v2 = vadd.f32 %v6875_v24, %v10664_v4 }
 0x3a8   : > { %v7252_v44 = vadd.f32 %v11004_v46, %v7076_v21 }
 0x3a9   : > { %v7035_v45 = vpop.permute.xlu0 %7034  ;;  %v7029_v62 = vpop.permute.xlu1 %7028 }
 0x3aa   : > { %7268 = vst.msk [vmem:[%s10687_s19 + $0x10] sm:$0xff] %vm392_vm8, %v7252_v44  ;;  %v7078_v0 = vadd.f32 %v7035_v45, %v6918_v2  ;;  %v7075_v27 = vadd.f32 %v7029_v62, %v6915_v63 }
 0x3ac   : > { %v7254_v39 = vadd.f32 %v11005_v59, %v7078_v0  ;;  %v7251_v55 = vadd.f32 %v11006_v30, %v7075_v27 }
 0x3ad   : > { %v6889_v32 = vpop.permute.xlu0 %6888  ;;  %v6895_v31 = vpop.permute.xlu1 %6894 }
 0x3ae   : > { %7270 = vst.msk [vmem:[%s10687_s19 + $0x20] sm:$0xff] %vm392_vm8, %v7254_v39  ;;  %7267 = vst.msk [vmem:[%s10687_s19 + $0x8] sm:$0xff] %vm392_vm8, %v7251_v55  ;;  %v6925_v51 = vadd.f32 %v6889_v32, %v10672_v3  ;;  %v6928_v7 = vadd.f32 %v6895_v31, %v10679_v15 }
 0x3b1   : > { %v6893_v4 = vpop.permute.xlu0 %6892  ;;  %v7049_v5 = vpop.permute.xlu1 %7048 }
 0x3b2   : > { %v7085_v14 = vadd.f32 %v7049_v5, %v6925_v51  ;;  %v6927_v38 = vadd.f32 %v6893_v4, %v10681_v9 }
 0x3b4   : > { %v7261_v33 = vadd.f32 %v11007_v36, %v7085_v14 }
 0x3b5   : > { %v7055_v23 = vpop.permute.xlu0 %7054  ;;  %v7053_v12 = vpop.permute.xlu1 %7052 }
 0x3b6   : > { %7277 = vst.msk [vmem:[%s10687_s19 + $0x58] sm:$0xff] %vm392_vm8, %v7261_v33  ;;  %v7088_v47 = vadd.f32 %v7055_v23, %v6928_v7  ;;  %v7087_v17 = vadd.f32 %v7053_v12, %v6927_v38 }
 0x3b8   : > { %v7264_v3 = vadd.f32 %v11008_v54, %v7088_v47  ;;  %v7263_v34 = vadd.f32 %v11009_v20, %v7087_v17 }
 0x3b9   : > { %v6873_v53 = vpop.permute.xlu0 %6872  ;;  %v6879_v60 = vpop.permute.xlu1 %6878 }
 0x3ba   : > { %7280 = vst.msk [vmem:[%s10687_s19 + $0x70] sm:$0xff] %vm392_vm8, %v7264_v3  ;;  %7279 = vst.msk [vmem:[%s10687_s19 + $0x68] sm:$0xff] %vm392_vm8, %v7263_v34  ;;  %v6917_v15 = vadd.f32 %v6873_v53, %v10697_v48  ;;  %v6920_v10 = vadd.f32 %v6879_v60, %v10703_v56  ;;  %v11012_v48 = vld [vmem:[#allocation15_spill] sm:$0xff] }
 0x3bd   : > { %v6877_v9 = vpop.permute.xlu0 %6876  ;;  %v7033_v28 = vpop.permute.xlu1 %7032 }
 0x3be   : > { %v7077_v8 = vadd.f32 %v7033_v28, %v6917_v15  ;;  %v6919_v13 = vadd.f32 %v6877_v9, %v10705_v26 }
 0x3c0   : > { %v7253_v52 = vadd.f32 %v11010_v19, %v7077_v8 }
 0x3c1   : > { %v7039_v25 = vpop.permute.xlu0 %7038  ;;  %v7037_v42 = vpop.permute.xlu1 %7036 }
 0x3c2   : > { %7269 = vst.msk [vmem:[%s10687_s19 + $0x18] sm:$0xff] %vm392_vm8, %v7253_v52  ;;  %v7080_v40 = vadd.f32 %v7039_v25, %v6920_v10  ;;  %v7079_v41 = vadd.f32 %v7037_v42, %v6919_v13 }
 0x3c4   : > { %v7256_v16 = vadd.f32 %v11011_v22, %v7080_v40  ;;  %v7255_v57 = vadd.f32 %v11012_v48, %v7079_v41 }
 0x3c5   : > { %v6897_v49 = vpop.permute.xlu0 %6896  ;;  %v7041_v35 = vpop.permute.xlu1 %7040 }
 0x3c6   : > { %7272 = vst.msk [vmem:[%s10687_s19 + $0x30] sm:$0xff] %vm392_vm8, %v7256_v16  ;;  %7271 = vst.msk [vmem:[%s10687_s19 + $0x28] sm:$0xff] %vm392_vm8, %v7255_v57  ;;  %v6929_v29 = vadd.f32 %v6897_v49, %v10714_v11 }
 0x3c9   : > { %v6881_v56 = vpop.permute.xlu0 %6880 }
 0x3ca   : > { %v6921_v26 = vadd.f32 %v6881_v56, %v6761_v61 }
 0x3cc   : > { %v7081_v37 = vadd.f32 %v7041_v35, %v6921_v26 }
 0x3cd   : > { %v7057_v1 = vpop.permute.xlu0 %7056 }
 0x3ce   : > { %v7257_v50 = vadd.f32 %v11013_v58, %v7081_v37  ;;  %v7089_v43 = vadd.f32 %v7057_v1, %v6929_v29 }
 0x3d0   : > { %7273 = vst.msk [vmem:[%s10687_s19 + $0x38] sm:$0xff] %vm392_vm8, %v7257_v50 }
 0x3d6   : > { %v7248_v6 = vpop.permute.xlu1 %7247 }
 0x3d7   : > { %v7265_v18 = vadd.f32 %v7248_v6, %v7089_v43 }
 0x3d9   : > { %7281 = vst.msk [vmem:[%s10687_s19 + $0x78] sm:$0xff] %vm392_vm8, %v7265_v18 }
 0x3da PF: > { %p16_p8 = scmp.ge.s32.totalorder %s8216_s26, 4   ;;  %s11014_s21 = smov %s8133_s22 }
 0x3db   : > { %s11015_s22 = smov %s8137_s23  ;;  %s11016_s23 = smov %s8226_s29 }
 0x3dc   : > { %s11017_s24 = smov %s8216_s26  ;;  %18 = sbr.rel (!%p16_p8) target bundleno = 3 (0x3), region = 85 }
 0x3e3   :  { %7303 = vsyncpa [#allocation4], 1 }
 0x3e4   :  { %7305 = vsyncpa [#allocation4 + $0x1], 1 }

</bundles_post_ra>
